<compile_context>
chip_gen: v7x
topology: tpu7x:2x2x1
jax: 0.10.0
libtpu: 0.0.40
codegen_flags: <defaults>
</compile_context>

<pallas_src>
import math
import jax
import jax.numpy as jnp
from jax.experimental import pallas as pl
from jax.experimental.pallas import tpu as pltpu


# ----------------------------------------------------------------------------
# Fused kernel: masked_mean + AttentionNet + gate + W + packed BiLSTM + tag
# ----------------------------------------------------------------------------
def _decoder_kernel(
        # data (per batch tile)
        sent_ref, rel_ref, mask_ref, slen_ref,
        # packed attention / gating weights
        w_rel, b_rel, w_sent, b_sent, w_g, b_g, w_att, b_att, al_w, w_gate,
        # packed BiLSTM + hidden2tag weights (gate order [i, f, o, g])
        w_ih, b_ih, whh, w_tag, b_tag,
        # outputs
        proj_ref, wt_ref,
        # VMEM scratch: per-step hidden states [fwd | bwd]
        hid_ref):
    Bt, L, H = sent_ref.shape
    Hh = whh.shape[1]
    G = 4 * Hh
    K = w_tag.shape[1]

    def sig(x):
        # sigmoid via EUP tanh (no VALU divide on the serial recurrence path)
        return 0.5 * (jnp.tanh(0.5 * x) + 1.0)

    sent3 = sent_ref[...]                          # (Bt, L, H)
    sent2 = sent3.reshape(Bt * L, H)
    mask3 = mask_ref[...]                          # (Bt, L, 1)

    # ---- masked_mean: softmax over the (filled) mask values ----------------
    m_fill = jnp.where(mask3 == 0.0, -1e9, mask3)
    m_max = jnp.max(m_fill, axis=1, keepdims=True)
    m_exp = jnp.exp(m_fill - m_max)
    score = m_exp / jnp.sum(m_exp, axis=1, keepdims=True)          # (Bt, L, 1)
    g = jnp.sum(score * sent3, axis=1)                             # (Bt, H)

    # ---- fused sent projections: [Wh(sent)+b | sent@W_s + W.b] -------------
    sp = (jnp.dot(sent2, w_sent[...], preferred_element_type=jnp.float32)
          + b_sent[...]).reshape(Bt, L, 2 * H)
    sent_p3 = sp[..., :H]                          # Wh(sent) + wh_b
    sent_w3 = sp[..., H:]                          # sent @ W[:H] + W.bias

    # ---- fused g projections: [Wg(g) | W1(g)] ------------------------------
    gp = jnp.dot(g, w_g[...], preferred_element_type=jnp.float32) + b_g[...]
    glob_p = gp[:, :H]
    a1 = sig(gp[:, H:])

    relation = (jnp.dot(rel_ref[...], w_rel[...],
                        preferred_element_type=jnp.float32) + b_rel[...])     # (Bt, H)

    mix = jnp.tanh(relation[:, None, :] + sent_p3 + glob_p[:, None, :])       # (Bt,L,H)
    # alpha_net bias shifts every unmasked logit equally -> softmax-invariant,
    # so it is folded away (masked positions are overwritten with -1e9 anyway).
    logits = jnp.sum(mix * al_w[...], axis=-1, keepdims=True)                 # (Bt,L,1)
    logits = jnp.where(mask3 == 0.0, -1e9, logits)
    l_max = jnp.max(logits, axis=1, keepdims=True)
    l_exp = jnp.exp(logits - l_max)
    weight = l_exp / jnp.sum(l_exp, axis=1, keepdims=True)                    # (Bt,L,1)
    wt_ref[...] = weight

    att = jnp.sum(weight * sent_p3, axis=1)                                   # (Bt, H)

    # ---- fused att projections: [W2 | W3a | W3b] ---------------------------
    ap = jnp.dot(att, w_att[...], preferred_element_type=jnp.float32) + b_att[...]
    a2 = sig(ap[:, :H])
    g1 = a1 * jnp.tanh(ap[:, H:2 * H])
    g2 = a2 * jnp.tanh(ap[:, 2 * H:])
    gate_part = (jnp.dot(g1, w_gate[:H, :], preferred_element_type=jnp.float32)
                 + jnp.dot(g2, w_gate[H:, :], preferred_element_type=jnp.float32))
    di2 = (sent_w3 + gate_part[:, None, :]).reshape(Bt * L, H)    # decode_input

    # ---- BiLSTM input projection for BOTH directions in one matmul ---------
    xz = (jnp.dot(di2, w_ih[...], preferred_element_type=jnp.float32)
          + b_ih[...]).reshape(Bt, L, 2 * G)       # [fwd gates | bwd gates]

    # 0/1 validity from sen_len, built in-kernel, pre-broadcast over Hh lanes
    iota_t = jax.lax.broadcasted_iota(jnp.int32, (Bt, L, Hh), 1)
    lval = (iota_t < slen_ref[...]).astype(jnp.float32)            # (Bt, L, Hh)

    whh_f = whh[0]
    whh_b = whh[1]

    def cell(x_t, h, c, w_r):
        gates = x_t + jnp.dot(h, w_r, preferred_element_type=jnp.float32)  # (Bt, 4Hh)
        sg = sig(gates[:, :3 * Hh])                # [i | f | o] in one EUP slab
        g_g = jnp.tanh(gates[:, 3 * Hh:])
        i_g, f_g, o_g = sg[:, :Hh], sg[:, Hh:2 * Hh], sg[:, 2 * Hh:]
        c_new = f_g * c + i_g * g_g
        return o_g * jnp.tanh(c_new), c_new

    zeros = jnp.zeros((Bt, Hh), jnp.float32)
    h_f, c_f = zeros, zeros
    h_b, c_b = zeros, zeros
    # Interleave the two independent recurrences (fwd step t with bwd step
    # L-1-t) so MXU/EUP/VPU latency of one direction hides under the other.
    # Masking h/c with the validity reproduces packed-sequence semantics
    # (state pinned at zero outside [0, sen_len)) for both directions.
    # TODO(synk): for long max_len replace the static unroll with lax.fori_loop
    # carrying the states and keeping the same VMEM hidden-state scratch.
    for s in range(L):
        tf = s
        tb = L - 1 - s
        hf_new, cf_new = cell(xz[:, tf, :G], h_f, c_f, whh_f)
        hb_new, cb_new = cell(xz[:, tb, G:], h_b, c_b, whh_b)
        vf = lval[:, tf, :]
        vb = lval[:, tb, :]
        h_f, c_f = hf_new * vf, cf_new * vf
        h_b, c_b = hb_new * vb, cb_new * vb
        hid_ref[:, tf, :Hh] = h_f
        hid_ref[:, tb, Hh:] = h_b

    # ---- hidden2tag: ONE (Bt*L, 2Hh) x (2Hh, K) matmul ---------------------
    hid2 = hid_ref[...].reshape(Bt * L, 2 * Hh)
    proj = (jnp.dot(hid2, w_tag[...], preferred_element_type=jnp.float32)
            + b_tag[...]).reshape(Bt, L, K)
    # lane-dense output slab (Bt, L*K); assembled with static lane-slice stores
    for t in range(L):
        proj_ref[:, t * K:(t + 1) * K] = proj[:, t, :]


# ----------------------------------------------------------------------------
# Wrapper: weight packing + pallas_call
# ----------------------------------------------------------------------------
def _pick_batch_tile(B, L):
    """Largest batch tile with Bt*L >= 128 in mind, Bt a multiple of 8 (or the
    whole batch), and >= 2 grid programs for v7x megacore once each tile still
    fills the 8 sublanes.  Tiny batches stay a single program."""
    target = max(8, -(-128 // L))
    divs = [d for d in range(1, B + 1) if B % d == 0 and (d % 8 == 0 or d == B)]
    good = [d for d in divs if d <= target and d >= 8 and B // d >= 2]
    if good:
        return max(good)
    ok = [d for d in divs if d <= target]
    return max(ok) if ok else B


def _pack_weights(p, H, Hh):
    def reord(w):   # LSTM gate columns [i|f|g|o] -> [i|f|o|g]
        return jnp.concatenate(
            [w[..., :2 * Hh], w[..., 3 * Hh:], w[..., 2 * Hh:3 * Hh]], axis=-1)

    return [
        p['wr_w'], p['wr_b'],                                              # w_rel, b_rel
        jnp.concatenate([p['wh_w'], p['ww_s']], axis=1),                   # w_sent (H,2H)
        jnp.concatenate([p['wh_b'], p['ww_b']], axis=1),                   # b_sent (1,2H)
        jnp.concatenate([p['wg_w'], p['w1_w']], axis=1),                   # w_g   (H,2H)
        jnp.concatenate([p['wg_b'], p['w1_b']], axis=1),                   # b_g   (1,2H)
        jnp.concatenate([p['w2_w'], p['w3a_w'], p['w3b_w']], axis=1),      # w_att (H,3H)
        jnp.concatenate([p['w2_b'], p['w3a_b'], p['w3b_b']], axis=1),      # b_att (1,3H)
        p['al_w'],                                                         # (1,H)
        jnp.concatenate([p['ww_g1'], p['ww_g2']], axis=0),                 # w_gate (2H,H)
        jnp.concatenate([reord(p['wih_f']), reord(p['wih_b'])], axis=1),   # w_ih (H,8Hh)
        jnp.concatenate([reord(p['b_f']), reord(p['b_b'])], axis=1),       # b_ih (1,8Hh)
        jnp.stack([reord(p['whh_f']), reord(p['whh_b'])], axis=0),         # whh (2,Hh,4Hh)
        jnp.concatenate([p['wtag_f'], p['wtag_b']], axis=0),               # w_tag (2Hh,K)
        p['btag'],                                                         # (1,K)
    ]


def decoder_forward(params, sent, rel_ids, mask, sen_len):
    B, L, H = sent.shape
    R = params['wr_w'].shape[0]
    Hh = params['whh_f'].shape[0]
    K = params['wtag_f'].shape[1]

    # plain-JAX glue: embedding gather + offline weight packing (tiny)
    rel_emb = jnp.take(params['rel_emb'], rel_ids, axis=0)          # (B, R)
    mask3 = mask.astype(jnp.float32).reshape(B, L, 1)
    slen = sen_len.astype(jnp.int32).reshape(B, 1, 1)
    weights = _pack_weights(params, H, Hh)

    Bt = _pick_batch_tile(B, L)
    grid = (B // Bt,)

    in_specs = [
        pl.BlockSpec((Bt, L, H), lambda i: (i, 0, 0)),
        pl.BlockSpec((Bt, R), lambda i: (i, 0)),
        pl.BlockSpec((Bt, L, 1), lambda i: (i, 0, 0)),
        pl.BlockSpec((Bt, 1, 1), lambda i: (i, 0, 0)),
    ] + [pl.BlockSpec(w.shape, lambda i, n=w.ndim: (0,) * n) for w in weights]

    out_specs = (
        pl.BlockSpec((Bt, L * K), lambda i: (i, 0)),
        pl.BlockSpec((Bt, L, 1), lambda i: (i, 0, 0)),
    )
    out_shape = (
        jax.ShapeDtypeStruct((B, L * K), jnp.float32),
        jax.ShapeDtypeStruct((B, L, 1), jnp.float32),
    )

    proj_flat, wt3 = pl.pallas_call(
        _decoder_kernel,
        out_shape=out_shape,
        grid=grid,
        in_specs=in_specs,
        out_specs=out_specs,
        scratch_shapes=[pltpu.VMEM((Bt, L, 2 * Hh), jnp.float32)],
        compiler_params=pltpu.CompilerParams(
            # batch tiles are independent -> v7x megacore can shard them
            dimension_semantics=("parallel",),
            # working set is a few MiB even at Bt=16; stays well inside the
            # v7x 64 MiB physical VMEM
            vmem_limit_bytes=32 * 1024 * 1024),
    )(sent, rel_emb, mask3, slen, *weights)

    return proj_flat.reshape(B, L, K), wt3.reshape(B, L)


# ----------------------------------------------------------------------------
# Deterministic synthetic parameters (weights stored as [in, out])
# ----------------------------------------------------------------------------
def make_params(key, rel_num, rel_dim, H, Hh, K):
    keys = iter(jax.random.split(key, 64))

    def xav(shape):
        bound = math.sqrt(6.0 / (shape[0] + shape[1]))
        return jax.random.uniform(next(keys), shape, jnp.float32, -bound, bound)

    def unif(shape, scale):
        return jax.random.uniform(next(keys), shape, jnp.float32, -scale, scale)

    p = {}
    p['rel_emb'] = xav((rel_num, rel_dim))
    # AttentionNet
    p['wr_w'] = xav((rel_dim, H)); p['wr_b'] = unif((1, H), 1.0 / math.sqrt(rel_dim))
    p['wh_w'] = xav((H, H));       p['wh_b'] = unif((1, H), 1.0 / math.sqrt(H))
    p['wg_w'] = xav((H, H));       p['wg_b'] = unif((1, H), 1.0 / math.sqrt(H))
    p['al_w'] = xav((1, H));       p['al_b'] = unif((1, 1), 1.0 / math.sqrt(H))
    # gates
    p['w1_w'] = xav((H, H)); p['w1_b'] = unif((1, H), 1.0 / math.sqrt(H))
    p['w2_w'] = xav((H, H)); p['w2_b'] = unif((1, H), 1.0 / math.sqrt(H))
    w3 = xav((H, 2 * H)); b3 = unif((1, 2 * H), 1.0 / math.sqrt(H))
    p['w3a_w'], p['w3b_w'] = w3[:, :H], w3[:, H:]
    p['w3a_b'], p['w3b_b'] = b3[:, :H], b3[:, H:]
    # W : 3H -> H (split along input dim: [sent | gate_part1 | gate_part2])
    w = xav((3 * H, H)); p['ww_b'] = unif((1, H), 1.0 / math.sqrt(3 * H))
    p['ww_s'], p['ww_g1'], p['ww_g2'] = w[:H], w[H:2 * H], w[2 * H:]
    # BiLSTM (gate order i, f, g, o; combined ih+hh bias)
    s = 1.0 / math.sqrt(Hh)
    p['wih_f'] = unif((H, 4 * Hh), s); p['whh_f'] = unif((Hh, 4 * Hh), s)
    p['b_f'] = unif((1, 4 * Hh), s)
    p['wih_b'] = unif((H, 4 * Hh), s); p['whh_b'] = unif((Hh, 4 * Hh), s)
    p['b_b'] = unif((1, 4 * Hh), s)
    # hidden2tag : 2*Hh -> K (split along input dim: [fwd | bwd])
    wt = xav((2 * Hh, K)); p['btag'] = unif((1, K), 1.0 / math.sqrt(2 * Hh))
    p['wtag_f'], p['wtag_b'] = wt[:Hh], wt[Hh:]
    return p


# ----------------------------------------------------------------------------
# Pure-JAX reference (same math, used only to sanity-check the kernel)
# ----------------------------------------------------------------------------
def reference_forward(p, sent, rel_ids, mask, sen_len):
    B, L, H = sent.shape
    rel_emb = p['rel_emb'][rel_ids]
    m_fill = jnp.where(mask == 0.0, -1e9, mask)
    score = jax.nn.softmax(m_fill, axis=-1)
    g = jnp.einsum('bl,blh->bh', score, sent)
    relation = rel_emb @ p['wr_w'] + p['wr_b']
    sent_p = jnp.einsum('blh,hk->blk', sent, p['wh_w']) + p['wh_b']
    glob_p = g @ p['wg_w'] + p['wg_b']
    mix = jnp.tanh(relation[:, None, :] + sent_p + glob_p[:, None, :])
    logits = jnp.einsum('blh,h->bl', mix, p['al_w'][0]) + p['al_b'][0, 0]
    logits = jnp.where(mask == 0.0, -1e9, logits)
    weight = jax.nn.softmax(logits, axis=-1)
    att = jnp.einsum('bl,blh->bh', weight, sent_p)
    a1 = jax.nn.sigmoid(g @ p['w1_w'] + p['w1_b'])
    a2 = jax.nn.sigmoid(att @ p['w2_w'] + p['w2_b'])
    g1 = a1 * jnp.tanh(att @ p['w3a_w'] + p['w3a_b'])
    g2 = a2 * jnp.tanh(att @ p['w3b_w'] + p['w3b_b'])
    di = (jnp.einsum('blh,hk->blk', sent, p['ww_s'])
          + (g1 @ p['ww_g1'] + g2 @ p['ww_g2'] + p['ww_b'])[:, None, :])

    Hh = p['whh_f'].shape[0]

    def run_dir(x, wih, whh, bias, reverse):
        h = jnp.zeros((B, Hh), jnp.float32)
        c = jnp.zeros((B, Hh), jnp.float32)
        outs = [None] * L
        ts = range(L - 1, -1, -1) if reverse else range(L)
        for t in ts:
            gates = x[:, t, :] @ wih + h @ whh + bias
            i_g = jax.nn.sigmoid(gates[:, :Hh])
            f_g = jax.nn.sigmoid(gates[:, Hh:2 * Hh])
            g_g = jnp.tanh(gates[:, 2 * Hh:3 * Hh])
            o_g = jax.nn.sigmoid(gates[:, 3 * Hh:])
            c_new = f_g * c + i_g * g_g
            h_new = o_g * jnp.tanh(c_new)
            valid = (t < sen_len)[:, None]
            h = jnp.where(valid, h_new, h)
            c = jnp.where(valid, c_new, c)
            outs[t] = jnp.where(valid, h_new, 0.0)
        return jnp.stack(outs, axis=1)

    hf = run_dir(di, p['wih_f'], p['whh_f'], p['b_f'], False)
    hb = run_dir(di, p['wih_b'], p['whh_b'], p['b_b'], True)
    proj = (jnp.einsum('blh,hk->blk', hf, p['wtag_f'])
            + jnp.einsum('blh,hk->blk', hb, p['wtag_b']) + p['btag'])
    return proj, weight


if __name__ == "__main__":
    B, L, H, R, Hh, K = 2, 8, 32, 16, 32, 16   # batch, max_len, att_hidden, rel_dim, rnn_hidden, labels
    rel_num = 5

    key = jax.random.PRNGKey(0)
    kp, ks, kr = jax.random.split(key, 3)
    params = make_params(kp, rel_num, R, H, Hh, K)

    sent = jax.random.normal(ks, (B, L, H), jnp.float32)
    rel_ids = jax.random.randint(kr, (B,), 0, rel_num)
    sen_len = jnp.array([L, 5], dtype=jnp.int32)
    mask = (jnp.arange(L)[None, :] < sen_len[:, None]).astype(jnp.float32)

    project, weight = jax.jit(decoder_forward)(params, sent, rel_ids, mask, sen_len)
    jax.block_until_ready((project, weight))

    proj_ref, weight_ref = reference_forward(params, sent, rel_ids, mask, sen_len)
    assert jnp.allclose(project, proj_ref, atol=2e-3, rtol=2e-3), \
        float(jnp.max(jnp.abs(project - proj_ref)))
    assert jnp.allclose(weight, weight_ref, atol=2e-3, rtol=2e-3), \
        float(jnp.max(jnp.abs(weight - weight_ref)))

    print("KERNEL_OK")
</pallas_src>

<mosaic_0001>
module attributes {stable_mosaic.version = 11 : i64} {
  func.func @_decoder_kernel(%arg0: i32, %arg1: memref<2x8x32xf32, #tpu.memory_space<vmem>>, %arg2: memref<2x16xf32, #tpu.memory_space<vmem>>, %arg3: memref<2x8x1xf32, #tpu.memory_space<vmem>>, %arg4: memref<2x1x1xi32, #tpu.memory_space<vmem>>, %arg5: memref<16x32xf32, #tpu.memory_space<vmem>>, %arg6: memref<1x32xf32, #tpu.memory_space<vmem>>, %arg7: memref<32x64xf32, #tpu.memory_space<vmem>>, %arg8: memref<1x64xf32, #tpu.memory_space<vmem>>, %arg9: memref<32x64xf32, #tpu.memory_space<vmem>>, %arg10: memref<1x64xf32, #tpu.memory_space<vmem>>, %arg11: memref<32x96xf32, #tpu.memory_space<vmem>>, %arg12: memref<1x96xf32, #tpu.memory_space<vmem>>, %arg13: memref<1x32xf32, #tpu.memory_space<vmem>>, %arg14: memref<64x32xf32, #tpu.memory_space<vmem>>, %arg15: memref<32x256xf32, #tpu.memory_space<vmem>>, %arg16: memref<1x256xf32, #tpu.memory_space<vmem>>, %arg17: memref<2x32x128xf32, #tpu.memory_space<vmem>>, %arg18: memref<64x16xf32, #tpu.memory_space<vmem>>, %arg19: memref<1x16xf32, #tpu.memory_space<vmem>>, %arg20: memref<2x128xf32, #tpu.memory_space<vmem>>, %arg21: memref<2x8x1xf32, #tpu.memory_space<vmem>>, %arg22: memref<2x8x64xf32, #tpu.memory_space<vmem>>) attributes {dimension_semantics = [#tpu.dimension_semantics<parallel>], iteration_bounds = array<i64: 1>, scalar_prefetch = 0 : i64, scratch_operands = 1 : i64, tpu.core_type = #tpu.core_type<tc>, window_params = [{transform_indices = @transform_0, window_bounds = array<i64: 2, 8, 32>}, {transform_indices = @transform_1, window_bounds = array<i64: 2, 16>}, {transform_indices = @transform_2, window_bounds = array<i64: 2, 8, 1>}, {transform_indices = @transform_3, window_bounds = array<i64: 2, 1, 1>}, {pipeline_mode = #tpu.pipeline_mode<synchronous>, transform_indices = @transform_4, window_bounds = array<i64: 16, 32>}, {pipeline_mode = #tpu.pipeline_mode<synchronous>, transform_indices = @transform_5, window_bounds = array<i64: 1, 32>}, {pipeline_mode = #tpu.pipeline_mode<synchronous>, transform_indices = @transform_6, window_bounds = array<i64: 32, 64>}, {pipeline_mode = #tpu.pipeline_mode<synchronous>, transform_indices = @transform_7, window_bounds = array<i64: 1, 64>}, {pipeline_mode = #tpu.pipeline_mode<synchronous>, transform_indices = @transform_8, window_bounds = array<i64: 32, 64>}, {pipeline_mode = #tpu.pipeline_mode<synchronous>, transform_indices = @transform_9, window_bounds = array<i64: 1, 64>}, {pipeline_mode = #tpu.pipeline_mode<synchronous>, transform_indices = @transform_10, window_bounds = array<i64: 32, 96>}, {pipeline_mode = #tpu.pipeline_mode<synchronous>, transform_indices = @transform_11, window_bounds = array<i64: 1, 96>}, {pipeline_mode = #tpu.pipeline_mode<synchronous>, transform_indices = @transform_12, window_bounds = array<i64: 1, 32>}, {pipeline_mode = #tpu.pipeline_mode<synchronous>, transform_indices = @transform_13, window_bounds = array<i64: 64, 32>}, {pipeline_mode = #tpu.pipeline_mode<synchronous>, transform_indices = @transform_14, window_bounds = array<i64: 32, 256>}, {pipeline_mode = #tpu.pipeline_mode<synchronous>, transform_indices = @transform_15, window_bounds = array<i64: 1, 256>}, {pipeline_mode = #tpu.pipeline_mode<synchronous>, transform_indices = @transform_16, window_bounds = array<i64: 2, 32, 128>}, {pipeline_mode = #tpu.pipeline_mode<synchronous>, transform_indices = @transform_17, window_bounds = array<i64: 64, 16>}, {pipeline_mode = #tpu.pipeline_mode<synchronous>, transform_indices = @transform_18, window_bounds = array<i64: 1, 16>}, {transform_indices = @transform_19, window_bounds = array<i64: 2, 128>}, {transform_indices = @transform_20, window_bounds = array<i64: 2, 8, 1>}]} {
    %c0 = arith.constant 0 : index
    %c0_0 = arith.constant 0 : index
    %c0_1 = arith.constant 0 : index
    %0 = vector.load %arg1[%c0, %c0_0, %c0_1] : memref<2x8x32xf32, #tpu.memory_space<vmem>>, vector<2x8x32xf32>
    %1 = vector.shape_cast %0 : vector<2x8x32xf32> to vector<16x32xf32>
    %c0_2 = arith.constant 0 : index
    %c0_3 = arith.constant 0 : index
    %c0_4 = arith.constant 0 : index
    %2 = vector.load %arg3[%c0_2, %c0_3, %c0_4] : memref<2x8x1xf32, #tpu.memory_space<vmem>>, vector<2x8x1xf32>
    %cst = arith.constant 0.000000e+00 : f32
    %3 = vector.broadcast %cst : f32 to vector<2x8x1xf32>
    %4 = arith.cmpf oeq, %2, %3 : vector<2x8x1xf32>
    %cst_5 = arith.constant -1.000000e+09 : f32
    %5 = vector.broadcast %cst_5 : f32 to vector<2x8x1xf32>
    %6 = arith.select %4, %5, %2 : vector<2x8x1xi1>, vector<2x8x1xf32>
    %cst_6 = arith.constant dense<0xFF800000> : vector<2x1xf32>
    %7 = vector.multi_reduction <maximumf>, %6, %cst_6 [1] : vector<2x8x1xf32> to vector<2x1xf32>
    %8 = vector.shape_cast %7 : vector<2x1xf32> to vector<2x1x1xf32>
    %9 = vector.broadcast %8 : vector<2x1x1xf32> to vector<2x8x1xf32>
    %10 = arith.subf %6, %9 : vector<2x8x1xf32>
    %11 = math.exp %10 : vector<2x8x1xf32>
    %cst_7 = arith.constant dense<0.000000e+00> : vector<2x1xf32>
    %12 = vector.multi_reduction <add>, %11, %cst_7 [1] : vector<2x8x1xf32> to vector<2x1xf32>
    %13 = vector.shape_cast %12 : vector<2x1xf32> to vector<2x1x1xf32>
    %14 = vector.broadcast %13 : vector<2x1x1xf32> to vector<2x8x1xf32>
    %15 = arith.divf %11, %14 : vector<2x8x1xf32>
    %16 = vector.broadcast %15 : vector<2x8x1xf32> to vector<2x8x32xf32>
    %17 = arith.mulf %16, %0 : vector<2x8x32xf32>
    %cst_8 = arith.constant dense<0.000000e+00> : vector<2x32xf32>
    %18 = vector.multi_reduction <add>, %17, %cst_8 [1] : vector<2x8x32xf32> to vector<2x32xf32>
    %c0_9 = arith.constant 0 : index
    %c0_10 = arith.constant 0 : index
    %19 = vector.load %arg7[%c0_9, %c0_10] : memref<32x64xf32, #tpu.memory_space<vmem>>, vector<32x64xf32>
    %cst_11 = arith.constant dense<0.000000e+00> : vector<16x64xf32>
    %20 = tpu.matmul %1, %19, %cst_11 {dimension_numbers = #tpu.dot_dimension_numbers<[1], [0], [0], [1], [0, 0, 1, 1], [], []>} : vector<16x32xf32>, vector<32x64xf32>, vector<16x64xf32> -> vector<16x64xf32>
    %c0_12 = arith.constant 0 : index
    %c0_13 = arith.constant 0 : index
    %21 = vector.load %arg8[%c0_12, %c0_13] : memref<1x64xf32, #tpu.memory_space<vmem>>, vector<1x64xf32>
    %22 = vector.broadcast %21 : vector<1x64xf32> to vector<16x64xf32>
    %23 = arith.addf %20, %22 : vector<16x64xf32>
    %24 = vector.shape_cast %23 : vector<16x64xf32> to vector<2x8x64xf32>
    %25 = vector.extract_strided_slice %24 {offsets = [0, 0, 0], sizes = [2, 8, 32], strides = [1, 1, 1]} : vector<2x8x64xf32> to vector<2x8x32xf32>
    %26 = vector.extract_strided_slice %24 {offsets = [0, 0, 32], sizes = [2, 8, 32], strides = [1, 1, 1]} : vector<2x8x64xf32> to vector<2x8x32xf32>
    %c0_14 = arith.constant 0 : index
    %c0_15 = arith.constant 0 : index
    %27 = vector.load %arg9[%c0_14, %c0_15] : memref<32x64xf32, #tpu.memory_space<vmem>>, vector<32x64xf32>
    %cst_16 = arith.constant dense<0.000000e+00> : vector<2x64xf32>
    %28 = tpu.matmul %18, %27, %cst_16 {dimension_numbers = #tpu.dot_dimension_numbers<[1], [0], [0], [1], [0, 0, 1, 1], [], []>} : vector<2x32xf32>, vector<32x64xf32>, vector<2x64xf32> -> vector<2x64xf32>
    %c0_17 = arith.constant 0 : index
    %c0_18 = arith.constant 0 : index
    %29 = vector.load %arg10[%c0_17, %c0_18] : memref<1x64xf32, #tpu.memory_space<vmem>>, vector<1x64xf32>
    %30 = vector.broadcast %29 : vector<1x64xf32> to vector<2x64xf32>
    %31 = arith.addf %28, %30 : vector<2x64xf32>
    %32 = vector.extract_strided_slice %31 {offsets = [0, 0], sizes = [2, 32], strides = [1, 1]} : vector<2x64xf32> to vector<2x32xf32>
    %33 = vector.extract_strided_slice %31 {offsets = [0, 32], sizes = [2, 32], strides = [1, 1]} : vector<2x64xf32> to vector<2x32xf32>
    %cst_19 = arith.constant 5.000000e-01 : f32
    %34 = vector.broadcast %cst_19 : f32 to vector<2x32xf32>
    %35 = arith.mulf %34, %33 : vector<2x32xf32>
    %36 = math.tanh %35 : vector<2x32xf32>
    %cst_20 = arith.constant 1.000000e+00 : f32
    %37 = vector.broadcast %cst_20 : f32 to vector<2x32xf32>
    %38 = arith.addf %36, %37 : vector<2x32xf32>
    %cst_21 = arith.constant 5.000000e-01 : f32
    %39 = vector.broadcast %cst_21 : f32 to vector<2x32xf32>
    %40 = arith.mulf %39, %38 : vector<2x32xf32>
    %c0_22 = arith.constant 0 : index
    %c0_23 = arith.constant 0 : index
    %41 = vector.load %arg2[%c0_22, %c0_23] : memref<2x16xf32, #tpu.memory_space<vmem>>, vector<2x16xf32>
    %c0_24 = arith.constant 0 : index
    %c0_25 = arith.constant 0 : index
    %42 = vector.load %arg5[%c0_24, %c0_25] : memref<16x32xf32, #tpu.memory_space<vmem>>, vector<16x32xf32>
    %cst_26 = arith.constant dense<0.000000e+00> : vector<2x32xf32>
    %43 = tpu.matmul %41, %42, %cst_26 {dimension_numbers = #tpu.dot_dimension_numbers<[1], [0], [0], [1], [0, 0, 1, 1], [], []>} : vector<2x16xf32>, vector<16x32xf32>, vector<2x32xf32> -> vector<2x32xf32>
    %c0_27 = arith.constant 0 : index
    %c0_28 = arith.constant 0 : index
    %44 = vector.load %arg6[%c0_27, %c0_28] : memref<1x32xf32, #tpu.memory_space<vmem>>, vector<1x32xf32>
    %45 = vector.broadcast %44 : vector<1x32xf32> to vector<2x32xf32>
    %46 = arith.addf %43, %45 : vector<2x32xf32>
    %47 = vector.shape_cast %46 : vector<2x32xf32> to vector<2x1x32xf32>
    %48 = vector.broadcast %47 : vector<2x1x32xf32> to vector<2x8x32xf32>
    %49 = arith.addf %48, %25 : vector<2x8x32xf32>
    %50 = vector.shape_cast %32 : vector<2x32xf32> to vector<2x1x32xf32>
    %51 = vector.broadcast %50 : vector<2x1x32xf32> to vector<2x8x32xf32>
    %52 = arith.addf %49, %51 : vector<2x8x32xf32>
    %53 = math.tanh %52 : vector<2x8x32xf32>
    %c0_29 = arith.constant 0 : index
    %c0_30 = arith.constant 0 : index
    %54 = vector.load %arg13[%c0_29, %c0_30] : memref<1x32xf32, #tpu.memory_space<vmem>>, vector<1x32xf32>
    %55 = vector.shape_cast %54 : vector<1x32xf32> to vector<1x1x32xf32>
    %56 = vector.broadcast %55 : vector<1x1x32xf32> to vector<2x8x32xf32>
    %57 = arith.mulf %53, %56 : vector<2x8x32xf32>
    %cst_31 = arith.constant dense<0.000000e+00> : vector<2x8xf32>
    %58 = vector.multi_reduction <add>, %57, %cst_31 [2] : vector<2x8x32xf32> to vector<2x8xf32>
    %59 = vector.shape_cast %58 : vector<2x8xf32> to vector<2x8x1xf32>
    %cst_32 = arith.constant 0.000000e+00 : f32
    %60 = vector.broadcast %cst_32 : f32 to vector<2x8x1xf32>
    %61 = arith.cmpf oeq, %2, %60 : vector<2x8x1xf32>
    %cst_33 = arith.constant -1.000000e+09 : f32
    %62 = vector.broadcast %cst_33 : f32 to vector<2x8x1xf32>
    %63 = arith.select %61, %62, %59 : vector<2x8x1xi1>, vector<2x8x1xf32>
    %cst_34 = arith.constant dense<0xFF800000> : vector<2x1xf32>
    %64 = vector.multi_reduction <maximumf>, %63, %cst_34 [1] : vector<2x8x1xf32> to vector<2x1xf32>
    %65 = vector.shape_cast %64 : vector<2x1xf32> to vector<2x1x1xf32>
    %66 = vector.broadcast %65 : vector<2x1x1xf32> to vector<2x8x1xf32>
    %67 = arith.subf %63, %66 : vector<2x8x1xf32>
    %68 = math.exp %67 : vector<2x8x1xf32>
    %cst_35 = arith.constant dense<0.000000e+00> : vector<2x1xf32>
    %69 = vector.multi_reduction <add>, %68, %cst_35 [1] : vector<2x8x1xf32> to vector<2x1xf32>
    %70 = vector.shape_cast %69 : vector<2x1xf32> to vector<2x1x1xf32>
    %71 = vector.broadcast %70 : vector<2x1x1xf32> to vector<2x8x1xf32>
    %72 = arith.divf %68, %71 : vector<2x8x1xf32>
    %c0_36 = arith.constant 0 : index
    %c0_37 = arith.constant 0 : index
    %c0_38 = arith.constant 0 : index
    %73 = vector.load %arg21[%c0_36, %c0_37, %c0_38] : memref<2x8x1xf32, #tpu.memory_space<vmem>>, vector<2x8x1xf32>
    tpu.vector_store %arg21[%c0_36, %c0_37, %c0_38], %72 {strides = array<i32>} : memref<2x8x1xf32, #tpu.memory_space<vmem>>, vector<2x8x1xf32>,
    %74 = vector.broadcast %72 : vector<2x8x1xf32> to vector<2x8x32xf32>
    %75 = arith.mulf %74, %25 : vector<2x8x32xf32>
    %cst_39 = arith.constant dense<0.000000e+00> : vector<2x32xf32>
    %76 = vector.multi_reduction <add>, %75, %cst_39 [1] : vector<2x8x32xf32> to vector<2x32xf32>
    %c0_40 = arith.constant 0 : index
    %c0_41 = arith.constant 0 : index
    %77 = vector.load %arg11[%c0_40, %c0_41] : memref<32x96xf32, #tpu.memory_space<vmem>>, vector<32x96xf32>
    %cst_42 = arith.constant dense<0.000000e+00> : vector<2x96xf32>
    %78 = tpu.matmul %76, %77, %cst_42 {dimension_numbers = #tpu.dot_dimension_numbers<[1], [0], [0], [1], [0, 0, 1, 1], [], []>} : vector<2x32xf32>, vector<32x96xf32>, vector<2x96xf32> -> vector<2x96xf32>
    %c0_43 = arith.constant 0 : index
    %c0_44 = arith.constant 0 : index
    %79 = vector.load %arg12[%c0_43, %c0_44] : memref<1x96xf32, #tpu.memory_space<vmem>>, vector<1x96xf32>
    %80 = vector.broadcast %79 : vector<1x96xf32> to vector<2x96xf32>
    %81 = arith.addf %78, %80 : vector<2x96xf32>
    %82 = vector.extract_strided_slice %81 {offsets = [0, 0], sizes = [2, 32], strides = [1, 1]} : vector<2x96xf32> to vector<2x32xf32>
    %cst_45 = arith.constant 5.000000e-01 : f32
    %83 = vector.broadcast %cst_45 : f32 to vector<2x32xf32>
    %84 = arith.mulf %83, %82 : vector<2x32xf32>
    %85 = math.tanh %84 : vector<2x32xf32>
    %cst_46 = arith.constant 1.000000e+00 : f32
    %86 = vector.broadcast %cst_46 : f32 to vector<2x32xf32>
    %87 = arith.addf %85, %86 : vector<2x32xf32>
    %cst_47 = arith.constant 5.000000e-01 : f32
    %88 = vector.broadcast %cst_47 : f32 to vector<2x32xf32>
    %89 = arith.mulf %88, %87 : vector<2x32xf32>
    %90 = vector.extract_strided_slice %81 {offsets = [0, 32], sizes = [2, 32], strides = [1, 1]} : vector<2x96xf32> to vector<2x32xf32>
    %91 = math.tanh %90 : vector<2x32xf32>
    %92 = arith.mulf %40, %91 : vector<2x32xf32>
    %93 = vector.extract_strided_slice %81 {offsets = [0, 64], sizes = [2, 32], strides = [1, 1]} : vector<2x96xf32> to vector<2x32xf32>
    %94 = math.tanh %93 : vector<2x32xf32>
    %95 = arith.mulf %89, %94 : vector<2x32xf32>
    %c0_48 = arith.constant 0 : index
    %c0_49 = arith.constant 0 : index
    %96 = vector.load %arg14[%c0_48, %c0_49] : memref<64x32xf32, #tpu.memory_space<vmem>>, vector<32x32xf32>
    %cst_50 = arith.constant dense<0.000000e+00> : vector<2x32xf32>
    %97 = tpu.matmul %92, %96, %cst_50 {dimension_numbers = #tpu.dot_dimension_numbers<[1], [0], [0], [1], [0, 0, 1, 1], [], []>} : vector<2x32xf32>, vector<32x32xf32>, vector<2x32xf32> -> vector<2x32xf32>
    %c32 = arith.constant 32 : index
    %c0_51 = arith.constant 0 : index
    %98 = vector.load %arg14[%c32, %c0_51] : memref<64x32xf32, #tpu.memory_space<vmem>>, vector<32x32xf32>
    %cst_52 = arith.constant dense<0.000000e+00> : vector<2x32xf32>
    %99 = tpu.matmul %95, %98, %cst_52 {dimension_numbers = #tpu.dot_dimension_numbers<[1], [0], [0], [1], [0, 0, 1, 1], [], []>} : vector<2x32xf32>, vector<32x32xf32>, vector<2x32xf32> -> vector<2x32xf32>
    %100 = arith.addf %97, %99 : vector<2x32xf32>
    %101 = vector.shape_cast %100 : vector<2x32xf32> to vector<2x1x32xf32>
    %102 = vector.broadcast %101 : vector<2x1x32xf32> to vector<2x8x32xf32>
    %103 = arith.addf %26, %102 : vector<2x8x32xf32>
    %104 = vector.shape_cast %103 : vector<2x8x32xf32> to vector<16x32xf32>
    %c0_53 = arith.constant 0 : index
    %c0_54 = arith.constant 0 : index
    %105 = vector.load %arg15[%c0_53, %c0_54] : memref<32x256xf32, #tpu.memory_space<vmem>>, vector<32x256xf32>
    %cst_55 = arith.constant dense<0.000000e+00> : vector<16x256xf32>
    %106 = tpu.matmul %104, %105, %cst_55 {dimension_numbers = #tpu.dot_dimension_numbers<[1], [0], [0], [1], [0, 0, 1, 1], [], []>} : vector<16x32xf32>, vector<32x256xf32>, vector<16x256xf32> -> vector<16x256xf32>
    %c0_56 = arith.constant 0 : index
    %c0_57 = arith.constant 0 : index
    %107 = vector.load %arg16[%c0_56, %c0_57] : memref<1x256xf32, #tpu.memory_space<vmem>>, vector<1x256xf32>
    %108 = vector.broadcast %107 : vector<1x256xf32> to vector<16x256xf32>
    %109 = arith.addf %106, %108 : vector<16x256xf32>
    %110 = vector.shape_cast %109 : vector<16x256xf32> to vector<2x8x256xf32>
    %111 = tpu.iota {dimensions = array<i32: 1>} : vector<2x8x32xi32>
    %c0_58 = arith.constant 0 : index
    %c0_59 = arith.constant 0 : index
    %c0_60 = arith.constant 0 : index
    %112 = vector.load %arg4[%c0_58, %c0_59, %c0_60] : memref<2x1x1xi32, #tpu.memory_space<vmem>>, vector<2x1x1xi32>
    %113 = vector.broadcast %112 : vector<2x1x1xi32> to vector<2x8x32xi32>
    %114 = arith.cmpi slt, %111, %113 : vector<2x8x32xi32>
    %115 = arith.extui %114 : vector<2x8x32xi1> to vector<2x8x32xi32>
    %116 = arith.sitofp %115 : vector<2x8x32xi32> to vector<2x8x32xf32>
    %c0_61 = arith.constant 0 : index
    %c0_62 = arith.constant 0 : index
    %c0_63 = arith.constant 0 : index
    %117 = vector.load %arg17[%c0_61, %c0_62, %c0_63] : memref<2x32x128xf32, #tpu.memory_space<vmem>>, vector<1x32x128xf32>
    %118 = vector.shape_cast %117 : vector<1x32x128xf32> to vector<32x128xf32>
    %c1 = arith.constant 1 : index
    %c0_64 = arith.constant 0 : index
    %c0_65 = arith.constant 0 : index
    %119 = vector.load %arg17[%c1, %c0_64, %c0_65] : memref<2x32x128xf32, #tpu.memory_space<vmem>>, vector<1x32x128xf32>
    %120 = vector.shape_cast %119 : vector<1x32x128xf32> to vector<32x128xf32>
    %cst_66 = arith.constant 0.000000e+00 : f32
    %121 = vector.broadcast %cst_66 : f32 to vector<2x32xf32>
    %122 = vector.extract_strided_slice %110 {offsets = [0, 0, 0], sizes = [2, 1, 128], strides = [1, 1, 1]} : vector<2x8x256xf32> to vector<2x1x128xf32>
    %123 = vector.shape_cast %122 : vector<2x1x128xf32> to vector<2x128xf32>
    %cst_67 = arith.constant dense<0.000000e+00> : vector<2x128xf32>
    %124 = tpu.matmul %121, %118, %cst_67 {dimension_numbers = #tpu.dot_dimension_numbers<[1], [0], [0], [1], [0, 0, 1, 1], [], []>} : vector<2x32xf32>, vector<32x128xf32>, vector<2x128xf32> -> vector<2x128xf32>
    %125 = arith.addf %123, %124 : vector<2x128xf32>
    %126 = vector.extract_strided_slice %125 {offsets = [0, 0], sizes = [2, 96], strides = [1, 1]} : vector<2x128xf32> to vector<2x96xf32>
    %cst_68 = arith.constant 5.000000e-01 : f32
    %127 = vector.broadcast %cst_68 : f32 to vector<2x96xf32>
    %128 = arith.mulf %127, %126 : vector<2x96xf32>
    %129 = math.tanh %128 : vector<2x96xf32>
    %cst_69 = arith.constant 1.000000e+00 : f32
    %130 = vector.broadcast %cst_69 : f32 to vector<2x96xf32>
    %131 = arith.addf %129, %130 : vector<2x96xf32>
    %cst_70 = arith.constant 5.000000e-01 : f32
    %132 = vector.broadcast %cst_70 : f32 to vector<2x96xf32>
    %133 = arith.mulf %132, %131 : vector<2x96xf32>
    %134 = vector.extract_strided_slice %125 {offsets = [0, 96], sizes = [2, 32], strides = [1, 1]} : vector<2x128xf32> to vector<2x32xf32>
    %135 = math.tanh %134 : vector<2x32xf32>
    %136 = vector.extract_strided_slice %133 {offsets = [0, 0], sizes = [2, 32], strides = [1, 1]} : vector<2x96xf32> to vector<2x32xf32>
    %137 = vector.extract_strided_slice %133 {offsets = [0, 32], sizes = [2, 32], strides = [1, 1]} : vector<2x96xf32> to vector<2x32xf32>
    %138 = vector.extract_strided_slice %133 {offsets = [0, 64], sizes = [2, 32], strides = [1, 1]} : vector<2x96xf32> to vector<2x32xf32>
    %139 = arith.mulf %137, %121 : vector<2x32xf32>
    %140 = arith.mulf %136, %135 : vector<2x32xf32>
    %141 = arith.addf %139, %140 : vector<2x32xf32>
    %142 = math.tanh %141 : vector<2x32xf32>
    %143 = arith.mulf %138, %142 : vector<2x32xf32>
    %144 = vector.extract_strided_slice %110 {offsets = [0, 7, 128], sizes = [2, 1, 128], strides = [1, 1, 1]} : vector<2x8x256xf32> to vector<2x1x128xf32>
    %145 = vector.shape_cast %144 : vector<2x1x128xf32> to vector<2x128xf32>
    %cst_71 = arith.constant dense<0.000000e+00> : vector<2x128xf32>
    %146 = tpu.matmul %121, %120, %cst_71 {dimension_numbers = #tpu.dot_dimension_numbers<[1], [0], [0], [1], [0, 0, 1, 1], [], []>} : vector<2x32xf32>, vector<32x128xf32>, vector<2x128xf32> -> vector<2x128xf32>
    %147 = arith.addf %145, %146 : vector<2x128xf32>
    %148 = vector.extract_strided_slice %147 {offsets = [0, 0], sizes = [2, 96], strides = [1, 1]} : vector<2x128xf32> to vector<2x96xf32>
    %cst_72 = arith.constant 5.000000e-01 : f32
    %149 = vector.broadcast %cst_72 : f32 to vector<2x96xf32>
    %150 = arith.mulf %149, %148 : vector<2x96xf32>
    %151 = math.tanh %150 : vector<2x96xf32>
    %cst_73 = arith.constant 1.000000e+00 : f32
    %152 = vector.broadcast %cst_73 : f32 to vector<2x96xf32>
    %153 = arith.addf %151, %152 : vector<2x96xf32>
    %cst_74 = arith.constant 5.000000e-01 : f32
    %154 = vector.broadcast %cst_74 : f32 to vector<2x96xf32>
    %155 = arith.mulf %154, %153 : vector<2x96xf32>
    %156 = vector.extract_strided_slice %147 {offsets = [0, 96], sizes = [2, 32], strides = [1, 1]} : vector<2x128xf32> to vector<2x32xf32>
    %157 = math.tanh %156 : vector<2x32xf32>
    %158 = vector.extract_strided_slice %155 {offsets = [0, 0], sizes = [2, 32], strides = [1, 1]} : vector<2x96xf32> to vector<2x32xf32>
    %159 = vector.extract_strided_slice %155 {offsets = [0, 32], sizes = [2, 32], strides = [1, 1]} : vector<2x96xf32> to vector<2x32xf32>
    %160 = vector.extract_strided_slice %155 {offsets = [0, 64], sizes = [2, 32], strides = [1, 1]} : vector<2x96xf32> to vector<2x32xf32>
    %161 = arith.mulf %159, %121 : vector<2x32xf32>
    %162 = arith.mulf %158, %157 : vector<2x32xf32>
    %163 = arith.addf %161, %162 : vector<2x32xf32>
    %164 = math.tanh %163 : vector<2x32xf32>
    %165 = arith.mulf %160, %164 : vector<2x32xf32>
    %166 = vector.extract_strided_slice %116 {offsets = [0, 0, 0], sizes = [2, 1, 32], strides = [1, 1, 1]} : vector<2x8x32xf32> to vector<2x1x32xf32>
    %167 = vector.shape_cast %166 : vector<2x1x32xf32> to vector<2x32xf32>
    %168 = vector.extract_strided_slice %116 {offsets = [0, 7, 0], sizes = [2, 1, 32], strides = [1, 1, 1]} : vector<2x8x32xf32> to vector<2x1x32xf32>
    %169 = vector.shape_cast %168 : vector<2x1x32xf32> to vector<2x32xf32>
    %170 = arith.mulf %143, %167 : vector<2x32xf32>
    %171 = arith.mulf %141, %167 : vector<2x32xf32>
    %172 = arith.mulf %165, %169 : vector<2x32xf32>
    %173 = arith.mulf %163, %169 : vector<2x32xf32>
    %c0_75 = arith.constant 0 : index
    %c0_76 = arith.constant 0 : index
    %c0_77 = arith.constant 0 : index
    %174 = vector.load %arg22[%c0_75, %c0_76, %c0_77] : memref<2x8x64xf32, #tpu.memory_space<vmem>>, vector<2x1x32xf32>
    %175 = vector.shape_cast %174 : vector<2x1x32xf32> to vector<2x32xf32>
    %176 = vector.shape_cast %170 : vector<2x32xf32> to vector<2x1x32xf32>
    tpu.vector_store %arg22[%c0_75, %c0_76, %c0_77], %176 {strides = array<i32>} : memref<2x8x64xf32, #tpu.memory_space<vmem>>, vector<2x1x32xf32>,
    %c0_78 = arith.constant 0 : index
    %c7 = arith.constant 7 : index
    %c32_79 = arith.constant 32 : index
    %177 = vector.load %arg22[%c0_78, %c7, %c32_79] : memref<2x8x64xf32, #tpu.memory_space<vmem>>, vector<2x1x32xf32>
    %178 = vector.shape_cast %177 : vector<2x1x32xf32> to vector<2x32xf32>
    %179 = vector.shape_cast %172 : vector<2x32xf32> to vector<2x1x32xf32>
    tpu.vector_store %arg22[%c0_78, %c7, %c32_79], %179 {strides = array<i32>} : memref<2x8x64xf32, #tpu.memory_space<vmem>>, vector<2x1x32xf32>,
    %180 = vector.extract_strided_slice %110 {offsets = [0, 1, 0], sizes = [2, 1, 128], strides = [1, 1, 1]} : vector<2x8x256xf32> to vector<2x1x128xf32>
    %181 = vector.shape_cast %180 : vector<2x1x128xf32> to vector<2x128xf32>
    %cst_80 = arith.constant dense<0.000000e+00> : vector<2x128xf32>
    %182 = tpu.matmul %170, %118, %cst_80 {dimension_numbers = #tpu.dot_dimension_numbers<[1], [0], [0], [1], [0, 0, 1, 1], [], []>} : vector<2x32xf32>, vector<32x128xf32>, vector<2x128xf32> -> vector<2x128xf32>
    %183 = arith.addf %181, %182 : vector<2x128xf32>
    %184 = vector.extract_strided_slice %183 {offsets = [0, 0], sizes = [2, 96], strides = [1, 1]} : vector<2x128xf32> to vector<2x96xf32>
    %cst_81 = arith.constant 5.000000e-01 : f32
    %185 = vector.broadcast %cst_81 : f32 to vector<2x96xf32>
    %186 = arith.mulf %185, %184 : vector<2x96xf32>
    %187 = math.tanh %186 : vector<2x96xf32>
    %cst_82 = arith.constant 1.000000e+00 : f32
    %188 = vector.broadcast %cst_82 : f32 to vector<2x96xf32>
    %189 = arith.addf %187, %188 : vector<2x96xf32>
    %cst_83 = arith.constant 5.000000e-01 : f32
    %190 = vector.broadcast %cst_83 : f32 to vector<2x96xf32>
    %191 = arith.mulf %190, %189 : vector<2x96xf32>
    %192 = vector.extract_strided_slice %183 {offsets = [0, 96], sizes = [2, 32], strides = [1, 1]} : vector<2x128xf32> to vector<2x32xf32>
    %193 = math.tanh %192 : vector<2x32xf32>
    %194 = vector.extract_strided_slice %191 {offsets = [0, 0], sizes = [2, 32], strides = [1, 1]} : vector<2x96xf32> to vector<2x32xf32>
    %195 = vector.extract_strided_slice %191 {offsets = [0, 32], sizes = [2, 32], strides = [1, 1]} : vector<2x96xf32> to vector<2x32xf32>
    %196 = vector.extract_strided_slice %191 {offsets = [0, 64], sizes = [2, 32], strides = [1, 1]} : vector<2x96xf32> to vector<2x32xf32>
    %197 = arith.mulf %195, %171 : vector<2x32xf32>
    %198 = arith.mulf %194, %193 : vector<2x32xf32>
    %199 = arith.addf %197, %198 : vector<2x32xf32>
    %200 = math.tanh %199 : vector<2x32xf32>
    %201 = arith.mulf %196, %200 : vector<2x32xf32>
    %202 = vector.extract_strided_slice %110 {offsets = [0, 6, 128], sizes = [2, 1, 128], strides = [1, 1, 1]} : vector<2x8x256xf32> to vector<2x1x128xf32>
    %203 = vector.shape_cast %202 : vector<2x1x128xf32> to vector<2x128xf32>
    %cst_84 = arith.constant dense<0.000000e+00> : vector<2x128xf32>
    %204 = tpu.matmul %172, %120, %cst_84 {dimension_numbers = #tpu.dot_dimension_numbers<[1], [0], [0], [1], [0, 0, 1, 1], [], []>} : vector<2x32xf32>, vector<32x128xf32>, vector<2x128xf32> -> vector<2x128xf32>
    %205 = arith.addf %203, %204 : vector<2x128xf32>
    %206 = vector.extract_strided_slice %205 {offsets = [0, 0], sizes = [2, 96], strides = [1, 1]} : vector<2x128xf32> to vector<2x96xf32>
    %cst_85 = arith.constant 5.000000e-01 : f32
    %207 = vector.broadcast %cst_85 : f32 to vector<2x96xf32>
    %208 = arith.mulf %207, %206 : vector<2x96xf32>
    %209 = math.tanh %208 : vector<2x96xf32>
    %cst_86 = arith.constant 1.000000e+00 : f32
    %210 = vector.broadcast %cst_86 : f32 to vector<2x96xf32>
    %211 = arith.addf %209, %210 : vector<2x96xf32>
    %cst_87 = arith.constant 5.000000e-01 : f32
    %212 = vector.broadcast %cst_87 : f32 to vector<2x96xf32>
    %213 = arith.mulf %212, %211 : vector<2x96xf32>
    %214 = vector.extract_strided_slice %205 {offsets = [0, 96], sizes = [2, 32], strides = [1, 1]} : vector<2x128xf32> to vector<2x32xf32>
    %215 = math.tanh %214 : vector<2x32xf32>
    %216 = vector.extract_strided_slice %213 {offsets = [0, 0], sizes = [2, 32], strides = [1, 1]} : vector<2x96xf32> to vector<2x32xf32>
    %217 = vector.extract_strided_slice %213 {offsets = [0, 32], sizes = [2, 32], strides = [1, 1]} : vector<2x96xf32> to vector<2x32xf32>
    %218 = vector.extract_strided_slice %213 {offsets = [0, 64], sizes = [2, 32], strides = [1, 1]} : vector<2x96xf32> to vector<2x32xf32>
    %219 = arith.mulf %217, %173 : vector<2x32xf32>
    %220 = arith.mulf %216, %215 : vector<2x32xf32>
    %221 = arith.addf %219, %220 : vector<2x32xf32>
    %222 = math.tanh %221 : vector<2x32xf32>
    %223 = arith.mulf %218, %222 : vector<2x32xf32>
    %224 = vector.extract_strided_slice %116 {offsets = [0, 1, 0], sizes = [2, 1, 32], strides = [1, 1, 1]} : vector<2x8x32xf32> to vector<2x1x32xf32>
    %225 = vector.shape_cast %224 : vector<2x1x32xf32> to vector<2x32xf32>
    %226 = vector.extract_strided_slice %116 {offsets = [0, 6, 0], sizes = [2, 1, 32], strides = [1, 1, 1]} : vector<2x8x32xf32> to vector<2x1x32xf32>
    %227 = vector.shape_cast %226 : vector<2x1x32xf32> to vector<2x32xf32>
    %228 = arith.mulf %201, %225 : vector<2x32xf32>
    %229 = arith.mulf %199, %225 : vector<2x32xf32>
    %230 = arith.mulf %223, %227 : vector<2x32xf32>
    %231 = arith.mulf %221, %227 : vector<2x32xf32>
    %c0_88 = arith.constant 0 : index
    %c1_89 = arith.constant 1 : index
    %c0_90 = arith.constant 0 : index
    %232 = vector.load %arg22[%c0_88, %c1_89, %c0_90] : memref<2x8x64xf32, #tpu.memory_space<vmem>>, vector<2x1x32xf32>
    %233 = vector.shape_cast %232 : vector<2x1x32xf32> to vector<2x32xf32>
    %234 = vector.shape_cast %228 : vector<2x32xf32> to vector<2x1x32xf32>
    tpu.vector_store %arg22[%c0_88, %c1_89, %c0_90], %234 {strides = array<i32>} : memref<2x8x64xf32, #tpu.memory_space<vmem>>, vector<2x1x32xf32>,
    %c0_91 = arith.constant 0 : index
    %c6 = arith.constant 6 : index
    %c32_92 = arith.constant 32 : index
    %235 = vector.load %arg22[%c0_91, %c6, %c32_92] : memref<2x8x64xf32, #tpu.memory_space<vmem>>, vector<2x1x32xf32>
    %236 = vector.shape_cast %235 : vector<2x1x32xf32> to vector<2x32xf32>
    %237 = vector.shape_cast %230 : vector<2x32xf32> to vector<2x1x32xf32>
    tpu.vector_store %arg22[%c0_91, %c6, %c32_92], %237 {strides = array<i32>} : memref<2x8x64xf32, #tpu.memory_space<vmem>>, vector<2x1x32xf32>,
    %238 = vector.extract_strided_slice %110 {offsets = [0, 2, 0], sizes = [2, 1, 128], strides = [1, 1, 1]} : vector<2x8x256xf32> to vector<2x1x128xf32>
    %239 = vector.shape_cast %238 : vector<2x1x128xf32> to vector<2x128xf32>
    %cst_93 = arith.constant dense<0.000000e+00> : vector<2x128xf32>
    %240 = tpu.matmul %228, %118, %cst_93 {dimension_numbers = #tpu.dot_dimension_numbers<[1], [0], [0], [1], [0, 0, 1, 1], [], []>} : vector<2x32xf32>, vector<32x128xf32>, vector<2x128xf32> -> vector<2x128xf32>
    %241 = arith.addf %239, %240 : vector<2x128xf32>
    %242 = vector.extract_strided_slice %241 {offsets = [0, 0], sizes = [2, 96], strides = [1, 1]} : vector<2x128xf32> to vector<2x96xf32>
    %cst_94 = arith.constant 5.000000e-01 : f32
    %243 = vector.broadcast %cst_94 : f32 to vector<2x96xf32>
    %244 = arith.mulf %243, %242 : vector<2x96xf32>
    %245 = math.tanh %244 : vector<2x96xf32>
    %cst_95 = arith.constant 1.000000e+00 : f32
    %246 = vector.broadcast %cst_95 : f32 to vector<2x96xf32>
    %247 = arith.addf %245, %246 : vector<2x96xf32>
    %cst_96 = arith.constant 5.000000e-01 : f32
    %248 = vector.broadcast %cst_96 : f32 to vector<2x96xf32>
    %249 = arith.mulf %248, %247 : vector<2x96xf32>
    %250 = vector.extract_strided_slice %241 {offsets = [0, 96], sizes = [2, 32], strides = [1, 1]} : vector<2x128xf32> to vector<2x32xf32>
    %251 = math.tanh %250 : vector<2x32xf32>
    %252 = vector.extract_strided_slice %249 {offsets = [0, 0], sizes = [2, 32], strides = [1, 1]} : vector<2x96xf32> to vector<2x32xf32>
    %253 = vector.extract_strided_slice %249 {offsets = [0, 32], sizes = [2, 32], strides = [1, 1]} : vector<2x96xf32> to vector<2x32xf32>
    %254 = vector.extract_strided_slice %249 {offsets = [0, 64], sizes = [2, 32], strides = [1, 1]} : vector<2x96xf32> to vector<2x32xf32>
    %255 = arith.mulf %253, %229 : vector<2x32xf32>
    %256 = arith.mulf %252, %251 : vector<2x32xf32>
    %257 = arith.addf %255, %256 : vector<2x32xf32>
    %258 = math.tanh %257 : vector<2x32xf32>
    %259 = arith.mulf %254, %258 : vector<2x32xf32>
    %260 = vector.extract_strided_slice %110 {offsets = [0, 5, 128], sizes = [2, 1, 128], strides = [1, 1, 1]} : vector<2x8x256xf32> to vector<2x1x128xf32>
    %261 = vector.shape_cast %260 : vector<2x1x128xf32> to vector<2x128xf32>
    %cst_97 = arith.constant dense<0.000000e+00> : vector<2x128xf32>
    %262 = tpu.matmul %230, %120, %cst_97 {dimension_numbers = #tpu.dot_dimension_numbers<[1], [0], [0], [1], [0, 0, 1, 1], [], []>} : vector<2x32xf32>, vector<32x128xf32>, vector<2x128xf32> -> vector<2x128xf32>
    %263 = arith.addf %261, %262 : vector<2x128xf32>
    %264 = vector.extract_strided_slice %263 {offsets = [0, 0], sizes = [2, 96], strides = [1, 1]} : vector<2x128xf32> to vector<2x96xf32>
    %cst_98 = arith.constant 5.000000e-01 : f32
    %265 = vector.broadcast %cst_98 : f32 to vector<2x96xf32>
    %266 = arith.mulf %265, %264 : vector<2x96xf32>
    %267 = math.tanh %266 : vector<2x96xf32>
    %cst_99 = arith.constant 1.000000e+00 : f32
    %268 = vector.broadcast %cst_99 : f32 to vector<2x96xf32>
    %269 = arith.addf %267, %268 : vector<2x96xf32>
    %cst_100 = arith.constant 5.000000e-01 : f32
    %270 = vector.broadcast %cst_100 : f32 to vector<2x96xf32>
    %271 = arith.mulf %270, %269 : vector<2x96xf32>
    %272 = vector.extract_strided_slice %263 {offsets = [0, 96], sizes = [2, 32], strides = [1, 1]} : vector<2x128xf32> to vector<2x32xf32>
    %273 = math.tanh %272 : vector<2x32xf32>
    %274 = vector.extract_strided_slice %271 {offsets = [0, 0], sizes = [2, 32], strides = [1, 1]} : vector<2x96xf32> to vector<2x32xf32>
    %275 = vector.extract_strided_slice %271 {offsets = [0, 32], sizes = [2, 32], strides = [1, 1]} : vector<2x96xf32> to vector<2x32xf32>
    %276 = vector.extract_strided_slice %271 {offsets = [0, 64], sizes = [2, 32], strides = [1, 1]} : vector<2x96xf32> to vector<2x32xf32>
    %277 = arith.mulf %275, %231 : vector<2x32xf32>
    %278 = arith.mulf %274, %273 : vector<2x32xf32>
    %279 = arith.addf %277, %278 : vector<2x32xf32>
    %280 = math.tanh %279 : vector<2x32xf32>
    %281 = arith.mulf %276, %280 : vector<2x32xf32>
    %282 = vector.extract_strided_slice %116 {offsets = [0, 2, 0], sizes = [2, 1, 32], strides = [1, 1, 1]} : vector<2x8x32xf32> to vector<2x1x32xf32>
    %283 = vector.shape_cast %282 : vector<2x1x32xf32> to vector<2x32xf32>
    %284 = vector.extract_strided_slice %116 {offsets = [0, 5, 0], sizes = [2, 1, 32], strides = [1, 1, 1]} : vector<2x8x32xf32> to vector<2x1x32xf32>
    %285 = vector.shape_cast %284 : vector<2x1x32xf32> to vector<2x32xf32>
    %286 = arith.mulf %259, %283 : vector<2x32xf32>
    %287 = arith.mulf %257, %283 : vector<2x32xf32>
    %288 = arith.mulf %281, %285 : vector<2x32xf32>
    %289 = arith.mulf %279, %285 : vector<2x32xf32>
    %c0_101 = arith.constant 0 : index
    %c2 = arith.constant 2 : index
    %c0_102 = arith.constant 0 : index
    %290 = vector.load %arg22[%c0_101, %c2, %c0_102] : memref<2x8x64xf32, #tpu.memory_space<vmem>>, vector<2x1x32xf32>
    %291 = vector.shape_cast %290 : vector<2x1x32xf32> to vector<2x32xf32>
    %292 = vector.shape_cast %286 : vector<2x32xf32> to vector<2x1x32xf32>
    tpu.vector_store %arg22[%c0_101, %c2, %c0_102], %292 {strides = array<i32>} : memref<2x8x64xf32, #tpu.memory_space<vmem>>, vector<2x1x32xf32>,
    %c0_103 = arith.constant 0 : index
    %c5 = arith.constant 5 : index
    %c32_104 = arith.constant 32 : index
    %293 = vector.load %arg22[%c0_103, %c5, %c32_104] : memref<2x8x64xf32, #tpu.memory_space<vmem>>, vector<2x1x32xf32>
    %294 = vector.shape_cast %293 : vector<2x1x32xf32> to vector<2x32xf32>
    %295 = vector.shape_cast %288 : vector<2x32xf32> to vector<2x1x32xf32>
    tpu.vector_store %arg22[%c0_103, %c5, %c32_104], %295 {strides = array<i32>} : memref<2x8x64xf32, #tpu.memory_space<vmem>>, vector<2x1x32xf32>,
    %296 = vector.extract_strided_slice %110 {offsets = [0, 3, 0], sizes = [2, 1, 128], strides = [1, 1, 1]} : vector<2x8x256xf32> to vector<2x1x128xf32>
    %297 = vector.shape_cast %296 : vector<2x1x128xf32> to vector<2x128xf32>
    %cst_105 = arith.constant dense<0.000000e+00> : vector<2x128xf32>
    %298 = tpu.matmul %286, %118, %cst_105 {dimension_numbers = #tpu.dot_dimension_numbers<[1], [0], [0], [1], [0, 0, 1, 1], [], []>} : vector<2x32xf32>, vector<32x128xf32>, vector<2x128xf32> -> vector<2x128xf32>
    %299 = arith.addf %297, %298 : vector<2x128xf32>
    %300 = vector.extract_strided_slice %299 {offsets = [0, 0], sizes = [2, 96], strides = [1, 1]} : vector<2x128xf32> to vector<2x96xf32>
    %cst_106 = arith.constant 5.000000e-01 : f32
    %301 = vector.broadcast %cst_106 : f32 to vector<2x96xf32>
    %302 = arith.mulf %301, %300 : vector<2x96xf32>
    %303 = math.tanh %302 : vector<2x96xf32>
    %cst_107 = arith.constant 1.000000e+00 : f32
    %304 = vector.broadcast %cst_107 : f32 to vector<2x96xf32>
    %305 = arith.addf %303, %304 : vector<2x96xf32>
    %cst_108 = arith.constant 5.000000e-01 : f32
    %306 = vector.broadcast %cst_108 : f32 to vector<2x96xf32>
    %307 = arith.mulf %306, %305 : vector<2x96xf32>
    %308 = vector.extract_strided_slice %299 {offsets = [0, 96], sizes = [2, 32], strides = [1, 1]} : vector<2x128xf32> to vector<2x32xf32>
    %309 = math.tanh %308 : vector<2x32xf32>
    %310 = vector.extract_strided_slice %307 {offsets = [0, 0], sizes = [2, 32], strides = [1, 1]} : vector<2x96xf32> to vector<2x32xf32>
    %311 = vector.extract_strided_slice %307 {offsets = [0, 32], sizes = [2, 32], strides = [1, 1]} : vector<2x96xf32> to vector<2x32xf32>
    %312 = vector.extract_strided_slice %307 {offsets = [0, 64], sizes = [2, 32], strides = [1, 1]} : vector<2x96xf32> to vector<2x32xf32>
    %313 = arith.mulf %311, %287 : vector<2x32xf32>
    %314 = arith.mulf %310, %309 : vector<2x32xf32>
    %315 = arith.addf %313, %314 : vector<2x32xf32>
    %316 = math.tanh %315 : vector<2x32xf32>
    %317 = arith.mulf %312, %316 : vector<2x32xf32>
    %318 = vector.extract_strided_slice %110 {offsets = [0, 4, 128], sizes = [2, 1, 128], strides = [1, 1, 1]} : vector<2x8x256xf32> to vector<2x1x128xf32>
    %319 = vector.shape_cast %318 : vector<2x1x128xf32> to vector<2x128xf32>
    %cst_109 = arith.constant dense<0.000000e+00> : vector<2x128xf32>
    %320 = tpu.matmul %288, %120, %cst_109 {dimension_numbers = #tpu.dot_dimension_numbers<[1], [0], [0], [1], [0, 0, 1, 1], [], []>} : vector<2x32xf32>, vector<32x128xf32>, vector<2x128xf32> -> vector<2x128xf32>
    %321 = arith.addf %319, %320 : vector<2x128xf32>
    %322 = vector.extract_strided_slice %321 {offsets = [0, 0], sizes = [2, 96], strides = [1, 1]} : vector<2x128xf32> to vector<2x96xf32>
    %cst_110 = arith.constant 5.000000e-01 : f32
    %323 = vector.broadcast %cst_110 : f32 to vector<2x96xf32>
    %324 = arith.mulf %323, %322 : vector<2x96xf32>
    %325 = math.tanh %324 : vector<2x96xf32>
    %cst_111 = arith.constant 1.000000e+00 : f32
    %326 = vector.broadcast %cst_111 : f32 to vector<2x96xf32>
    %327 = arith.addf %325, %326 : vector<2x96xf32>
    %cst_112 = arith.constant 5.000000e-01 : f32
    %328 = vector.broadcast %cst_112 : f32 to vector<2x96xf32>
    %329 = arith.mulf %328, %327 : vector<2x96xf32>
    %330 = vector.extract_strided_slice %321 {offsets = [0, 96], sizes = [2, 32], strides = [1, 1]} : vector<2x128xf32> to vector<2x32xf32>
    %331 = math.tanh %330 : vector<2x32xf32>
    %332 = vector.extract_strided_slice %329 {offsets = [0, 0], sizes = [2, 32], strides = [1, 1]} : vector<2x96xf32> to vector<2x32xf32>
    %333 = vector.extract_strided_slice %329 {offsets = [0, 32], sizes = [2, 32], strides = [1, 1]} : vector<2x96xf32> to vector<2x32xf32>
    %334 = vector.extract_strided_slice %329 {offsets = [0, 64], sizes = [2, 32], strides = [1, 1]} : vector<2x96xf32> to vector<2x32xf32>
    %335 = arith.mulf %333, %289 : vector<2x32xf32>
    %336 = arith.mulf %332, %331 : vector<2x32xf32>
    %337 = arith.addf %335, %336 : vector<2x32xf32>
    %338 = math.tanh %337 : vector<2x32xf32>
    %339 = arith.mulf %334, %338 : vector<2x32xf32>
    %340 = vector.extract_strided_slice %116 {offsets = [0, 3, 0], sizes = [2, 1, 32], strides = [1, 1, 1]} : vector<2x8x32xf32> to vector<2x1x32xf32>
    %341 = vector.shape_cast %340 : vector<2x1x32xf32> to vector<2x32xf32>
    %342 = vector.extract_strided_slice %116 {offsets = [0, 4, 0], sizes = [2, 1, 32], strides = [1, 1, 1]} : vector<2x8x32xf32> to vector<2x1x32xf32>
    %343 = vector.shape_cast %342 : vector<2x1x32xf32> to vector<2x32xf32>
    %344 = arith.mulf %317, %341 : vector<2x32xf32>
    %345 = arith.mulf %315, %341 : vector<2x32xf32>
    %346 = arith.mulf %339, %343 : vector<2x32xf32>
    %347 = arith.mulf %337, %343 : vector<2x32xf32>
    %c0_113 = arith.constant 0 : index
    %c3 = arith.constant 3 : index
    %c0_114 = arith.constant 0 : index
    %348 = vector.load %arg22[%c0_113, %c3, %c0_114] : memref<2x8x64xf32, #tpu.memory_space<vmem>>, vector<2x1x32xf32>
    %349 = vector.shape_cast %348 : vector<2x1x32xf32> to vector<2x32xf32>
    %350 = vector.shape_cast %344 : vector<2x32xf32> to vector<2x1x32xf32>
    tpu.vector_store %arg22[%c0_113, %c3, %c0_114], %350 {strides = array<i32>} : memref<2x8x64xf32, #tpu.memory_space<vmem>>, vector<2x1x32xf32>,
    %c0_115 = arith.constant 0 : index
    %c4 = arith.constant 4 : index
    %c32_116 = arith.constant 32 : index
    %351 = vector.load %arg22[%c0_115, %c4, %c32_116] : memref<2x8x64xf32, #tpu.memory_space<vmem>>, vector<2x1x32xf32>
    %352 = vector.shape_cast %351 : vector<2x1x32xf32> to vector<2x32xf32>
    %353 = vector.shape_cast %346 : vector<2x32xf32> to vector<2x1x32xf32>
    tpu.vector_store %arg22[%c0_115, %c4, %c32_116], %353 {strides = array<i32>} : memref<2x8x64xf32, #tpu.memory_space<vmem>>, vector<2x1x32xf32>,
    %354 = vector.extract_strided_slice %110 {offsets = [0, 4, 0], sizes = [2, 1, 128], strides = [1, 1, 1]} : vector<2x8x256xf32> to vector<2x1x128xf32>
    %355 = vector.shape_cast %354 : vector<2x1x128xf32> to vector<2x128xf32>
    %cst_117 = arith.constant dense<0.000000e+00> : vector<2x128xf32>
    %356 = tpu.matmul %344, %118, %cst_117 {dimension_numbers = #tpu.dot_dimension_numbers<[1], [0], [0], [1], [0, 0, 1, 1], [], []>} : vector<2x32xf32>, vector<32x128xf32>, vector<2x128xf32> -> vector<2x128xf32>
    %357 = arith.addf %355, %356 : vector<2x128xf32>
    %358 = vector.extract_strided_slice %357 {offsets = [0, 0], sizes = [2, 96], strides = [1, 1]} : vector<2x128xf32> to vector<2x96xf32>
    %cst_118 = arith.constant 5.000000e-01 : f32
    %359 = vector.broadcast %cst_118 : f32 to vector<2x96xf32>
    %360 = arith.mulf %359, %358 : vector<2x96xf32>
    %361 = math.tanh %360 : vector<2x96xf32>
    %cst_119 = arith.constant 1.000000e+00 : f32
    %362 = vector.broadcast %cst_119 : f32 to vector<2x96xf32>
    %363 = arith.addf %361, %362 : vector<2x96xf32>
    %cst_120 = arith.constant 5.000000e-01 : f32
    %364 = vector.broadcast %cst_120 : f32 to vector<2x96xf32>
    %365 = arith.mulf %364, %363 : vector<2x96xf32>
    %366 = vector.extract_strided_slice %357 {offsets = [0, 96], sizes = [2, 32], strides = [1, 1]} : vector<2x128xf32> to vector<2x32xf32>
    %367 = math.tanh %366 : vector<2x32xf32>
    %368 = vector.extract_strided_slice %365 {offsets = [0, 0], sizes = [2, 32], strides = [1, 1]} : vector<2x96xf32> to vector<2x32xf32>
    %369 = vector.extract_strided_slice %365 {offsets = [0, 32], sizes = [2, 32], strides = [1, 1]} : vector<2x96xf32> to vector<2x32xf32>
    %370 = vector.extract_strided_slice %365 {offsets = [0, 64], sizes = [2, 32], strides = [1, 1]} : vector<2x96xf32> to vector<2x32xf32>
    %371 = arith.mulf %369, %345 : vector<2x32xf32>
    %372 = arith.mulf %368, %367 : vector<2x32xf32>
    %373 = arith.addf %371, %372 : vector<2x32xf32>
    %374 = math.tanh %373 : vector<2x32xf32>
    %375 = arith.mulf %370, %374 : vector<2x32xf32>
    %376 = vector.extract_strided_slice %110 {offsets = [0, 3, 128], sizes = [2, 1, 128], strides = [1, 1, 1]} : vector<2x8x256xf32> to vector<2x1x128xf32>
    %377 = vector.shape_cast %376 : vector<2x1x128xf32> to vector<2x128xf32>
    %cst_121 = arith.constant dense<0.000000e+00> : vector<2x128xf32>
    %378 = tpu.matmul %346, %120, %cst_121 {dimension_numbers = #tpu.dot_dimension_numbers<[1], [0], [0], [1], [0, 0, 1, 1], [], []>} : vector<2x32xf32>, vector<32x128xf32>, vector<2x128xf32> -> vector<2x128xf32>
    %379 = arith.addf %377, %378 : vector<2x128xf32>
    %380 = vector.extract_strided_slice %379 {offsets = [0, 0], sizes = [2, 96], strides = [1, 1]} : vector<2x128xf32> to vector<2x96xf32>
    %cst_122 = arith.constant 5.000000e-01 : f32
    %381 = vector.broadcast %cst_122 : f32 to vector<2x96xf32>
    %382 = arith.mulf %381, %380 : vector<2x96xf32>
    %383 = math.tanh %382 : vector<2x96xf32>
    %cst_123 = arith.constant 1.000000e+00 : f32
    %384 = vector.broadcast %cst_123 : f32 to vector<2x96xf32>
    %385 = arith.addf %383, %384 : vector<2x96xf32>
    %cst_124 = arith.constant 5.000000e-01 : f32
    %386 = vector.broadcast %cst_124 : f32 to vector<2x96xf32>
    %387 = arith.mulf %386, %385 : vector<2x96xf32>
    %388 = vector.extract_strided_slice %379 {offsets = [0, 96], sizes = [2, 32], strides = [1, 1]} : vector<2x128xf32> to vector<2x32xf32>
    %389 = math.tanh %388 : vector<2x32xf32>
    %390 = vector.extract_strided_slice %387 {offsets = [0, 0], sizes = [2, 32], strides = [1, 1]} : vector<2x96xf32> to vector<2x32xf32>
    %391 = vector.extract_strided_slice %387 {offsets = [0, 32], sizes = [2, 32], strides = [1, 1]} : vector<2x96xf32> to vector<2x32xf32>
    %392 = vector.extract_strided_slice %387 {offsets = [0, 64], sizes = [2, 32], strides = [1, 1]} : vector<2x96xf32> to vector<2x32xf32>
    %393 = arith.mulf %391, %347 : vector<2x32xf32>
    %394 = arith.mulf %390, %389 : vector<2x32xf32>
    %395 = arith.addf %393, %394 : vector<2x32xf32>
    %396 = math.tanh %395 : vector<2x32xf32>
    %397 = arith.mulf %392, %396 : vector<2x32xf32>
    %398 = vector.extract_strided_slice %116 {offsets = [0, 4, 0], sizes = [2, 1, 32], strides = [1, 1, 1]} : vector<2x8x32xf32> to vector<2x1x32xf32>
    %399 = vector.shape_cast %398 : vector<2x1x32xf32> to vector<2x32xf32>
    %400 = vector.extract_strided_slice %116 {offsets = [0, 3, 0], sizes = [2, 1, 32], strides = [1, 1, 1]} : vector<2x8x32xf32> to vector<2x1x32xf32>
    %401 = vector.shape_cast %400 : vector<2x1x32xf32> to vector<2x32xf32>
    %402 = arith.mulf %375, %399 : vector<2x32xf32>
    %403 = arith.mulf %373, %399 : vector<2x32xf32>
    %404 = arith.mulf %397, %401 : vector<2x32xf32>
    %405 = arith.mulf %395, %401 : vector<2x32xf32>
    %c0_125 = arith.constant 0 : index
    %c4_126 = arith.constant 4 : index
    %c0_127 = arith.constant 0 : index
    %406 = vector.load %arg22[%c0_125, %c4_126, %c0_127] : memref<2x8x64xf32, #tpu.memory_space<vmem>>, vector<2x1x32xf32>
    %407 = vector.shape_cast %406 : vector<2x1x32xf32> to vector<2x32xf32>
    %408 = vector.shape_cast %402 : vector<2x32xf32> to vector<2x1x32xf32>
    tpu.vector_store %arg22[%c0_125, %c4_126, %c0_127], %408 {strides = array<i32>} : memref<2x8x64xf32, #tpu.memory_space<vmem>>, vector<2x1x32xf32>,
    %c0_128 = arith.constant 0 : index
    %c3_129 = arith.constant 3 : index
    %c32_130 = arith.constant 32 : index
    %409 = vector.load %arg22[%c0_128, %c3_129, %c32_130] : memref<2x8x64xf32, #tpu.memory_space<vmem>>, vector<2x1x32xf32>
    %410 = vector.shape_cast %409 : vector<2x1x32xf32> to vector<2x32xf32>
    %411 = vector.shape_cast %404 : vector<2x32xf32> to vector<2x1x32xf32>
    tpu.vector_store %arg22[%c0_128, %c3_129, %c32_130], %411 {strides = array<i32>} : memref<2x8x64xf32, #tpu.memory_space<vmem>>, vector<2x1x32xf32>,
    %412 = vector.extract_strided_slice %110 {offsets = [0, 5, 0], sizes = [2, 1, 128], strides = [1, 1, 1]} : vector<2x8x256xf32> to vector<2x1x128xf32>
    %413 = vector.shape_cast %412 : vector<2x1x128xf32> to vector<2x128xf32>
    %cst_131 = arith.constant dense<0.000000e+00> : vector<2x128xf32>
    %414 = tpu.matmul %402, %118, %cst_131 {dimension_numbers = #tpu.dot_dimension_numbers<[1], [0], [0], [1], [0, 0, 1, 1], [], []>} : vector<2x32xf32>, vector<32x128xf32>, vector<2x128xf32> -> vector<2x128xf32>
    %415 = arith.addf %413, %414 : vector<2x128xf32>
    %416 = vector.extract_strided_slice %415 {offsets = [0, 0], sizes = [2, 96], strides = [1, 1]} : vector<2x128xf32> to vector<2x96xf32>
    %cst_132 = arith.constant 5.000000e-01 : f32
    %417 = vector.broadcast %cst_132 : f32 to vector<2x96xf32>
    %418 = arith.mulf %417, %416 : vector<2x96xf32>
    %419 = math.tanh %418 : vector<2x96xf32>
    %cst_133 = arith.constant 1.000000e+00 : f32
    %420 = vector.broadcast %cst_133 : f32 to vector<2x96xf32>
    %421 = arith.addf %419, %420 : vector<2x96xf32>
    %cst_134 = arith.constant 5.000000e-01 : f32
    %422 = vector.broadcast %cst_134 : f32 to vector<2x96xf32>
    %423 = arith.mulf %422, %421 : vector<2x96xf32>
    %424 = vector.extract_strided_slice %415 {offsets = [0, 96], sizes = [2, 32], strides = [1, 1]} : vector<2x128xf32> to vector<2x32xf32>
    %425 = math.tanh %424 : vector<2x32xf32>
    %426 = vector.extract_strided_slice %423 {offsets = [0, 0], sizes = [2, 32], strides = [1, 1]} : vector<2x96xf32> to vector<2x32xf32>
    %427 = vector.extract_strided_slice %423 {offsets = [0, 32], sizes = [2, 32], strides = [1, 1]} : vector<2x96xf32> to vector<2x32xf32>
    %428 = vector.extract_strided_slice %423 {offsets = [0, 64], sizes = [2, 32], strides = [1, 1]} : vector<2x96xf32> to vector<2x32xf32>
    %429 = arith.mulf %427, %403 : vector<2x32xf32>
    %430 = arith.mulf %426, %425 : vector<2x32xf32>
    %431 = arith.addf %429, %430 : vector<2x32xf32>
    %432 = math.tanh %431 : vector<2x32xf32>
    %433 = arith.mulf %428, %432 : vector<2x32xf32>
    %434 = vector.extract_strided_slice %110 {offsets = [0, 2, 128], sizes = [2, 1, 128], strides = [1, 1, 1]} : vector<2x8x256xf32> to vector<2x1x128xf32>
    %435 = vector.shape_cast %434 : vector<2x1x128xf32> to vector<2x128xf32>
    %cst_135 = arith.constant dense<0.000000e+00> : vector<2x128xf32>
    %436 = tpu.matmul %404, %120, %cst_135 {dimension_numbers = #tpu.dot_dimension_numbers<[1], [0], [0], [1], [0, 0, 1, 1], [], []>} : vector<2x32xf32>, vector<32x128xf32>, vector<2x128xf32> -> vector<2x128xf32>
    %437 = arith.addf %435, %436 : vector<2x128xf32>
    %438 = vector.extract_strided_slice %437 {offsets = [0, 0], sizes = [2, 96], strides = [1, 1]} : vector<2x128xf32> to vector<2x96xf32>
    %cst_136 = arith.constant 5.000000e-01 : f32
    %439 = vector.broadcast %cst_136 : f32 to vector<2x96xf32>
    %440 = arith.mulf %439, %438 : vector<2x96xf32>
    %441 = math.tanh %440 : vector<2x96xf32>
    %cst_137 = arith.constant 1.000000e+00 : f32
    %442 = vector.broadcast %cst_137 : f32 to vector<2x96xf32>
    %443 = arith.addf %441, %442 : vector<2x96xf32>
    %cst_138 = arith.constant 5.000000e-01 : f32
    %444 = vector.broadcast %cst_138 : f32 to vector<2x96xf32>
    %445 = arith.mulf %444, %443 : vector<2x96xf32>
    %446 = vector.extract_strided_slice %437 {offsets = [0, 96], sizes = [2, 32], strides = [1, 1]} : vector<2x128xf32> to vector<2x32xf32>
    %447 = math.tanh %446 : vector<2x32xf32>
    %448 = vector.extract_strided_slice %445 {offsets = [0, 0], sizes = [2, 32], strides = [1, 1]} : vector<2x96xf32> to vector<2x32xf32>
    %449 = vector.extract_strided_slice %445 {offsets = [0, 32], sizes = [2, 32], strides = [1, 1]} : vector<2x96xf32> to vector<2x32xf32>
    %450 = vector.extract_strided_slice %445 {offsets = [0, 64], sizes = [2, 32], strides = [1, 1]} : vector<2x96xf32> to vector<2x32xf32>
    %451 = arith.mulf %449, %405 : vector<2x32xf32>
    %452 = arith.mulf %448, %447 : vector<2x32xf32>
    %453 = arith.addf %451, %452 : vector<2x32xf32>
    %454 = math.tanh %453 : vector<2x32xf32>
    %455 = arith.mulf %450, %454 : vector<2x32xf32>
    %456 = vector.extract_strided_slice %116 {offsets = [0, 5, 0], sizes = [2, 1, 32], strides = [1, 1, 1]} : vector<2x8x32xf32> to vector<2x1x32xf32>
    %457 = vector.shape_cast %456 : vector<2x1x32xf32> to vector<2x32xf32>
    %458 = vector.extract_strided_slice %116 {offsets = [0, 2, 0], sizes = [2, 1, 32], strides = [1, 1, 1]} : vector<2x8x32xf32> to vector<2x1x32xf32>
    %459 = vector.shape_cast %458 : vector<2x1x32xf32> to vector<2x32xf32>
    %460 = arith.mulf %433, %457 : vector<2x32xf32>
    %461 = arith.mulf %431, %457 : vector<2x32xf32>
    %462 = arith.mulf %455, %459 : vector<2x32xf32>
    %463 = arith.mulf %453, %459 : vector<2x32xf32>
    %c0_139 = arith.constant 0 : index
    %c5_140 = arith.constant 5 : index
    %c0_141 = arith.constant 0 : index
    %464 = vector.load %arg22[%c0_139, %c5_140, %c0_141] : memref<2x8x64xf32, #tpu.memory_space<vmem>>, vector<2x1x32xf32>
    %465 = vector.shape_cast %464 : vector<2x1x32xf32> to vector<2x32xf32>
    %466 = vector.shape_cast %460 : vector<2x32xf32> to vector<2x1x32xf32>
    tpu.vector_store %arg22[%c0_139, %c5_140, %c0_141], %466 {strides = array<i32>} : memref<2x8x64xf32, #tpu.memory_space<vmem>>, vector<2x1x32xf32>,
    %c0_142 = arith.constant 0 : index
    %c2_143 = arith.constant 2 : index
    %c32_144 = arith.constant 32 : index
    %467 = vector.load %arg22[%c0_142, %c2_143, %c32_144] : memref<2x8x64xf32, #tpu.memory_space<vmem>>, vector<2x1x32xf32>
    %468 = vector.shape_cast %467 : vector<2x1x32xf32> to vector<2x32xf32>
    %469 = vector.shape_cast %462 : vector<2x32xf32> to vector<2x1x32xf32>
    tpu.vector_store %arg22[%c0_142, %c2_143, %c32_144], %469 {strides = array<i32>} : memref<2x8x64xf32, #tpu.memory_space<vmem>>, vector<2x1x32xf32>,
    %470 = vector.extract_strided_slice %110 {offsets = [0, 6, 0], sizes = [2, 1, 128], strides = [1, 1, 1]} : vector<2x8x256xf32> to vector<2x1x128xf32>
    %471 = vector.shape_cast %470 : vector<2x1x128xf32> to vector<2x128xf32>
    %cst_145 = arith.constant dense<0.000000e+00> : vector<2x128xf32>
    %472 = tpu.matmul %460, %118, %cst_145 {dimension_numbers = #tpu.dot_dimension_numbers<[1], [0], [0], [1], [0, 0, 1, 1], [], []>} : vector<2x32xf32>, vector<32x128xf32>, vector<2x128xf32> -> vector<2x128xf32>
    %473 = arith.addf %471, %472 : vector<2x128xf32>
    %474 = vector.extract_strided_slice %473 {offsets = [0, 0], sizes = [2, 96], strides = [1, 1]} : vector<2x128xf32> to vector<2x96xf32>
    %cst_146 = arith.constant 5.000000e-01 : f32
    %475 = vector.broadcast %cst_146 : f32 to vector<2x96xf32>
    %476 = arith.mulf %475, %474 : vector<2x96xf32>
    %477 = math.tanh %476 : vector<2x96xf32>
    %cst_147 = arith.constant 1.000000e+00 : f32
    %478 = vector.broadcast %cst_147 : f32 to vector<2x96xf32>
    %479 = arith.addf %477, %478 : vector<2x96xf32>
    %cst_148 = arith.constant 5.000000e-01 : f32
    %480 = vector.broadcast %cst_148 : f32 to vector<2x96xf32>
    %481 = arith.mulf %480, %479 : vector<2x96xf32>
    %482 = vector.extract_strided_slice %473 {offsets = [0, 96], sizes = [2, 32], strides = [1, 1]} : vector<2x128xf32> to vector<2x32xf32>
    %483 = math.tanh %482 : vector<2x32xf32>
    %484 = vector.extract_strided_slice %481 {offsets = [0, 0], sizes = [2, 32], strides = [1, 1]} : vector<2x96xf32> to vector<2x32xf32>
    %485 = vector.extract_strided_slice %481 {offsets = [0, 32], sizes = [2, 32], strides = [1, 1]} : vector<2x96xf32> to vector<2x32xf32>
    %486 = vector.extract_strided_slice %481 {offsets = [0, 64], sizes = [2, 32], strides = [1, 1]} : vector<2x96xf32> to vector<2x32xf32>
    %487 = arith.mulf %485, %461 : vector<2x32xf32>
    %488 = arith.mulf %484, %483 : vector<2x32xf32>
    %489 = arith.addf %487, %488 : vector<2x32xf32>
    %490 = math.tanh %489 : vector<2x32xf32>
    %491 = arith.mulf %486, %490 : vector<2x32xf32>
    %492 = vector.extract_strided_slice %110 {offsets = [0, 1, 128], sizes = [2, 1, 128], strides = [1, 1, 1]} : vector<2x8x256xf32> to vector<2x1x128xf32>
    %493 = vector.shape_cast %492 : vector<2x1x128xf32> to vector<2x128xf32>
    %cst_149 = arith.constant dense<0.000000e+00> : vector<2x128xf32>
    %494 = tpu.matmul %462, %120, %cst_149 {dimension_numbers = #tpu.dot_dimension_numbers<[1], [0], [0], [1], [0, 0, 1, 1], [], []>} : vector<2x32xf32>, vector<32x128xf32>, vector<2x128xf32> -> vector<2x128xf32>
    %495 = arith.addf %493, %494 : vector<2x128xf32>
    %496 = vector.extract_strided_slice %495 {offsets = [0, 0], sizes = [2, 96], strides = [1, 1]} : vector<2x128xf32> to vector<2x96xf32>
    %cst_150 = arith.constant 5.000000e-01 : f32
    %497 = vector.broadcast %cst_150 : f32 to vector<2x96xf32>
    %498 = arith.mulf %497, %496 : vector<2x96xf32>
    %499 = math.tanh %498 : vector<2x96xf32>
    %cst_151 = arith.constant 1.000000e+00 : f32
    %500 = vector.broadcast %cst_151 : f32 to vector<2x96xf32>
    %501 = arith.addf %499, %500 : vector<2x96xf32>
    %cst_152 = arith.constant 5.000000e-01 : f32
    %502 = vector.broadcast %cst_152 : f32 to vector<2x96xf32>
    %503 = arith.mulf %502, %501 : vector<2x96xf32>
    %504 = vector.extract_strided_slice %495 {offsets = [0, 96], sizes = [2, 32], strides = [1, 1]} : vector<2x128xf32> to vector<2x32xf32>
    %505 = math.tanh %504 : vector<2x32xf32>
    %506 = vector.extract_strided_slice %503 {offsets = [0, 0], sizes = [2, 32], strides = [1, 1]} : vector<2x96xf32> to vector<2x32xf32>
    %507 = vector.extract_strided_slice %503 {offsets = [0, 32], sizes = [2, 32], strides = [1, 1]} : vector<2x96xf32> to vector<2x32xf32>
    %508 = vector.extract_strided_slice %503 {offsets = [0, 64], sizes = [2, 32], strides = [1, 1]} : vector<2x96xf32> to vector<2x32xf32>
    %509 = arith.mulf %507, %463 : vector<2x32xf32>
    %510 = arith.mulf %506, %505 : vector<2x32xf32>
    %511 = arith.addf %509, %510 : vector<2x32xf32>
    %512 = math.tanh %511 : vector<2x32xf32>
    %513 = arith.mulf %508, %512 : vector<2x32xf32>
    %514 = vector.extract_strided_slice %116 {offsets = [0, 6, 0], sizes = [2, 1, 32], strides = [1, 1, 1]} : vector<2x8x32xf32> to vector<2x1x32xf32>
    %515 = vector.shape_cast %514 : vector<2x1x32xf32> to vector<2x32xf32>
    %516 = vector.extract_strided_slice %116 {offsets = [0, 1, 0], sizes = [2, 1, 32], strides = [1, 1, 1]} : vector<2x8x32xf32> to vector<2x1x32xf32>
    %517 = vector.shape_cast %516 : vector<2x1x32xf32> to vector<2x32xf32>
    %518 = arith.mulf %491, %515 : vector<2x32xf32>
    %519 = arith.mulf %489, %515 : vector<2x32xf32>
    %520 = arith.mulf %513, %517 : vector<2x32xf32>
    %521 = arith.mulf %511, %517 : vector<2x32xf32>
    %c0_153 = arith.constant 0 : index
    %c6_154 = arith.constant 6 : index
    %c0_155 = arith.constant 0 : index
    %522 = vector.load %arg22[%c0_153, %c6_154, %c0_155] : memref<2x8x64xf32, #tpu.memory_space<vmem>>, vector<2x1x32xf32>
    %523 = vector.shape_cast %522 : vector<2x1x32xf32> to vector<2x32xf32>
    %524 = vector.shape_cast %518 : vector<2x32xf32> to vector<2x1x32xf32>
    tpu.vector_store %arg22[%c0_153, %c6_154, %c0_155], %524 {strides = array<i32>} : memref<2x8x64xf32, #tpu.memory_space<vmem>>, vector<2x1x32xf32>,
    %c0_156 = arith.constant 0 : index
    %c1_157 = arith.constant 1 : index
    %c32_158 = arith.constant 32 : index
    %525 = vector.load %arg22[%c0_156, %c1_157, %c32_158] : memref<2x8x64xf32, #tpu.memory_space<vmem>>, vector<2x1x32xf32>
    %526 = vector.shape_cast %525 : vector<2x1x32xf32> to vector<2x32xf32>
    %527 = vector.shape_cast %520 : vector<2x32xf32> to vector<2x1x32xf32>
    tpu.vector_store %arg22[%c0_156, %c1_157, %c32_158], %527 {strides = array<i32>} : memref<2x8x64xf32, #tpu.memory_space<vmem>>, vector<2x1x32xf32>,
    %528 = vector.extract_strided_slice %110 {offsets = [0, 7, 0], sizes = [2, 1, 128], strides = [1, 1, 1]} : vector<2x8x256xf32> to vector<2x1x128xf32>
    %529 = vector.shape_cast %528 : vector<2x1x128xf32> to vector<2x128xf32>
    %cst_159 = arith.constant dense<0.000000e+00> : vector<2x128xf32>
    %530 = tpu.matmul %518, %118, %cst_159 {dimension_numbers = #tpu.dot_dimension_numbers<[1], [0], [0], [1], [0, 0, 1, 1], [], []>} : vector<2x32xf32>, vector<32x128xf32>, vector<2x128xf32> -> vector<2x128xf32>
    %531 = arith.addf %529, %530 : vector<2x128xf32>
    %532 = vector.extract_strided_slice %531 {offsets = [0, 0], sizes = [2, 96], strides = [1, 1]} : vector<2x128xf32> to vector<2x96xf32>
    %cst_160 = arith.constant 5.000000e-01 : f32
    %533 = vector.broadcast %cst_160 : f32 to vector<2x96xf32>
    %534 = arith.mulf %533, %532 : vector<2x96xf32>
    %535 = math.tanh %534 : vector<2x96xf32>
    %cst_161 = arith.constant 1.000000e+00 : f32
    %536 = vector.broadcast %cst_161 : f32 to vector<2x96xf32>
    %537 = arith.addf %535, %536 : vector<2x96xf32>
    %cst_162 = arith.constant 5.000000e-01 : f32
    %538 = vector.broadcast %cst_162 : f32 to vector<2x96xf32>
    %539 = arith.mulf %538, %537 : vector<2x96xf32>
    %540 = vector.extract_strided_slice %531 {offsets = [0, 96], sizes = [2, 32], strides = [1, 1]} : vector<2x128xf32> to vector<2x32xf32>
    %541 = math.tanh %540 : vector<2x32xf32>
    %542 = vector.extract_strided_slice %539 {offsets = [0, 0], sizes = [2, 32], strides = [1, 1]} : vector<2x96xf32> to vector<2x32xf32>
    %543 = vector.extract_strided_slice %539 {offsets = [0, 32], sizes = [2, 32], strides = [1, 1]} : vector<2x96xf32> to vector<2x32xf32>
    %544 = vector.extract_strided_slice %539 {offsets = [0, 64], sizes = [2, 32], strides = [1, 1]} : vector<2x96xf32> to vector<2x32xf32>
    %545 = arith.mulf %543, %519 : vector<2x32xf32>
    %546 = arith.mulf %542, %541 : vector<2x32xf32>
    %547 = arith.addf %545, %546 : vector<2x32xf32>
    %548 = math.tanh %547 : vector<2x32xf32>
    %549 = arith.mulf %544, %548 : vector<2x32xf32>
    %550 = vector.extract_strided_slice %110 {offsets = [0, 0, 128], sizes = [2, 1, 128], strides = [1, 1, 1]} : vector<2x8x256xf32> to vector<2x1x128xf32>
    %551 = vector.shape_cast %550 : vector<2x1x128xf32> to vector<2x128xf32>
    %cst_163 = arith.constant dense<0.000000e+00> : vector<2x128xf32>
    %552 = tpu.matmul %520, %120, %cst_163 {dimension_numbers = #tpu.dot_dimension_numbers<[1], [0], [0], [1], [0, 0, 1, 1], [], []>} : vector<2x32xf32>, vector<32x128xf32>, vector<2x128xf32> -> vector<2x128xf32>
    %553 = arith.addf %551, %552 : vector<2x128xf32>
    %554 = vector.extract_strided_slice %553 {offsets = [0, 0], sizes = [2, 96], strides = [1, 1]} : vector<2x128xf32> to vector<2x96xf32>
    %cst_164 = arith.constant 5.000000e-01 : f32
    %555 = vector.broadcast %cst_164 : f32 to vector<2x96xf32>
    %556 = arith.mulf %555, %554 : vector<2x96xf32>
    %557 = math.tanh %556 : vector<2x96xf32>
    %cst_165 = arith.constant 1.000000e+00 : f32
    %558 = vector.broadcast %cst_165 : f32 to vector<2x96xf32>
    %559 = arith.addf %557, %558 : vector<2x96xf32>
    %cst_166 = arith.constant 5.000000e-01 : f32
    %560 = vector.broadcast %cst_166 : f32 to vector<2x96xf32>
    %561 = arith.mulf %560, %559 : vector<2x96xf32>
    %562 = vector.extract_strided_slice %553 {offsets = [0, 96], sizes = [2, 32], strides = [1, 1]} : vector<2x128xf32> to vector<2x32xf32>
    %563 = math.tanh %562 : vector<2x32xf32>
    %564 = vector.extract_strided_slice %561 {offsets = [0, 0], sizes = [2, 32], strides = [1, 1]} : vector<2x96xf32> to vector<2x32xf32>
    %565 = vector.extract_strided_slice %561 {offsets = [0, 32], sizes = [2, 32], strides = [1, 1]} : vector<2x96xf32> to vector<2x32xf32>
    %566 = vector.extract_strided_slice %561 {offsets = [0, 64], sizes = [2, 32], strides = [1, 1]} : vector<2x96xf32> to vector<2x32xf32>
    %567 = arith.mulf %565, %521 : vector<2x32xf32>
    %568 = arith.mulf %564, %563 : vector<2x32xf32>
    %569 = arith.addf %567, %568 : vector<2x32xf32>
    %570 = math.tanh %569 : vector<2x32xf32>
    %571 = arith.mulf %566, %570 : vector<2x32xf32>
    %572 = vector.extract_strided_slice %116 {offsets = [0, 7, 0], sizes = [2, 1, 32], strides = [1, 1, 1]} : vector<2x8x32xf32> to vector<2x1x32xf32>
    %573 = vector.shape_cast %572 : vector<2x1x32xf32> to vector<2x32xf32>
    %574 = vector.extract_strided_slice %116 {offsets = [0, 0, 0], sizes = [2, 1, 32], strides = [1, 1, 1]} : vector<2x8x32xf32> to vector<2x1x32xf32>
    %575 = vector.shape_cast %574 : vector<2x1x32xf32> to vector<2x32xf32>
    %576 = arith.mulf %549, %573 : vector<2x32xf32>
    %577 = arith.mulf %571, %575 : vector<2x32xf32>
    %c0_167 = arith.constant 0 : index
    %c7_168 = arith.constant 7 : index
    %c0_169 = arith.constant 0 : index
    %578 = vector.load %arg22[%c0_167, %c7_168, %c0_169] : memref<2x8x64xf32, #tpu.memory_space<vmem>>, vector<2x1x32xf32>
    %579 = vector.shape_cast %578 : vector<2x1x32xf32> to vector<2x32xf32>
    %580 = vector.shape_cast %576 : vector<2x32xf32> to vector<2x1x32xf32>
    tpu.vector_store %arg22[%c0_167, %c7_168, %c0_169], %580 {strides = array<i32>} : memref<2x8x64xf32, #tpu.memory_space<vmem>>, vector<2x1x32xf32>,
    %c0_170 = arith.constant 0 : index
    %c0_171 = arith.constant 0 : index
    %c32_172 = arith.constant 32 : index
    %581 = vector.load %arg22[%c0_170, %c0_171, %c32_172] : memref<2x8x64xf32, #tpu.memory_space<vmem>>, vector<2x1x32xf32>
    %582 = vector.shape_cast %581 : vector<2x1x32xf32> to vector<2x32xf32>
    %583 = vector.shape_cast %577 : vector<2x32xf32> to vector<2x1x32xf32>
    tpu.vector_store %arg22[%c0_170, %c0_171, %c32_172], %583 {strides = array<i32>} : memref<2x8x64xf32, #tpu.memory_space<vmem>>, vector<2x1x32xf32>,
    %c0_173 = arith.constant 0 : index
    %c0_174 = arith.constant 0 : index
    %c0_175 = arith.constant 0 : index
    %584 = vector.load %arg22[%c0_173, %c0_174, %c0_175] : memref<2x8x64xf32, #tpu.memory_space<vmem>>, vector<2x8x64xf32>
    %585 = vector.shape_cast %584 : vector<2x8x64xf32> to vector<16x64xf32>
    %c0_176 = arith.constant 0 : index
    %c0_177 = arith.constant 0 : index
    %586 = vector.load %arg18[%c0_176, %c0_177] : memref<64x16xf32, #tpu.memory_space<vmem>>, vector<64x16xf32>
    %cst_178 = arith.constant dense<0.000000e+00> : vector<16x16xf32>
    %587 = tpu.matmul %585, %586, %cst_178 {dimension_numbers = #tpu.dot_dimension_numbers<[1], [0], [0], [1], [0, 0, 1, 1], [], []>} : vector<16x64xf32>, vector<64x16xf32>, vector<16x16xf32> -> vector<16x16xf32>
    %c0_179 = arith.constant 0 : index
    %c0_180 = arith.constant 0 : index
    %588 = vector.load %arg19[%c0_179, %c0_180] : memref<1x16xf32, #tpu.memory_space<vmem>>, vector<1x16xf32>
    %589 = vector.broadcast %588 : vector<1x16xf32> to vector<16x16xf32>
    %590 = arith.addf %587, %589 : vector<16x16xf32>
    %591 = vector.shape_cast %590 : vector<16x16xf32> to vector<2x8x16xf32>
    %592 = vector.extract_strided_slice %591 {offsets = [0, 0, 0], sizes = [2, 1, 16], strides = [1, 1, 1]} : vector<2x8x16xf32> to vector<2x1x16xf32>
    %593 = vector.shape_cast %592 : vector<2x1x16xf32> to vector<2x16xf32>
    %c0_181 = arith.constant 0 : index
    %c0_182 = arith.constant 0 : index
    %594 = vector.load %arg20[%c0_181, %c0_182] : memref<2x128xf32, #tpu.memory_space<vmem>>, vector<2x16xf32>
    tpu.vector_store %arg20[%c0_181, %c0_182], %593 {strides = array<i32>} : memref<2x128xf32, #tpu.memory_space<vmem>>, vector<2x16xf32>,
    %595 = vector.extract_strided_slice %591 {offsets = [0, 1, 0], sizes = [2, 1, 16], strides = [1, 1, 1]} : vector<2x8x16xf32> to vector<2x1x16xf32>
    %596 = vector.shape_cast %595 : vector<2x1x16xf32> to vector<2x16xf32>
    %c0_183 = arith.constant 0 : index
    %c16 = arith.constant 16 : index
    %597 = vector.load %arg20[%c0_183, %c16] : memref<2x128xf32, #tpu.memory_space<vmem>>, vector<2x16xf32>
    tpu.vector_store %arg20[%c0_183, %c16], %596 {strides = array<i32>} : memref<2x128xf32, #tpu.memory_space<vmem>>, vector<2x16xf32>,
    %598 = vector.extract_strided_slice %591 {offsets = [0, 2, 0], sizes = [2, 1, 16], strides = [1, 1, 1]} : vector<2x8x16xf32> to vector<2x1x16xf32>
    %599 = vector.shape_cast %598 : vector<2x1x16xf32> to vector<2x16xf32>
    %c0_184 = arith.constant 0 : index
    %c32_185 = arith.constant 32 : index
    %600 = vector.load %arg20[%c0_184, %c32_185] : memref<2x128xf32, #tpu.memory_space<vmem>>, vector<2x16xf32>
    tpu.vector_store %arg20[%c0_184, %c32_185], %599 {strides = array<i32>} : memref<2x128xf32, #tpu.memory_space<vmem>>, vector<2x16xf32>,
    %601 = vector.extract_strided_slice %591 {offsets = [0, 3, 0], sizes = [2, 1, 16], strides = [1, 1, 1]} : vector<2x8x16xf32> to vector<2x1x16xf32>
    %602 = vector.shape_cast %601 : vector<2x1x16xf32> to vector<2x16xf32>
    %c0_186 = arith.constant 0 : index
    %c48 = arith.constant 48 : index
    %603 = vector.load %arg20[%c0_186, %c48] : memref<2x128xf32, #tpu.memory_space<vmem>>, vector<2x16xf32>
    tpu.vector_store %arg20[%c0_186, %c48], %602 {strides = array<i32>} : memref<2x128xf32, #tpu.memory_space<vmem>>, vector<2x16xf32>,
    %604 = vector.extract_strided_slice %591 {offsets = [0, 4, 0], sizes = [2, 1, 16], strides = [1, 1, 1]} : vector<2x8x16xf32> to vector<2x1x16xf32>
    %605 = vector.shape_cast %604 : vector<2x1x16xf32> to vector<2x16xf32>
    %c0_187 = arith.constant 0 : index
    %c64 = arith.constant 64 : index
    %606 = vector.load %arg20[%c0_187, %c64] : memref<2x128xf32, #tpu.memory_space<vmem>>, vector<2x16xf32>
    tpu.vector_store %arg20[%c0_187, %c64], %605 {strides = array<i32>} : memref<2x128xf32, #tpu.memory_space<vmem>>, vector<2x16xf32>,
    %607 = vector.extract_strided_slice %591 {offsets = [0, 5, 0], sizes = [2, 1, 16], strides = [1, 1, 1]} : vector<2x8x16xf32> to vector<2x1x16xf32>
    %608 = vector.shape_cast %607 : vector<2x1x16xf32> to vector<2x16xf32>
    %c0_188 = arith.constant 0 : index
    %c80 = arith.constant 80 : index
    %609 = vector.load %arg20[%c0_188, %c80] : memref<2x128xf32, #tpu.memory_space<vmem>>, vector<2x16xf32>
    tpu.vector_store %arg20[%c0_188, %c80], %608 {strides = array<i32>} : memref<2x128xf32, #tpu.memory_space<vmem>>, vector<2x16xf32>,
    %610 = vector.extract_strided_slice %591 {offsets = [0, 6, 0], sizes = [2, 1, 16], strides = [1, 1, 1]} : vector<2x8x16xf32> to vector<2x1x16xf32>
    %611 = vector.shape_cast %610 : vector<2x1x16xf32> to vector<2x16xf32>
    %c0_189 = arith.constant 0 : index
    %c96 = arith.constant 96 : index
    %612 = vector.load %arg20[%c0_189, %c96] : memref<2x128xf32, #tpu.memory_space<vmem>>, vector<2x16xf32>
    tpu.vector_store %arg20[%c0_189, %c96], %611 {strides = array<i32>} : memref<2x128xf32, #tpu.memory_space<vmem>>, vector<2x16xf32>,
    %613 = vector.extract_strided_slice %591 {offsets = [0, 7, 0], sizes = [2, 1, 16], strides = [1, 1, 1]} : vector<2x8x16xf32> to vector<2x1x16xf32>
    %614 = vector.shape_cast %613 : vector<2x1x16xf32> to vector<2x16xf32>
    %c0_190 = arith.constant 0 : index
    %c112 = arith.constant 112 : index
    %615 = vector.load %arg20[%c0_190, %c112] : memref<2x128xf32, #tpu.memory_space<vmem>>, vector<2x16xf32>
    tpu.vector_store %arg20[%c0_190, %c112], %614 {strides = array<i32>} : memref<2x128xf32, #tpu.memory_space<vmem>>, vector<2x16xf32>,
    return
  }
  func.func @transform_0(%arg0: i32) -> (i32, i32, i32) {
    %c0_i32 = arith.constant 0 : i32
    %c0_i32_0 = arith.constant 0 : i32
    %c0_i32_1 = arith.constant 0 : i32
    return %arg0, %c0_i32, %c0_i32_0 : i32, i32, i32
  }
  func.func @transform_1(%arg0: i32) -> (i32, i32) {
    %c0_i32 = arith.constant 0 : i32
    %c0_i32_0 = arith.constant 0 : i32
    return %arg0, %c0_i32 : i32, i32
  }
  func.func @transform_2(%arg0: i32) -> (i32, i32, i32) {
    %c0_i32 = arith.constant 0 : i32
    %c0_i32_0 = arith.constant 0 : i32
    %c0_i32_1 = arith.constant 0 : i32
    return %arg0, %c0_i32, %c0_i32_0 : i32, i32, i32
  }
  func.func @transform_3(%arg0: i32) -> (i32, i32, i32) {
    %c0_i32 = arith.constant 0 : i32
    %c0_i32_0 = arith.constant 0 : i32
    %c0_i32_1 = arith.constant 0 : i32
    return %arg0, %c0_i32, %c0_i32_0 : i32, i32, i32
  }
  func.func @transform_4(%arg0: i32) -> (i32, i32) {
    %c0_i32 = arith.constant 0 : i32
    %c0_i32_0 = arith.constant 0 : i32
    %c0_i32_1 = arith.constant 0 : i32
    return %c0_i32, %c0_i32_0 : i32, i32
  }
  func.func @transform_5(%arg0: i32) -> (i32, i32) {
    %c0_i32 = arith.constant 0 : i32
    %c0_i32_0 = arith.constant 0 : i32
    %c0_i32_1 = arith.constant 0 : i32
    return %c0_i32, %c0_i32_0 : i32, i32
  }
  func.func @transform_6(%arg0: i32) -> (i32, i32) {
    %c0_i32 = arith.constant 0 : i32
    %c0_i32_0 = arith.constant 0 : i32
    %c0_i32_1 = arith.constant 0 : i32
    return %c0_i32, %c0_i32_0 : i32, i32
  }
  func.func @transform_7(%arg0: i32) -> (i32, i32) {
    %c0_i32 = arith.constant 0 : i32
    %c0_i32_0 = arith.constant 0 : i32
    %c0_i32_1 = arith.constant 0 : i32
    return %c0_i32, %c0_i32_0 : i32, i32
  }
  func.func @transform_8(%arg0: i32) -> (i32, i32) {
    %c0_i32 = arith.constant 0 : i32
    %c0_i32_0 = arith.constant 0 : i32
    %c0_i32_1 = arith.constant 0 : i32
    return %c0_i32, %c0_i32_0 : i32, i32
  }
  func.func @transform_9(%arg0: i32) -> (i32, i32) {
    %c0_i32 = arith.constant 0 : i32
    %c0_i32_0 = arith.constant 0 : i32
    %c0_i32_1 = arith.constant 0 : i32
    return %c0_i32, %c0_i32_0 : i32, i32
  }
  func.func @transform_10(%arg0: i32) -> (i32, i32) {
    %c0_i32 = arith.constant 0 : i32
    %c0_i32_0 = arith.constant 0 : i32
    %c0_i32_1 = arith.constant 0 : i32
    return %c0_i32, %c0_i32_0 : i32, i32
  }
  func.func @transform_11(%arg0: i32) -> (i32, i32) {
    %c0_i32 = arith.constant 0 : i32
    %c0_i32_0 = arith.constant 0 : i32
    %c0_i32_1 = arith.constant 0 : i32
    return %c0_i32, %c0_i32_0 : i32, i32
  }
  func.func @transform_12(%arg0: i32) -> (i32, i32) {
    %c0_i32 = arith.constant 0 : i32
    %c0_i32_0 = arith.constant 0 : i32
    %c0_i32_1 = arith.constant 0 : i32
    return %c0_i32, %c0_i32_0 : i32, i32
  }
  func.func @transform_13(%arg0: i32) -> (i32, i32) {
    %c0_i32 = arith.constant 0 : i32
    %c0_i32_0 = arith.constant 0 : i32
    %c0_i32_1 = arith.constant 0 : i32
    return %c0_i32, %c0_i32_0 : i32, i32
  }
  func.func @transform_14(%arg0: i32) -> (i32, i32) {
    %c0_i32 = arith.constant 0 : i32
    %c0_i32_0 = arith.constant 0 : i32
    %c0_i32_1 = arith.constant 0 : i32
    return %c0_i32, %c0_i32_0 : i32, i32
  }
  func.func @transform_15(%arg0: i32) -> (i32, i32) {
    %c0_i32 = arith.constant 0 : i32
    %c0_i32_0 = arith.constant 0 : i32
    %c0_i32_1 = arith.constant 0 : i32
    return %c0_i32, %c0_i32_0 : i32, i32
  }
  func.func @transform_16(%arg0: i32) -> (i32, i32, i32) {
    %c0_i32 = arith.constant 0 : i32
    %c0_i32_0 = arith.constant 0 : i32
    %c0_i32_1 = arith.constant 0 : i32
    %c0_i32_2 = arith.constant 0 : i32
    return %c0_i32, %c0_i32_0, %c0_i32_1 : i32, i32, i32
  }
  func.func @transform_17(%arg0: i32) -> (i32, i32) {
    %c0_i32 = arith.constant 0 : i32
    %c0_i32_0 = arith.constant 0 : i32
    %c0_i32_1 = arith.constant 0 : i32
    return %c0_i32, %c0_i32_0 : i32, i32
  }
  func.func @transform_18(%arg0: i32) -> (i32, i32) {
    %c0_i32 = arith.constant 0 : i32
    %c0_i32_0 = arith.constant 0 : i32
    %c0_i32_1 = arith.constant 0 : i32
    return %c0_i32, %c0_i32_0 : i32, i32
  }
  func.func @transform_19(%arg0: i32) -> (i32, i32) {
    %c0_i32 = arith.constant 0 : i32
    %c0_i32_0 = arith.constant 0 : i32
    return %arg0, %c0_i32 : i32, i32
  }
  func.func @transform_20(%arg0: i32) -> (i32, i32, i32) {
    %c0_i32 = arith.constant 0 : i32
    %c0_i32_0 = arith.constant 0 : i32
    %c0_i32_1 = arith.constant 0 : i32
    return %arg0, %c0_i32, %c0_i32_0 : i32, i32, i32
  }
}

</mosaic_0001>

<bundles_post_ra>
// kernel: decoder_forward.1
= control target key start
LH: loop header
LB: loop body
LE: loop exit
PB: predicated region body
PF: predicated region fallthrough
CT: control target
= control target key end

     0   :  { %v4312_v0 = vmov 0   ;;  %vm72_vm0 = vcmask 7168   ;;  %vm123_vm3 = vcmask 261120   ;;  %v4313_v54 = vmov 0.0|0.0   ;;  %s5408_s2 = inlined_call_operand.vmem [shape: f32[2,8,1], index: 2, kind: input, shape index: {}]   ;;  %s5409_s0 = inlined_call_operand.vmem [shape: f32[2,8,32], index: 0, kind: input, shape index: {}]   ;;  %s5410_s6 = inlined_call_operand.vmem [shape: f32[32,64], index: 6, kind: input, shape index: {}]   ;;  %s5411_s8 = inlined_call_operand.vmem [shape: f32[32,64], index: 8, kind: input, shape index: {}]   ;;  %s5412_s4 = inlined_call_operand.vmem [shape: f32[16,32], index: 4, kind: input, shape index: {}]   ;;  %s5413_s1 = inlined_call_operand.vmem [shape: f32[2,16], index: 1, kind: input, shape index: {}]   ;;  %s5414_s9 = inlined_call_operand.vmem [shape: f32[1,64], index: 9, kind: input, shape index: {}]   ;;  %s5415_s5 = inlined_call_operand.vmem [shape: f32[1,32], index: 5, kind: input, shape index: {}]   ;;  %s5416_s7 = inlined_call_operand.vmem [shape: f32[1,64], index: 7, kind: input, shape index: {}]   ;;  %s5417_s12 = inlined_call_operand.vmem [shape: f32[1,32], index: 12, kind: input, shape index: {}]   ;;  %s5418_s20 = inlined_call_operand.vmem [shape: f32[2,8,1], index: 20, kind: output, shape index: {1}]   ;;  %s5419_s10 = inlined_call_operand.vmem [shape: f32[32,96], index: 10, kind: input, shape index: {}]   ;;  %s5420_s13 = inlined_call_operand.vmem [shape: f32[64,32], index: 13, kind: input, shape index: {}]   ;;  %s5421_s11 = inlined_call_operand.vmem [shape: f32[1,96], index: 11, kind: input, shape index: {}]   ;;  %s5422_s14 = inlined_call_operand.vmem [shape: f32[32,256], index: 14, kind: input, shape index: {}]   ;;  %s5423_s16 = inlined_call_operand.vmem [shape: f32[2,32,128], index: 16, kind: input, shape index: {}]   ;;  %s5424_s15 = inlined_call_operand.vmem [shape: f32[1,256], index: 15, kind: input, shape index: {}]   ;;  %s5425_s3 = inlined_call_operand.vmem [shape: s32[2,1,1], index: 3, kind: input, shape index: {}]   ;;  %s5426_s17 = inlined_call_operand.vmem [shape: f32[64,16], index: 17, kind: input, shape index: {}]   ;;  %s5427_s18 = inlined_call_operand.vmem [shape: f32[1,16], index: 18, kind: input, shape index: {}]   ;;  %s5428_s19 = inlined_call_operand.vmem [shape: f32[2,128], index: 19, kind: output, shape index: {0}]  }
   0x1   :  { %5434 = sst [smem:[#allocation3_spill]] %s5408_s2  ;;  %4092 = vset.pattern.permute.xlu0 %v4312_v0  ;;  %4093 = vset.pattern.permute.xlu1 %v4312_v0  ;;  %vm4314_vm4 = vmmov 0   ;;  %v4315_v58 = vmov 0.0   ;;  %vm243_vm5 = vcmask 1041409   ;;  %vm331_vm6 = vcmask 130048  }
   0x2   :  { %5435 = sst [smem:[#allocation4_spill]] %s5409_s0  ;;  %s5439_s23 = sld [smem:[#allocation3_spill]]  ;;  %3940 = vmatprep.subr.bf16.mxu1 %v4313_v54  ;;  %3703 = vmatprep.mubr.msk.f32.mxu1 %vm4314_vm4, %v4315_v58  ;;  %vm1252_vm9 = vcmask 253952   ;;  %vm1263_vm10 = vcmask 523527   ;;  %vm1548_vm11 = vcmask 254977   ;;  %vm1559_vm12 = vcmask 522502  }
   0x3   :  { %5436 = sst [smem:[#allocation5_spill]] %s5410_s6  ;;  %s5441_s30 = sld [smem:[#allocation4_spill]]  ;;  %vm1845_vm13 = vcmask 256002   ;;  %vm1856_vm14 = vcmask 521477   ;;  %vm2143_vm15 = vcmask 257027  }
   0x4   :  { %5437 = sst [smem:[#allocation6_spill]] %s5411_s8  ;;  %s5440_s26 = sld [smem:[#allocation5_spill]] }
   0x5   :  { %5438 = sst [smem:[#allocation7_spill]] %s5412_s4  ;;  %s5442_s8 = sld [smem:[#allocation6_spill]] }
   0x6   :  { %s5443_s0 = sld [smem:[#allocation7_spill]] }
   0x8   :  { %v4432_v1 = vld [vmem:[%s5439_s23] sm:$0xff]  ;;  %v4437_v2 = vld [vmem:[%s5439_s23 + $0x8] sm:$0xff] }
   0x9   :  { %vm68_vm1 = vcmp.eq.f32.partialorder %v4432_v1, 0.0  ;;  %vm69_vm2 = vcmp.eq.f32.partialorder %v4437_v2, 0.0  ;;  %v64_v46 = vld [vmem:[%s5441_s30] sm:$0xff]  ;;  %v65_v50 = vld [vmem:[%s5441_s30 + $0x8] sm:$0xff] }
   0xa   :  { %v70_v3 = vsel %vm68_vm1, -1e+09, %v4432_v1  ;;  %v71_v4 = vsel %vm69_vm2, -1e+09, %v4437_v2  ;;  %v138_v43 = vld [vmem:[%s5440_s26] sm:$0xff]  ;;  %v139_v44 = vld [vmem:[%s5440_s26 + $0x8] sm:$0xff]  ;;  %3674 = vmatprep.mubr.msk.f32.mxu0 %vm123_vm3, %v64_v46 }
   0xb   :  { %v73_v5 = vsel %vm72_vm0, %v70_v3, -inf  ;;  %v80_v6 = vsel %vm72_vm0, %v71_v4, -inf  ;;  %v3923_v45 = vpack.c.bf16 %v139_v44, %v138_v43  ;;  %v140_v47 = vld [vmem:[%s5440_s26 + $0x10] sm:$0xff]  ;;  %v141_v48 = vld [vmem:[%s5440_s26 + $0x18] sm:$0xff]  ;;  %v230_v51 = vld [vmem:[%s5442_s8] sm:$0xff]  ;;  %s4318_s26 = smov 96  }
   0xc   :  { %v74_v7 = vrot.slane %v73_v5, 4  ;;  %v81_v8 = vrot.slane %v80_v6, 4  ;;  %v3927_v49 = vpack.c.bf16 %v141_v48, %v140_v47  ;;  %v231_v52 = vld [vmem:[%s5442_s8 + $0x8] sm:$0xff]  ;;  %v232_v55 = vld [vmem:[%s5442_s8 + $0x10] sm:$0xff]  ;;  %v233_v56 = vld [vmem:[%s5442_s8 + $0x18] sm:$0xff] }
   0xd   :  { %3924 = vmatprep.subr.bf16.mxu0 %v3923_v45  ;;  %v3932_v53 = vpack.c.bf16 %v231_v52, %v230_v51  ;;  %v3935_v57 = vpack.c.bf16 %v233_v56, %v232_v55 }
   0xe   :  { %v75_v9 = vmax.f32 %v73_v5, %v74_v7  ;;  %v82_v10 = vmax.f32 %v80_v6, %v81_v8  ;;  %3926 = vmatpush3.bf16.msra.mxu0 %v3923_v45 }
   0xf   :  { %3928 = vmatprep.subr.bf16.mxu0 %v3927_v49 }
  0x10   :  { %v76_v11 = vrot.slane %v75_v9, 2  ;;  %v83_v12 = vrot.slane %v82_v10, 2 }
  0x12   :  { %v77_v13 = vmax.f32 %v75_v9, %v76_v11  ;;  %v84_v14 = vmax.f32 %v82_v10, %v83_v12  ;;  %3930 = vmatpush3.bf16.msra.mxu0 %v3927_v49  ;;  %v322_v12 = vld [vmem:[%s5443_s0] sm:$0xff] }
  0x13   :  { %3931 = vmatprep.subr.bf16.mxu0 %v4313_v54 }
  0x14   :  { %v78_v15 = vrot.slane %v77_v13, 1  ;;  %v85_v16 = vrot.slane %v84_v14, 1 }
  0x15   :  { %3675 = vmatmul.mubr.msk.f32.vlgmr.msra.gmra.mrb[0].mxu0 %vm123_vm3, %v65_v50 }
  0x16   :  { %v79_v17 = vmax.f32 %v77_v13, %v78_v15  ;;  %v86_v18 = vmax.f32 %v84_v14, %v85_v16  ;;  %3933 = vmatpush3.bf16.msra.mxu0 %v3932_v53  ;;  %3685 = vmatprep.mubr.msk.f32.mxu0 %vm4314_vm4, %v4315_v58  ;;  %v323_v13 = vld [vmem:[%s5443_s0 + $0x8] sm:$0xff] }
  0x17   :  { %3934 = vmatprep.subr.bf16.mxu0 %v4313_v54 }
  0x18   :  { %v87_v19 = vsub.f32 %v70_v3, %v79_v17  ;;  %v88_v20 = vsub.f32 %v71_v4, %v86_v18  ;;  %v3938_v17 = vpack.c.bf16 %v323_v13, %v322_v12 }
  0x1a   :  { %v89_v21 = vmul.f32 1.442695, %v87_v19  ;;  %v91_v22 = vmul.f32 1.442695, %v88_v20  ;;  %3936 = vmatpush3.bf16.msra.mxu0 %v3935_v57  ;;  %v321_v19 = vld [vmem:[%s5413_s1] sm:$0x3] }
  0x1b   :  { %3937 = vmatprep.subr.bf16.mxu0 %v4313_v54  ;;  %v3515_v57 = vld [vmem:[%s5417_s12] ss:$0 sm:$0xff]  ;;  %s4317_s12 = smov 64   ;;  %s4320_s1 = smov 16  }
  0x1c   :  { %4094 = vpow2.f32 %v89_v21 }
  0x1d   :  { %4096 = vpow2.f32 %v91_v22  ;;  %v4316_v22 = vmov 1966171168  }
  0x26   :  { %v4095_v23 = vpop.eup %4094 }
  0x27   :  { %v4097_v24 = vpop.eup %4096  ;;  %v93_v25 = vsel %vm72_vm0, %v4095_v23, 0.0 }
  0x28   :  { %v94_v26 = vrot.slane %v93_v25, 4  ;;  %v100_v27 = vsel %vm72_vm0, %v4097_v24, 0.0 }
  0x29   :  { %v101_v28 = vrot.slane %v100_v27, 4 }
  0x2a   :  { %v95_v29 = vadd.f32 %v94_v26, %v93_v25 }
  0x2b   :  { %v102_v30 = vadd.f32 %v101_v28, %v100_v27  ;;  %v3511_v27 = vld [vmem:[%s5414_s9] ss:$0 sm:$0xff]  ;;  %s4322_s9 = smov 80  }
  0x2c   :  { %v96_v31 = vrot.slane %v95_v29, 2 }
  0x2d   :  { %v103_v32 = vrot.slane %v102_v30, 2 }
  0x2e   :  { %v97_v33 = vadd.f32 %v96_v31, %v95_v29 }
  0x2f   :  { %v104_v34 = vadd.f32 %v103_v32, %v102_v30  ;;  %v3513_v32 = vld [vmem:[%s5415_s5] ss:$0 sm:$0xff] }
  0x30   :  { %v98_v35 = vrot.slane %v97_v33, 1 }
  0x31   :  { %v105_v36 = vrot.slane %v104_v34, 1 }
  0x32   :  { %v99_v37 = vadd.f32 %v98_v35, %v97_v33 }
  0x33   :  { %v106_v38 = vadd.f32 %v105_v36, %v104_v34 }
  0x34   :  { %4098 = vrcp.f32 %v99_v37 }
  0x35   :  { %4100 = vrcp.f32 %v106_v38 }
  0x3e   :  { %v4099_v39 = vpop.eup %4098 }
  0x3f   :  { %v4101_v40 = vpop.eup %4100  ;;  %v108_v41 = vmul.f32 %v4099_v39, %v4095_v23  ;;  %v407_v23 = vunpack.c.l.s4 %v4316_v22  ;;  %v3508_v39 = vld [vmem:[%s5416_s7] ss:$0 sm:$0xff] }
  0x40   :  { %v110_v42 = vmul.f32 %v4101_v40, %v4097_v24  ;;  %v409_v24 = vlaneseq }
  0x41   :  { %113 = vperm.xlu0 %4092, %v108_v41   ;;  %v408_v25 = vunpack.c.0.s8 %v407_v23 }
  0x42   :  { %v4509_v26 = vshrl.u32 %v409_v24, 7 }
  0x44   :  { %v4515_v28 = vsub.s32 %v408_v25, %v4509_v26  ;;  %v4529_v40 = vsub.s32 0, %v4509_v26 }
  0x45   :  { %118 = vperm.xlu0 %4092, %v110_v42  }
  0xc0   :  { %v114_v59 = vpop.permute.xlu0 %113 }
  0xc1   :  { %v121_v60 = vmul.f32 %v114_v59, %v64_v46 }
  0xc3   :  { %v124_v61 = vsel %vm123_vm3, %v121_v60, 0.0 }
  0xc4   :  { %v119_v62 = vpop.permute.xlu0 %118  ;;  %v125_v63 = vrot.slane %v124_v61, 4 }
  0xc5   :  { %v122_v0 = vmul.f32 %v119_v62, %v65_v50 }
  0xc6   :  { %v126_v3 = vadd.f32 %v125_v63, %v124_v61 }
  0xc7   :  { %v131_v4 = vsel %vm123_vm3, %v122_v0, 0.0 }
  0xc8   :  { %v127_v5 = vrot.slane %v126_v3, 2  ;;  %v132_v6 = vrot.slane %v131_v4, 4 }
  0xca   :  { %v128_v7 = vadd.f32 %v127_v5, %v126_v3  ;;  %v133_v8 = vadd.f32 %v132_v6, %v131_v4 }
  0xcc   :  { %v134_v9 = vrot.slane %v133_v8, 2  ;;  %v129_v10 = vrot.slane %v128_v7, 1 }
  0xce   :  { %v135_v11 = vadd.f32 %v134_v9, %v133_v8  ;;  %v130_v15 = vadd.f32 %v129_v10, %v128_v7 }
  0xd0   :  { %v136_v14 = vrot.slane %v135_v11, 1 }
  0xd2   :  { %v137_v16 = vadd.f32 %v136_v14, %v135_v11 }
  0xd4   :  { %v244_v18 = vsel %vm243_vm5, %v137_v16, %v130_v15 }
  0xd5   :  { %3686 = vmatmul.mubr.msk.f32.vlgmr.msra.gmra.mrb[2].mxu0 %vm123_vm3, %v244_v18 }
  0xd6   :  { %3939 = vmatpush3.bf16.msra.mxu0 %v3938_v17  ;;  %3692 = vmatprep.mubr.msk.f32.mxu0 %vm4314_vm4, %v4315_v58 }
  0xd7   :  { %3946 = vmatprep.subr.bf16.mxu0 %v4313_v54 }
  0xd9   :  { %3693 = vmatmul.mubr.msk.f32.vlgmr.msra.gmra.mrb[4].mxu0 %vm331_vm6, %v321_v19  ;;  %vm3036_vm6 = vcmask 260102  }
  0xda   :  { %3714 = vmatprep.mubr.msk.f32.mxu0 %vm4314_vm4, %v4315_v58 }
  0xe8   :  { %v3676_v20 = vpop.f32.mrb[0].mxu0 }
  0xe9   :  { %v221_v21 = vpop.f32.mrb[1].mxu0  ;;  %v4538_v48 = vadd.f32 %v3676_v20, %v3508_v39 }
  0xea   :  { %v4533_v44 = vadd.f32 %v3508_v39, %v221_v21 }
 0x1a8   :  { %v313_v29 = vpop.f32.mrb[2].mxu0 }
 0x1a9   :  { %v4517_v30 = vadd.f32 %v3511_v27, %v313_v29  ;;  %v3687_v31 = vpop.f32.mrb[3].mxu0 }
 0x1ab   :  { %v447_v33 = vrot.slane %v4517_v30, %v4515_v28 }
 0x1ac   :  { %v401_v34 = vpop.f32.mrb[4].mxu0 }
 0x1ad   :  { %v402_v35 = vadd.f32 %v3513_v32, %v401_v34  ;;  %v3694_v36 = vpop.f32.mrb[5].mxu0  ;;  %v448_v37 = vcombine.high %v447_v33, %v447_v33  ;;  %v455_v41 = vrot.slane %v447_v33, %v4515_v28 }
 0x1af   :  { %v412_v38 = vrot.slane %v402_v35, %v4515_v28  ;;  %v462_v45 = vrot.slane %v448_v37, %v4515_v28  ;;  %v466_v49 = vrot.slane %v455_v41, %v4529_v40 }
 0x1b1   :  { %v413_v42 = vcombine.high %v412_v38, %v412_v38  ;;  %v420_v43 = vrot.slane %v412_v38, %v4515_v28  ;;  %v470_v52 = vrot.slane %v462_v45, %v4529_v40 }
 0x1b3   :  { %v427_v46 = vrot.slane %v413_v42, %v4515_v28  ;;  %v431_v47 = vrot.slane %v420_v43, %v4529_v40 }
 0x1b5   :  { %v435_v50 = vrot.slane %v427_v46, %v4529_v40  ;;  %v438_v51 = vadd.f32 %v431_v47, %v4533_v44 }
 0x1b7   :  { %v439_v53 = vadd.f32 %v435_v50, %v4538_v48  ;;  %v473_v55 = vadd.f32 %v466_v49, %v438_v51  ;;  %v560_v49 = vld [vmem:[%s5419_s10] sm:$0xff]  ;;  %v561_v50 = vld [vmem:[%s5419_s10 + $0x8] sm:$0xff] }
 0x1b8   :  { %v3941_v51 = vpack.c.bf16 %v561_v50, %v560_v49  ;;  %v853_v49 = vld [vmem:[%s5422_s14 + $0x8] sm:$0xff]  ;;  %v855_v50 = vld [vmem:[%s5422_s14 + $0x18] sm:$0xff] }
 0x1b9   :  { %v474_v56 = vadd.f32 %v470_v52, %v439_v53  ;;  %4102 = vtanh.f32 %v473_v55  ;;  %v562_v52 = vld [vmem:[%s5419_s10 + $0x10] sm:$0xff]  ;;  %v563_v53 = vld [vmem:[%s5419_s10 + $0x18] sm:$0xff] }
 0x1ba   :  { %3942 = vmatpush3.bf16.msra.mxu1 %v3941_v51  ;;  %v3944_v55 = vpack.c.bf16 %v563_v53, %v562_v52  ;;  %v852_v51 = vld [vmem:[%s5422_s14] sm:$0xff]  ;;  %v3958_v52 = vpack.c.bf16 %v855_v50, %v853_v49  ;;  %v854_v53 = vld [vmem:[%s5422_s14 + $0x10] sm:$0xff] }
 0x1bb   :  { %4104 = vtanh.f32 %v474_v56  ;;  %3943 = vmatprep.subr.bf16.mxu1 %v4313_v54 }
 0x1be   :  { %3945 = vmatpush3.bf16.msra.mxu1 %v3944_v55  ;;  %v3526_v55 = vld [vmem:[%s5423_s16 + $0x20] sm:$0xff] }
 0x1bf   :  { %3959 = vmatprep.subr.bf16.mxu1 %v3958_v52 }
 0x1c3   :  { %v4103_v59 = vpop.eup %4102 }
 0x1c4   :  { %v484_v60 = vmul.f32 %v4103_v59, %v3515_v57 }
 0x1c5   :  { %v4105_v61 = vpop.eup %4104 }
 0x1c6   :  { %v486_v62 = vsel %vm123_vm3, %v484_v60, 0.0  ;;  %v485_v63 = vmul.f32 %v4105_v61, %v3515_v57 }
 0x1c7   :  { %487 = vadd.xlane.f32.xlu1 %v486_v62 }
 0x1c8   :  { %v489_v0 = vsel %vm123_vm3, %v485_v63, 0.0 }
 0x1cb   :  { %490 = vadd.xlane.f32.xlu1 %v489_v0 }
 0x254   :  { %v488_v3 = vpop.xlane.xlu1 %487 }
 0x255   :  { %v492_v4 = vsel %vm68_vm1, -1e+09, %v488_v3  ;;  %vm2441_vm1 = vcmask 258052  }
 0x256   :  { %v494_v5 = vsel %vm72_vm0, %v492_v4, -inf }
 0x257   :  { %v495_v6 = vrot.slane %v494_v5, 4 }
 0x258   :  { %v491_v7 = vpop.xlane.xlu1 %490 }
 0x259   :  { %v496_v8 = vmax.f32 %v494_v5, %v495_v6  ;;  %v493_v9 = vsel %vm69_vm2, -1e+09, %v491_v7  ;;  %vm2452_vm2 = vcmask 519427  }
 0x25a   :  { %v501_v10 = vsel %vm72_vm0, %v493_v9, -inf }
 0x25b   :  { %v497_v11 = vrot.slane %v496_v8, 2  ;;  %v502_v12 = vrot.slane %v501_v10, 4 }
 0x25d   :  { %v498_v13 = vmax.f32 %v496_v8, %v497_v11  ;;  %v503_v14 = vmax.f32 %v501_v10, %v502_v12 }
 0x25f   :  { %v499_v15 = vrot.slane %v498_v13, 1  ;;  %v504_v16 = vrot.slane %v503_v14, 2 }
 0x261   :  { %v500_v17 = vmax.f32 %v498_v13, %v499_v15  ;;  %v505_v18 = vmax.f32 %v503_v14, %v504_v16  ;;  %v661_v14 = vld [vmem:[%s5420_s13 + $0x20] sm:$0xff]  ;;  %v662_v15 = vld [vmem:[%s5420_s13 + $0x28] sm:$0xff]  ;;  %v663_v16 = vld [vmem:[%s5420_s13 + $0x30] sm:$0xff] }
 0x263   :  { %v508_v1 = vsub.f32 %v492_v4, %v500_v17  ;;  %v506_v19 = vrot.slane %v505_v18, 1  ;;  %v3947_v17 = vpack.c.bf16 %v662_v15, %v661_v14  ;;  %v983_v15 = vld [vmem:[%s5423_s16] sm:$0xff] }
 0x265   :  { %v510_v20 = vmul.f32 1.442695, %v508_v1  ;;  %v507_v21 = vmax.f32 %v505_v18, %v506_v19  ;;  %v664_v18 = vld [vmem:[%s5420_s13 + $0x38] sm:$0xff]  ;;  %3948 = vmatpush3.bf16.msra.mxu0 %v3947_v17  ;;  %v317_v19 = vmul.f32 0.5, %v4517_v30 }
 0x266   :  { %v3950_v1 = vpack.c.bf16 %v664_v18, %v663_v16  ;;  %3949 = vmatprep.subr.bf16.mxu0 %v4313_v54  ;;  %v984_v16 = vld [vmem:[%s5423_s16 + $0x8] sm:$0xff] }
 0x267   :  { %4106 = vpow2.f32 %v510_v20  ;;  %v509_v22 = vsub.f32 %v493_v9, %v507_v21  ;;  %v3516_v20 = vld [vmem:[%s5421_s11] ss:$0 sm:$0xff]  ;;  %v4695_v17 = vpack.c.bf16 %v984_v16, %v983_v15  ;;  %v3523_v16 = vld [vmem:[%s5425_s3 + $0x1] ss:$0 sm:$0xff] }
 0x269   :  { %v512_v23 = vmul.f32 1.442695, %v509_v22  ;;  %3951 = vmatpush3.bf16.msra.mxu0 %v3950_v1 }
 0x26a   :  { %3952 = vmatprep.subr.bf16.mxu0 %v4313_v54 }
 0x26b   :  { %4108 = vpow2.f32 %v512_v23 }
 0x271   :  { %v4107_v2 = vpop.eup %4106 }
 0x272   :  { %v514_v24 = vsel %vm72_vm0, %v4107_v2, 0.0 }
 0x273   :  { %v515_v25 = vrot.slane %v514_v24, 4 }
 0x275   :  { %v4109_v27 = vpop.eup %4108  ;;  %v516_v29 = vadd.f32 %v515_v25, %v514_v24 }
 0x276   :  { %v521_v31 = vsel %vm72_vm0, %v4109_v27, 0.0 }
 0x277   :  { %v517_v32 = vrot.slane %v516_v29, 2  ;;  %v522_v33 = vrot.slane %v521_v31, 4 }
 0x279   :  { %v523_v34 = vadd.f32 %v522_v33, %v521_v31  ;;  %v518_v35 = vadd.f32 %v517_v32, %v516_v29  ;;  %v657_v33 = vld [vmem:[%s5420_s13] sm:$0xff] }
 0x27b   :  { %v524_v36 = vrot.slane %v523_v34, 2  ;;  %v519_v37 = vrot.slane %v518_v35, 1 }
 0x27d   :  { %v520_v38 = vadd.f32 %v519_v37, %v518_v35  ;;  %v525_v39 = vadd.f32 %v524_v36, %v523_v34  ;;  %v658_v34 = vld [vmem:[%s5420_s13 + $0x8] sm:$0xff] }
 0x27e   :  { %v3953_v37 = vpack.c.bf16 %v658_v34, %v657_v33 }
 0x27f   :  { %4110 = vrcp.f32 %v520_v38  ;;  %v526_v41 = vrot.slane %v525_v39, 1 }
 0x281   :  { %v527_v42 = vadd.f32 %v526_v41, %v525_v39  ;;  %v659_v39 = vld [vmem:[%s5420_s13 + $0x10] sm:$0xff]  ;;  %v660_v41 = vld [vmem:[%s5420_s13 + $0x18] sm:$0xff] }
 0x283   :  { %4112 = vrcp.f32 %v527_v42  ;;  %v3956_v42 = vpack.c.bf16 %v660_v41, %v659_v39 }
 0x284   :  { %4114 = vtanh.f32 %v317_v19 }
 0x289   :  { %v4111_v43 = vpop.eup %4110 }
 0x28a   :  { %v529_v45 = vmul.f32 %v4111_v43, %v4107_v2 }
 0x28c   :  { %536 = vperm.xlu0 %4092, %v529_v45   ;;  %532 = vst.msk [vmem:[%s5418_s20] sm:$0xff] %vm72_vm0, %v529_v45 }
 0x28d   :  { %v4113_v46 = vpop.eup %4112 }
 0x28e   :  { %v531_v47 = vmul.f32 %v4113_v46, %v4109_v27  ;;  %v4115_v2 = vpop.eup %4114 }
 0x28f   :  { %v319_v24 = vadd.f32 1.0, %v4115_v2 }
 0x290   :  { %541 = vperm.xlu1 %4093, %v531_v47   ;;  %533 = vst.msk [vmem:[%s5418_s20 + $0x8] sm:$0xff] %vm72_vm0, %v531_v47  ;;  %vm2154_vm0 = vcmask 520452  }
 0x291   :  { %v320_v25 = vmul.f32 0.5, %v319_v24 }
 0x30b   :  { %v537_v56 = vpop.permute.xlu0 %536 }
 0x30c   :  { %v544_v57 = vmul.f32 %v537_v56, %v4533_v44  ;;  %v3527_v56 = vld [vmem:[%s5423_s16 + $0x28] sm:$0xff] }
 0x30e   :  { %v546_v59 = vsel %vm123_vm3, %v544_v57, 0.0 }
 0x30f   :  { %v547_v60 = vrot.slane %v546_v59, 4  ;;  %v542_v61 = vpop.permute.xlu1 %541 }
 0x310   :  { %v545_v62 = vmul.f32 %v542_v61, %v4538_v48  ;;  %v4646_v61 = vpack.c.bf16 %v3527_v56, %v3526_v55 }
 0x311   :  { %v548_v63 = vadd.f32 %v547_v60, %v546_v59  ;;  %v3960_v60 = vpack.c.bf16 %v854_v53, %v852_v51 }
 0x312   :  { %v553_v0 = vsel %vm123_vm3, %v545_v62, 0.0  ;;  %v857_v62 = vld [vmem:[%s5422_s14 + $0x28] sm:$0xff] }
 0x313   :  { %v549_v3 = vrot.slane %v548_v63, 2  ;;  %v554_v4 = vrot.slane %v553_v0, 4 }
 0x315   :  { %v550_v5 = vadd.f32 %v549_v3, %v548_v63  ;;  %v555_v6 = vadd.f32 %v554_v4, %v553_v0  ;;  %v859_v63 = vld [vmem:[%s5422_s14 + $0x38] sm:$0xff]  ;;  %v856_v0 = vld [vmem:[%s5422_s14 + $0x20] sm:$0xff]  ;;  %v858_v4 = vld [vmem:[%s5422_s14 + $0x30] sm:$0xff]  ;;  %s4319_s14 = smov 32  }
 0x316   :  { %v3962_v3 = vpack.c.bf16 %v859_v63, %v857_v62 }
 0x317   :  { %v556_v7 = vrot.slane %v555_v6, 2  ;;  %v551_v8 = vrot.slane %v550_v5, 1 }
 0x319   :  { %v557_v9 = vadd.f32 %v556_v7, %v555_v6  ;;  %v552_v11 = vadd.f32 %v551_v8, %v550_v5  ;;  %v3528_v5 = vld [vmem:[%s5423_s16 + $0x30] sm:$0xff]  ;;  %v3529_v6 = vld [vmem:[%s5423_s16 + $0x38] sm:$0xff] }
 0x31b   :  { %v558_v10 = vrot.slane %v557_v9, 1 }
 0x31d   :  { %v559_v12 = vadd.f32 %v558_v10, %v557_v9  ;;  %v3964_v9 = vpack.c.bf16 %v858_v4, %v856_v0  ;;  %v4670_v10 = vpack.c.bf16 %v3529_v6, %v3528_v5 }
 0x31f   :  { %v573_v13 = vsel %vm243_vm5, %v559_v12, %v552_v11 }
 0x320   :  { %3704 = vmatmul.mubr.msk.f32.vlgmr.msra.gmra.mrb[0].mxu1 %vm123_vm3, %v573_v13 }
 0x321   :  { %946 = vmatprep.mubr.f32.mxu1 %v4315_v58  ;;  %3961 = vmatpush1.bf16.msra.mxu1 %v3960_v60 }
 0x322   :  { %3963 = vmatprep.subr.bf16.mxu1 %v3962_v3 }
 0x325   :  { %3965 = vmatpush1.bf16.msra.mxu1 %v3964_v9 }
 0x326   :  { %3966 = vmatprep.subr.bf16.mxu1 %v4313_v54 }
 0x3f3   :  { %v642_v21 = vpop.f32.mrb[0].mxu1 }
 0x3f4   :  { %v643_v22 = vadd.f32 %v3516_v20, %v642_v21  ;;  %v3705_v23 = vpop.f32.mrb[1].mxu1 }
 0x3f5   :  { %v860_v23 = vld [vmem:[%s5424_s15] sm:$0x3]  ;;  %s4323_s15 = smov 112  }
 0x3f6   :  { %4116 = vtanh.f32 %v643_v22  ;;  %v646_v30 = vmul.f32 0.5, %v643_v22  ;;  %v868_v22 = vsub.s32 1, %v4509_v26 }
 0x3f8   :  { %4118 = vtanh.f32 %v646_v30  ;;  %v869_v2 = vrot.slane %v860_v23, %v868_v22  ;;  %v865_v30 = vrot.slane %v860_v23, %v4529_v40 }
 0x400   :  { %v4117_v27 = vpop.eup %4116 }
 0x401   :  { %653 = vrot.lane.b32.xlu0 %v4117_v27, %s4317_s12  ;;  %v651_v29 = vmul.f32 %v4117_v27, %v320_v25 }
 0x402   :  { %v4119_v31 = vpop.eup %4118 }
 0x403   :  { %v648_v32 = vadd.f32 1.0, %v4119_v31 }
 0x405   :  { %739 = vrot.lane.b32.xlu0 %v651_v29, %s4318_s26  ;;  %v649_v35 = vmul.f32 0.5, %v648_v32 }
 0x473   :  { %v654_v36 = vpop.permute.xlu0 %653 }
 0x474   :  { %v656_v38 = vmul.f32 %v654_v36, %v649_v35 }
 0x476   :  { %3715 = vmatmul.mubr.msk.f32.vlgmr.msra.gmra.mrb[6].mxu0 %vm123_vm3, %v656_v38 }
 0x477   :  { %3954 = vmatpush3.bf16.msra.mxu0 %v3953_v37  ;;  %3725 = vmatprep.mubr.msk.f32.mxu0 %vm4314_vm4, %v4315_v58  ;;  %v740_v43 = vpop.permute.xlu0 %739 }
 0x478   :  { %3955 = vmatprep.subr.bf16.mxu0 %v4313_v54 }
 0x47b   :  { %3957 = vmatpush3.bf16.msra.mxu0 %v3956_v42 }
 0x47c   :  { %3972 = vmatprep.subr.bf16.mxu0 %v4313_v54 }
 0x47e   :  { %3726 = vmatmul.mubr.msk.f32.vlgmr.msra.gmra.mrb[6].mxu0 %vm123_vm3, %v740_v43 }
 0x47f   :  { %3747 = vmatprep.mubr.msk.f32.mxu0 %vm4314_vm4, %v4315_v58  ;;  %3974 = vmatpush3.bf16.msra.mxu0 %v4646_v61 }
 0x480   :  { %3975 = vmatprep.subr.bf16.mxu0 %v4313_v54 }
 0x483   :  { %3977 = vmatpush3.bf16.msra.mxu0 %v4670_v10 }
 0x484   :  { %3984 = vmatprep.subr.bf16.mxu0 %v4313_v54 }
 0x486   :  { %3748 = vmatmul.mubr.f32.vlgmr.msra.gmra.mrb[8].mxu0 %v4315_v58 }
 0x487   :  { %3986 = vmatpush3.bf16.msra.mxu0 %v4646_v61  ;;  %3769 = vmatprep.mubr.msk.f32.mxu0 %vm4314_vm4, %v4315_v58 }
 0x488   :  { %3987 = vmatprep.subr.bf16.mxu0 %v4313_v54 }
 0x48b   :  { %3989 = vmatpush3.bf16.msra.mxu0 %v4670_v10 }
 0x48c   :  { %3996 = vmatprep.subr.bf16.mxu0 %v4313_v54 }
 0x551   :  { %v809_v45 = vpop.f32.mrb[6].mxu0 }
 0x552   :  { %v820_v46 = vrot.slane %v809_v45, %v4515_v28  ;;  %v3727_v47 = vpop.f32.mrb[7].mxu0 }
 0x554   :  { %v821_v57 = vcombine.high %v820_v46, %v820_v46  ;;  %v828_v59 = vrot.slane %v820_v46, %v4515_v28 }
 0x556   :  { %v835_v7 = vrot.slane %v821_v57, %v4515_v28  ;;  %v839_v8 = vrot.slane %v828_v59, %v4529_v40 }
 0x558   :  { %844 = vrot.lane.b32.xlu0 %v839_v8, %s4319_s14  ;;  %v843_v11 = vrot.slane %v835_v7, %v4529_v40 }
 0x559   :  { %v1181_v20 = vpop.f32.mrb[8].mxu0 }
 0x55a   :  { %v3749_v21 = vpop.f32.mrb[9].mxu0  ;;  %v1186_v25 = vrot.slane %v1181_v20, 1  ;;  %v1187_v41 = vrot.slane %v1181_v20, 2 }
 0x55c   :  { %846 = vrot.lane.b32.xlu0 %v843_v11, %s4319_s14 }
 0x5ca   :  { %v845_v28 = vpop.permute.xlu0 %844 }
 0x5cb   :  { %v850_v12 = vadd.f32 %v845_v28, %v4533_v44  ;;  %v985_v44 = vld [vmem:[%s5423_s16 + $0x10] sm:$0xff] }
 0x5cd   :  { %874 = vrot.lane.b32.xlu1 %v850_v12, %s4318_s26  ;;  %v3522_v12 = vld [vmem:[%s5425_s3] ss:$0 sm:$0xff] }
 0x5ce   :  { %v847_v13 = vpop.permute.xlu0 %846 }
 0x5cf   :  { %v851_v14 = vadd.f32 %v847_v13, %v4538_v48  ;;  %v986_v48 = vld [vmem:[%s5423_s16 + $0x18] sm:$0xff]  ;;  %s4321_s16 = smov 48  }
 0x5d0   :  { %v4706_v1 = vpack.c.bf16 %v986_v48, %v985_v44 }
 0x5d1   :  { %876 = vrot.lane.b32.xlu0 %v851_v14, %s4318_s26 }
 0x63f   :  { %v875_v18 = vpop.permute.xlu1 %874 }
 0x640   :  { %3520 = vmatmul.mubr.msk.f32.vlgmr.msra.gmra.mrb[2].mxu1 %vm123_vm3, %v875_v18 }
 0x641   :  { %3968 = vmatpush3.bf16.msra.mxu1 %v4695_v17  ;;  %952 = vmatprep.mubr.f32.mxu1 %v4315_v58 }
 0x642   :  { %3969 = vmatprep.subr.bf16.mxu1 %v4313_v54 }
 0x643   :  { %v877_v19 = vpop.permute.xlu0 %876 }
 0x644   :  { %3521 = vmatmul.mubr.msk.f32.gmra.mrb[4].mxu1 %vm123_vm3, %v877_v19 }
 0x645   :  { %3971 = vmatpush3.bf16.msra.mxu1 %v4706_v1  ;;  %3736 = vmatprep.mubr.msk.f32.mxu1 %vm4314_vm4, %v4315_v58 }
 0x646   :  { %3978 = vmatprep.subr.bf16.mxu1 %v4313_v54 }
 0x648   :  { %3737 = vmatmul.mubr.f32.vlgmr.msra.gmra.mrb[6].mxu1 %v4315_v58 }
 0x649   :  { %3980 = vmatpush3.bf16.msra.mxu1 %v4695_v17  ;;  %3758 = vmatprep.mubr.msk.f32.mxu1 %vm4314_vm4, %v4315_v58 }
 0x64a   :  { %3981 = vmatprep.subr.bf16.mxu1 %v4313_v54 }
 0x64d   :  { %3983 = vmatpush3.bf16.msra.mxu1 %v4706_v1 }
 0x64e   :  { %3990 = vmatprep.subr.bf16.mxu1 %v4313_v54 }
 0x713   :  { %v948_v24 = vpop.f32.mrb[2].mxu1 }
 0x714   :  { %v950_v27 = vpop.f32.mrb[3].mxu1  ;;  %v4729_v34 = vadd.f32 %v948_v24, %v865_v30 }
 0x715   :  { %v4725_v29 = vadd.f32 %v950_v27, %v869_v2 }
 0x717   :  { %v1190_v31 = vadd.f32 %v1186_v25, %v4725_v29  ;;  %v954_v32 = vpop.f32.mrb[4].mxu1 }
 0x718   :  { %v956_v33 = vpop.f32.mrb[5].mxu1  ;;  %v4731_v36 = vadd.f32 %v954_v32, %v865_v30 }
 0x719   :  { %4120 = vtanh.f32 %v1190_v31  ;;  %v4734_v42 = vadd.f32 %v956_v33, %v869_v2  ;;  %v1192_v50 = vmul.f32 0.5, %v1190_v31 }
 0x71b   :  { %v1061_v35 = vpop.f32.mrb[6].mxu1  ;;  %v1191_v40 = vadd.f32 %v1187_v41, %v4734_v42 }
 0x71c   :  { %v1066_v37 = vrot.slane %v1061_v35, 1  ;;  %v1069_v38 = vadd.f32 %v1061_v35, %v4729_v34  ;;  %v3738_v39 = vpop.f32.mrb[7].mxu1 }
 0x71d   :  { %v1193_v53 = vmul.f32 0.5, %v1191_v40 }
 0x71e   :  { %v1070_v43 = vadd.f32 %v1066_v37, %v4731_v36  ;;  %4122 = vtanh.f32 %v1069_v38  ;;  %v1071_v51 = vmul.f32 0.5, %v1069_v38 }
 0x720   :  { %4124 = vtanh.f32 %v1070_v43  ;;  %v1072_v52 = vmul.f32 0.5, %v1070_v43 }
 0x721   :  { %4126 = vtanh.f32 %v1191_v40 }
 0x722   :  { %4128 = vtanh.f32 %v1192_v50 }
 0x723   :  { %v4121_v45 = vpop.eup %4120  ;;  %4130 = vtanh.f32 %v1071_v51 }
 0x724   :  { %1206 = vrot.lane.b32.xlu0 %v4121_v45, %s4319_s14  ;;  %4132 = vtanh.f32 %v1072_v52 }
 0x725   :  { %4134 = vtanh.f32 %v1193_v53 }
 0x728   :  { %v4123_v46 = vpop.eup %4122 }
 0x729   :  { %1085 = vrot.lane.b32.xlu0 %v4123_v46, %s4319_s14 }
 0x72a   :  { %v4125_v47 = vpop.eup %4124 }
 0x72b   :  { %1087 = vrot.lane.b32.xlu1 %v4125_v47, %s4319_s14  ;;  %v4127_v49 = vpop.eup %4126 }
 0x72c   :  { %v4129_v55 = vpop.eup %4128 }
 0x72d   :  { %v1196_v56 = vadd.f32 1.0, %v4129_v55  ;;  %v4131_v57 = vpop.eup %4130 }
 0x72e   :  { %v4133_v60 = vpop.eup %4132  ;;  %v1075_v63 = vadd.f32 1.0, %v4131_v57 }
 0x72f   :  { %1208 = vrot.lane.b32.xlu1 %v4127_v49, %s4319_s14  ;;  %v1198_v59 = vmul.f32 0.5, %v1196_v56  ;;  %v1076_v3 = vadd.f32 1.0, %v4133_v60  ;;  %v4135_v4 = vpop.eup %4134 }
 0x730   :  { %v1077_v5 = vmul.f32 0.5, %v1075_v63  ;;  %v1197_v9 = vadd.f32 1.0, %v4135_v4 }
 0x731   :  { %v1078_v8 = vmul.f32 0.5, %v1076_v3  ;;  %v1202_v44 = vmul.f32 0.0, %v1198_v59 }
 0x732   :  { %v1199_v13 = vmul.f32 0.5, %v1197_v9  ;;  %v1081_v19 = vmul.f32 0.0, %v1077_v5 }
 0x733   :  { %v1082_v22 = vmul.f32 0.0, %v1078_v8 }
 0x734   :  { %v1203_v24 = vmul.f32 0.0, %v1199_v13 }
 0x796   :  { %v1207_v62 = vpop.permute.xlu0 %1206 }
 0x797   :  { %v1212_v0 = vmul.f32 %v1207_v62, %v1198_v59 }
 0x799   :  { %1216 = vrot.lane.b32.xlu0 %v1212_v0, %s4319_s14 }
 0x79b   :  { %v1086_v6 = vpop.permute.xlu0 %1085 }
 0x79c   :  { %v1091_v7 = vmul.f32 %v1086_v6, %v1077_v5 }
 0x79d   :  { %v1088_v11 = vpop.permute.xlu1 %1087 }
 0x79e   :  { %1095 = vrot.lane.b32.xlu0 %v1091_v7, %s4319_s14  ;;  %v1092_v28 = vmul.f32 %v1088_v11, %v1078_v8 }
 0x7a0   :  { %1097 = vrot.lane.b32.xlu1 %v1092_v28, %s4319_s14 }
 0x7a1   :  { %v1209_v14 = vpop.permute.xlu1 %1208 }
 0x7a2   :  { %972 = vperm.xlu0 %4092, %v3522_v12   ;;  %v1213_v15 = vmul.f32 %v1209_v14, %v1199_v13 }
 0x7a4   :  { %1218 = vrot.lane.b32.xlu1 %v1213_v15, %s4319_s14 }
 0x7a8   :  { %975 = vperm.xlu1 %4093, %v3523_v16  }
 0x80b   :  { %v1217_v48 = vpop.permute.xlu0 %1216 }
 0x80c   :  { %v4752_v18 = vadd.f32 %v1217_v48, %v1202_v44 }
 0x80e   :  { %4136 = vtanh.f32 %v4752_v18 }
 0x810   :  { %v1096_v20 = vpop.permute.xlu0 %1095 }
 0x811   :  { %v4755_v21 = vadd.f32 %v1096_v20, %v1081_v19 }
 0x812   :  { %v1098_v23 = vpop.permute.xlu1 %1097 }
 0x813   :  { %4138 = vtanh.f32 %v4755_v21  ;;  %v4758_v2 = vadd.f32 %v1098_v23, %v1082_v22 }
 0x815   :  { %4140 = vtanh.f32 %v4758_v2 }
 0x816   :  { %v1219_v25 = vpop.permute.xlu1 %1218 }
 0x817   :  { %v4761_v30 = vadd.f32 %v1219_v25, %v1203_v24 }
 0x818   :  { %v4137_v27 = vpop.eup %4136 }
 0x819   :  { %1228 = vrot.lane.b32.xlu0 %v4137_v27, %s4319_s14  ;;  %4142 = vtanh.f32 %v4761_v30 }
 0x81d   :  { %v4139_v31 = vpop.eup %4138 }
 0x81e   :  { %1107 = vrot.lane.b32.xlu0 %v4139_v31, %s4319_s14 }
 0x81f   :  { %v4141_v32 = vpop.eup %4140 }
 0x820   :  { %1109 = vrot.lane.b32.xlu1 %v4141_v32, %s4319_s14 }
 0x821   :  { %v973_v35 = vpop.permute.xlu0 %972 }
 0x822   :  { %vm977_vm8 = vcmp.lt.s32.totalorder %v4509_v26, %v973_v35 }
 0x823   :  { %v4143_v33 = vpop.eup %4142  ;;  %v4777_v49 = vsel %vm977_vm8, 1.0, %v4315_v58  ;;  %vm3328_vm8 = vcmask 261127  }
 0x824   :  { %1230 = vrot.lane.b32.xlu1 %v4143_v33, %s4319_s14 }
 0x827   :  { %v976_v38 = vpop.permute.xlu1 %975 }
 0x828   :  { %vm978_vm7 = vcmp.lt.s32.totalorder %v4509_v26, %v976_v38 }
 0x829   :  { %v4771_v46 = vsel %vm978_vm7, 1.0, %v4315_v58  ;;  %vm3047_vm7 = vcmask 517377  }
 0x88b   :  { %v1229_v37 = vpop.permute.xlu0 %1228 }
 0x88c   :  { %v1234_v43 = vmul.f32 %v1229_v37, %v1198_v59 }
 0x88e   :  { %v4780_v51 = vmul.f32 %v4777_v49, %v1234_v43 }
 0x890   :  { %v1108_v39 = vpop.permute.xlu0 %1107  ;;  %v1398_v57 = vrot.slane %v4780_v51, 7 }
 0x891   :  { %v1113_v40 = vmul.f32 %v1108_v39, %v1077_v5 }
 0x892   :  { %v1110_v41 = vpop.permute.xlu1 %1109 }
 0x893   :  { %v1114_v45 = vmul.f32 %v1110_v41, %v1078_v8  ;;  %v4783_v52 = vmul.f32 %v4777_v49, %v1113_v40 }
 0x895   :  { %v4774_v47 = vmul.f32 %v4771_v46, %v1114_v45 }
 0x896   :  { %v1231_v50 = vpop.permute.xlu1 %1230 }
 0x897   :  { %v1266_v26 = vrot.slane %v4774_v47, 7  ;;  %v1235_v53 = vmul.f32 %v1231_v50, %v1199_v13 }
 0x899   :  { %v4787_v55 = vmul.f32 %v4771_v46, %v1235_v53  ;;  %v1267_v56 = vsel %vm243_vm5, %v1266_v26, %v4783_v52 }
 0x89a   :  { %1268 = vrot.lane.b32.xlu1 %v1267_v56, %s4317_s12 }
 0x89b   :  { %v1399_v59 = vrot.slane %v4787_v55, 6 }
 0x89d   :  { %v1400_v60 = vsel %vm243_vm5, %v1399_v59, %v1398_v57  ;;  %v1238_v57 = vmul.f32 %v4777_v49, %v4755_v21  ;;  %v1242_v59 = vmul.f32 %v4777_v49, %v4752_v18 }
 0x89e   :  { %1401 = vrot.lane.b32.xlu0 %v1400_v60, %s4317_s12 }
 0x89f   :  { %v1360_v60 = vrot.slane %v1238_v57, 7 }
 0x90c   :  { %v1269_v62 = vpop.permute.xlu1 %1268 }
 0x90d   :  { %3759 = vmatmul.mubr.msk.f32.vlgmr.msra.gmra.mrb[8].mxu1 %vm123_vm3, %v1269_v62  ;;  %v1243_v62 = vmul.f32 %v4771_v46, %v4761_v30 }
 0x90e   :  { %3992 = vmatpush3.bf16.msra.mxu1 %v4695_v17  ;;  %3780 = vmatprep.mubr.msk.f32.mxu1 %vm4314_vm4, %v4315_v58 }
 0x90f   :  { %3993 = vmatprep.subr.bf16.mxu1 %v4313_v54 }
 0x910   :  { %v1402_v63 = vpop.permute.xlu0 %1401 }
 0x911   :  { %3770 = vmatmul.mubr.msk.f32.vlgmr.msra.gmra.mrb[10].mxu0 %vm123_vm3, %v1402_v63 }
 0x912   :  { %3998 = vmatpush3.bf16.msra.mxu0 %v4646_v61  ;;  %3995 = vmatpush3.bf16.msra.mxu1 %v4706_v1 }
 0x913   :  { %3999 = vmatprep.subr.bf16.mxu0 %v4313_v54  ;;  %3791 = vmatprep.mubr.msk.f32.mxu0 %vm4314_vm4, %v4315_v58 }
 0x914   :  { %4002 = vmatprep.subr.bf16.mxu1 %v4313_v54 }
 0x916   :  { %4001 = vmatpush3.bf16.msra.mxu0 %v4670_v10 }
 0x917   :  { %4008 = vmatprep.subr.bf16.mxu0 %v4313_v54 }
 0x9e0   :  { %v1338_v0 = vpop.f32.mrb[8].mxu1 }
 0x9e1   :  { %v1343_v3 = vrot.slane %v1338_v0, 7  ;;  %v3760_v4 = vpop.f32.mrb[9].mxu1  ;;  %v1347_v12 = vadd.f32 %v1338_v0, %v4731_v36 }
 0x9e2   :  { %v1239_v4 = vmul.f32 %v4771_v46, %v4758_v2 }
 0x9e3   :  { %v1346_v5 = vadd.f32 %v1343_v3, %v4729_v34  ;;  %v1349_v20 = vmul.f32 0.5, %v1347_v12  ;;  %v1494_v3 = vrot.slane %v1242_v59, 1 }
 0x9e4   :  { %v1471_v6 = vpop.f32.mrb[10].mxu0 }
 0x9e5   :  { %v1476_v7 = vrot.slane %v1471_v6, 2  ;;  %v1477_v8 = vrot.slane %v1471_v6, 3  ;;  %v3771_v9 = vpop.f32.mrb[11].mxu0  ;;  %4144 = vtanh.f32 %v1346_v5  ;;  %v1348_v44 = vmul.f32 0.5, %v1346_v5 }
 0x9e6   :  { %v1495_v6 = vrot.slane %v1243_v62, 1 }
 0x9e7   :  { %v1480_v11 = vadd.f32 %v1476_v7, %v4725_v29  ;;  %v1481_v28 = vadd.f32 %v1477_v8, %v4734_v42 }
 0x9e9   :  { %4146 = vtanh.f32 %v1480_v11  ;;  %v1482_v48 = vmul.f32 0.5, %v1480_v11  ;;  %v1483_v19 = vmul.f32 0.5, %v1481_v28  ;;  %v1361_v11 = vrot.slane %v1239_v4, 7 }
 0x9ea   :  { %4148 = vtanh.f32 %v1481_v28 }
 0x9eb   :  { %4150 = vtanh.f32 %v1347_v12 }
 0x9ec   :  { %4152 = vtanh.f32 %v1348_v44 }
 0x9ed   :  { %4154 = vtanh.f32 %v1482_v48 }
 0x9ee   :  { %4156 = vtanh.f32 %v1483_v19 }
 0x9ef   :  { %v4145_v13 = vpop.eup %4144  ;;  %4158 = vtanh.f32 %v1349_v20 }
 0x9f0   :  { %1368 = vrot.lane.b32.xlu1 %v4145_v13, %s4319_s14 }
 0x9f3   :  { %v4147_v14 = vpop.eup %4146 }
 0x9f4   :  { %v4149_v15 = vpop.eup %4148  ;;  %1502 = vrot.lane.b32.xlu0 %v4147_v14, %s4319_s14 }
 0x9f5   :  { %1504 = vrot.lane.b32.xlu1 %v4149_v15, %s4319_s14  ;;  %v4151_v16 = vpop.eup %4150 }
 0x9f6   :  { %v4153_v22 = vpop.eup %4152 }
 0x9f7   :  { %v4155_v23 = vpop.eup %4154  ;;  %v1352_v24 = vadd.f32 1.0, %v4153_v22 }
 0x9f8   :  { %1370 = vrot.lane.b32.xlu0 %v4151_v16, %s4319_s14  ;;  %v4157_v25 = vpop.eup %4156  ;;  %v1486_v27 = vadd.f32 1.0, %v4155_v23 }
 0x9f9   :  { %v4159_v31 = vpop.eup %4158  ;;  %v1354_v32 = vmul.f32 0.5, %v1352_v24  ;;  %v1487_v33 = vadd.f32 1.0, %v4157_v25 }
 0x9fa   :  { %v1488_v38 = vmul.f32 0.5, %v1486_v27  ;;  %v1353_v39 = vadd.f32 1.0, %v4159_v31 }
 0x9fb   :  { %v1489_v41 = vmul.f32 0.5, %v1487_v33  ;;  %v1364_v63 = vmul.f32 %v1360_v60, %v1354_v32 }
 0x9fc   :  { %v1355_v26 = vmul.f32 0.5, %v1353_v39  ;;  %v1498_v7 = vmul.f32 %v1494_v3, %v1488_v38 }
 0x9fd   :  { %v1499_v21 = vmul.f32 %v1495_v6, %v1489_v41 }
 0x9fe   :  { %v1365_v30 = vmul.f32 %v1361_v11, %v1355_v26 }
 0xa62   :  { %v1369_v35 = vpop.permute.xlu1 %1368 }
 0xa63   :  { %v1374_v37 = vmul.f32 %v1369_v35, %v1354_v32 }
 0xa65   :  { %1378 = vrot.lane.b32.xlu1 %v1374_v37, %s4319_s14 }
 0xa66   :  { %v1503_v43 = vpop.permute.xlu0 %1502 }
 0xa67   :  { %v1505_v40 = vpop.permute.xlu1 %1504  ;;  %v1508_v45 = vmul.f32 %v1503_v43, %v1488_v38 }
 0xa68   :  { %v1509_v50 = vmul.f32 %v1505_v40, %v1489_v41 }
 0xa69   :  { %1512 = vrot.lane.b32.xlu0 %v1508_v45, %s4319_s14 }
 0xa6a   :  { %1514 = vrot.lane.b32.xlu1 %v1509_v50, %s4319_s14  ;;  %v1371_v53 = vpop.permute.xlu0 %1370 }
 0xa6b   :  { %v1375_v56 = vmul.f32 %v1371_v53, %v1355_v26 }
 0xa6d   :  { %1380 = vrot.lane.b32.xlu0 %v1375_v56, %s4319_s14 }
 0xad7   :  { %v1379_v0 = vpop.permute.xlu1 %1378 }
 0xad8   :  { %v4830_v5 = vadd.f32 %v1379_v0, %v1364_v63 }
 0xada   :  { %4160 = vtanh.f32 %v4830_v5 }
 0xadb   :  { %v1513_v8 = vpop.permute.xlu0 %1512 }
 0xadc   :  { %v1515_v9 = vpop.permute.xlu1 %1514  ;;  %v4833_v18 = vadd.f32 %v1513_v8, %v1498_v7 }
 0xadd   :  { %v4835_v28 = vadd.f32 %v1515_v9, %v1499_v21 }
 0xade   :  { %4162 = vtanh.f32 %v4833_v18 }
 0xadf   :  { %4164 = vtanh.f32 %v4835_v28  ;;  %v1381_v2 = vpop.permute.xlu0 %1380 }
 0xae0   :  { %v4839_v12 = vadd.f32 %v1381_v2, %v1365_v30 }
 0xae2   :  { %4166 = vtanh.f32 %v4839_v12 }
 0xae4   :  { %v4161_v13 = vpop.eup %4160 }
 0xae5   :  { %1390 = vrot.lane.b32.xlu1 %v4161_v13, %s4319_s14 }
 0xae8   :  { %v4163_v14 = vpop.eup %4162 }
 0xae9   :  { %v4165_v15 = vpop.eup %4164  ;;  %1524 = vrot.lane.b32.xlu0 %v4163_v14, %s4319_s14 }
 0xaea   :  { %1526 = vrot.lane.b32.xlu1 %v4165_v15, %s4319_s14 }
 0xaec   :  { %v4167_v16 = vpop.eup %4166 }
 0xaed   :  { %1392 = vrot.lane.b32.xlu0 %v4167_v16, %s4319_s14 }
 0xb57   :  { %v1391_v44 = vpop.permute.xlu1 %1390 }
 0xb58   :  { %v1396_v48 = vmul.f32 %v1391_v44, %v1354_v32 }
 0xb5a   :  { %v4847_v24 = vmul.f32 %v4777_v49, %v1396_v48 }
 0xb5b   :  { %v1525_v19 = vpop.permute.xlu0 %1524 }
 0xb5c   :  { %v1527_v20 = vpop.permute.xlu1 %1526  ;;  %v1530_v22 = vmul.f32 %v1525_v19, %v1488_v38  ;;  %v1562_v32 = vrot.slane %v4847_v24, 1 }
 0xb5d   :  { %v1531_v23 = vmul.f32 %v1527_v20, %v1489_v41 }
 0xb5e   :  { %v4850_v25 = vmul.f32 %v4777_v49, %v1530_v22 }
 0xb5f   :  { %v4853_v27 = vmul.f32 %v4771_v46, %v1531_v23  ;;  %v1393_v31 = vpop.permute.xlu0 %1392 }
 0xb60   :  { %v1695_v33 = vrot.slane %v4850_v25, 6  ;;  %v1397_v35 = vmul.f32 %v1393_v31, %v1355_v26 }
 0xb61   :  { %v1696_v37 = vrot.slane %v4853_v27, 5 }
 0xb62   :  { %v4859_v38 = vmul.f32 %v4771_v46, %v1397_v35 }
 0xb63   :  { %v1697_v39 = vsel %vm243_vm5, %v1696_v37, %v1695_v33 }
 0xb64   :  { %1698 = vrot.lane.b32.xlu0 %v1697_v39, %s4317_s12  ;;  %v1563_v41 = vsel %vm243_vm5, %v4859_v38, %v1562_v32 }
 0xb65   :  { %1564 = vrot.lane.b32.xlu1 %v1563_v41, %s4317_s12 }
 0xbd6   :  { %v1699_v43 = vpop.permute.xlu0 %1698 }
 0xbd7   :  { %3792 = vmatmul.mubr.msk.f32.vlgmr.msra.gmra.mrb[12].mxu0 %vm123_vm3, %v1699_v43  ;;  %v1565_v40 = vpop.permute.xlu1 %1564 }
 0xbd8   :  { %3781 = vmatmul.mubr.msk.f32.vlgmr.msra.gmra.mrb[10].mxu1 %vm123_vm3, %v1565_v40  ;;  %4010 = vmatpush3.bf16.msra.mxu0 %v4646_v61 }
 0xbd9   :  { %4004 = vmatpush3.bf16.msra.mxu1 %v4695_v17  ;;  %3802 = vmatprep.mubr.msk.f32.mxu1 %vm4314_vm4, %v4315_v58 }
 0xbda   :  { %4005 = vmatprep.subr.bf16.mxu1 %v4313_v54  ;;  %4011 = vmatprep.subr.bf16.mxu0 %v4313_v54 }
 0xbdb   :  { %3813 = vmatprep.mubr.msk.f32.mxu0 %vm4314_vm4, %v4315_v58 }
 0xbdc   :  { %4013 = vmatpush3.bf16.msra.mxu0 %v4670_v10 }
 0xbdd   :  { %4007 = vmatpush3.bf16.msra.mxu1 %v4706_v1  ;;  %4020 = vmatprep.subr.bf16.mxu0 %v4313_v54 }
 0xbde   :  { %4014 = vmatprep.subr.bf16.mxu1 %v4313_v54 }
 0xcaa   :  { %v1768_v45 = vpop.f32.mrb[12].mxu0 }
 0xcab   :  { %v3793_v50 = vpop.f32.mrb[13].mxu0  ;;  %v1634_v26 = vpop.f32.mrb[10].mxu1  ;;  %v1773_v59 = vrot.slane %v1768_v45, 3  ;;  %v1774_v62 = vrot.slane %v1768_v45, 4  ;;  %v1534_v45 = vmul.f32 %v4777_v49, %v4830_v5 }
 0xcac   :  { %v3782_v53 = vpop.f32.mrb[11].mxu1  ;;  %v1639_v56 = vrot.slane %v1634_v26, 6  ;;  %v1640_v57 = vrot.slane %v1634_v26, 7  ;;  %v1535_v50 = vmul.f32 %v4771_v46, %v4839_v12 }
 0xcad   :  { %v1777_v0 = vadd.f32 %v1773_v59, %v4725_v29  ;;  %v1778_v3 = vadd.f32 %v1774_v62, %v4734_v42  ;;  %v1657_v26 = vrot.slane %v1534_v45, 7  ;;  %v1538_v53 = vmul.f32 %v4777_v49, %v4833_v18 }
 0xcae   :  { %v1643_v60 = vadd.f32 %v1639_v56, %v4729_v34  ;;  %v1644_v63 = vadd.f32 %v1640_v57, %v4731_v36  ;;  %v1539_v56 = vmul.f32 %v4771_v46, %v4835_v28  ;;  %v1658_v57 = vrot.slane %v1535_v50, 7 }
 0xcaf   :  { %v1779_v11 = vmul.f32 0.5, %v1777_v0  ;;  %v1780_v30 = vmul.f32 0.5, %v1778_v3 }
 0xcb0   :  { %4168 = vtanh.f32 %v1643_v60  ;;  %v1645_v8 = vmul.f32 0.5, %v1643_v60  ;;  %v1646_v9 = vmul.f32 0.5, %v1644_v63 }
 0xcb1   :  { %4170 = vtanh.f32 %v1644_v63  ;;  %v1791_v63 = vrot.slane %v1538_v53, 1 }
 0xcb2   :  { %4172 = vtanh.f32 %v1777_v0 }
 0xcb3   :  { %4174 = vtanh.f32 %v1778_v3 }
 0xcb4   :  { %4176 = vtanh.f32 %v1645_v8 }
 0xcb5   :  { %4178 = vtanh.f32 %v1646_v9 }
 0xcb6   :  { %4180 = vtanh.f32 %v1779_v11 }
 0xcb7   :  { %4182 = vtanh.f32 %v1780_v30 }
 0xcba   :  { %v4169_v4 = vpop.eup %4168 }
 0xcbb   :  { %v4171_v6 = vpop.eup %4170  ;;  %1665 = vrot.lane.b32.xlu1 %v4169_v4, %s4319_s14  ;;  %v1792_v4 = vrot.slane %v1539_v56, 1 }
 0xcbc   :  { %1667 = vrot.lane.b32.xlu0 %v4171_v6, %s4319_s14  ;;  %v4173_v7 = vpop.eup %4172 }
 0xcbd   :  { %v4175_v21 = vpop.eup %4174 }
 0xcbe   :  { %v4177_v2 = vpop.eup %4176 }
 0xcbf   :  { %1799 = vrot.lane.b32.xlu1 %v4173_v7, %s4319_s14  ;;  %v4179_v13 = vpop.eup %4178  ;;  %v1649_v14 = vadd.f32 1.0, %v4177_v2 }
 0xcc0   :  { %1801 = vrot.lane.b32.xlu0 %v4175_v21, %s4319_s14  ;;  %v4181_v15 = vpop.eup %4180  ;;  %v1650_v16 = vadd.f32 1.0, %v4179_v13 }
 0xcc1   :  { %v4183_v44 = vpop.eup %4182  ;;  %v1651_v48 = vmul.f32 0.5, %v1649_v14  ;;  %v1783_v19 = vadd.f32 1.0, %v4181_v15 }
 0xcc2   :  { %v1652_v22 = vmul.f32 0.5, %v1650_v16  ;;  %v1784_v23 = vadd.f32 1.0, %v4183_v44 }
 0xcc3   :  { %v1785_v37 = vmul.f32 0.5, %v1783_v19  ;;  %v1661_v59 = vmul.f32 %v1657_v26, %v1651_v48 }
 0xcc4   :  { %v1786_v32 = vmul.f32 0.5, %v1784_v23  ;;  %v1662_v60 = vmul.f32 %v1658_v57, %v1652_v22 }
 0xcc5   :  { %v1795_v12 = vmul.f32 %v1791_v63, %v1785_v37 }
 0xcc6   :  { %v1796_v18 = vmul.f32 %v1792_v4, %v1786_v32 }
 0xd2d   :  { %v1666_v20 = vpop.permute.xlu1 %1665 }
 0xd2e   :  { %v1671_v31 = vmul.f32 %v1666_v20, %v1651_v48  ;;  %v1668_v33 = vpop.permute.xlu0 %1667 }
 0xd2f   :  { %v1672_v35 = vmul.f32 %v1668_v33, %v1652_v22 }
 0xd30   :  { %1675 = vrot.lane.b32.xlu1 %v1671_v31, %s4319_s14 }
 0xd31   :  { %1677 = vrot.lane.b32.xlu0 %v1672_v35, %s4319_s14  ;;  %v1800_v39 = vpop.permute.xlu1 %1799 }
 0xd32   :  { %v1802_v41 = vpop.permute.xlu0 %1801  ;;  %v1805_v43 = vmul.f32 %v1800_v39, %v1785_v37 }
 0xd33   :  { %v1806_v40 = vmul.f32 %v1802_v41, %v1786_v32 }
 0xd34   :  { %1809 = vrot.lane.b32.xlu1 %v1805_v43, %s4319_s14 }
 0xd35   :  { %1811 = vrot.lane.b32.xlu0 %v1806_v40, %s4319_s14 }
 0xda2   :  { %v1676_v62 = vpop.permute.xlu1 %1675 }
 0xda3   :  { %v1678_v0 = vpop.permute.xlu0 %1677  ;;  %v4900_v3 = vadd.f32 %v1676_v62, %v1661_v59 }
 0xda4   :  { %v4902_v5 = vadd.f32 %v1678_v0, %v1662_v60 }
 0xda5   :  { %4184 = vtanh.f32 %v4900_v3 }
 0xda6   :  { %4186 = vtanh.f32 %v4902_v5  ;;  %v1810_v6 = vpop.permute.xlu1 %1809 }
 0xda7   :  { %v1812_v7 = vpop.permute.xlu0 %1811  ;;  %v4906_v28 = vadd.f32 %v1810_v6, %v1795_v12 }
 0xda8   :  { %v4908_v21 = vadd.f32 %v1812_v7, %v1796_v18 }
 0xda9   :  { %4188 = vtanh.f32 %v4906_v28 }
 0xdaa   :  { %4190 = vtanh.f32 %v4908_v21 }
 0xdaf   :  { %v4185_v8 = vpop.eup %4184 }
 0xdb0   :  { %v4187_v9 = vpop.eup %4186  ;;  %1687 = vrot.lane.b32.xlu1 %v4185_v8, %s4319_s14 }
 0xdb1   :  { %1689 = vrot.lane.b32.xlu0 %v4187_v9, %s4319_s14 }
 0xdb3   :  { %v4189_v11 = vpop.eup %4188 }
 0xdb4   :  { %v4191_v30 = vpop.eup %4190  ;;  %1821 = vrot.lane.b32.xlu1 %v4189_v11, %s4319_s14 }
 0xdb5   :  { %1823 = vrot.lane.b32.xlu0 %v4191_v30, %s4319_s14 }
 0xe22   :  { %v1688_v2 = vpop.permute.xlu1 %1687 }
 0xe23   :  { %v1690_v13 = vpop.permute.xlu0 %1689  ;;  %v1693_v14 = vmul.f32 %v1688_v2, %v1651_v48 }
 0xe24   :  { %v1694_v15 = vmul.f32 %v1690_v13, %v1652_v22 }
 0xe25   :  { %v4917_v16 = vmul.f32 %v4777_v49, %v1693_v14 }
 0xe26   :  { %v4920_v44 = vmul.f32 %v4771_v46, %v1694_v15  ;;  %v1822_v19 = vpop.permute.xlu1 %1821 }
 0xe27   :  { %v1859_v20 = vrot.slane %v4917_v16, 2  ;;  %v1824_v23 = vpop.permute.xlu0 %1823  ;;  %v1827_v31 = vmul.f32 %v1822_v19, %v1785_v37 }
 0xe28   :  { %v1860_v33 = vrot.slane %v4920_v44, 1  ;;  %v1828_v35 = vmul.f32 %v1824_v23, %v1786_v32 }
 0xe29   :  { %v4925_v39 = vmul.f32 %v4777_v49, %v1827_v31 }
 0xe2a   :  { %v4928_v48 = vmul.f32 %v4771_v46, %v1828_v35  ;;  %v1861_v22 = vsel %vm243_vm5, %v1860_v33, %v1859_v20 }
 0xe2b   :  { %v1993_v41 = vrot.slane %v4925_v39, 5  ;;  %1862 = vrot.lane.b32.xlu1 %v1861_v22, %s4317_s12 }
 0xe2c   :  { %v1994_v43 = vrot.slane %v4928_v48, 4 }
 0xe2e   :  { %v1995_v40 = vsel %vm243_vm5, %v1994_v43, %v1993_v41 }
 0xe2f   :  { %1996 = vrot.lane.b32.xlu0 %v1995_v40, %s4317_s12 }
 0xe9d   :  { %v1863_v37 = vpop.permute.xlu1 %1862 }
 0xe9e   :  { %3803 = vmatmul.mubr.msk.f32.vlgmr.msra.gmra.mrb[12].mxu1 %vm123_vm3, %v1863_v37 }
 0xe9f   :  { %4016 = vmatpush3.bf16.msra.mxu1 %v4695_v17  ;;  %3824 = vmatprep.mubr.msk.f32.mxu1 %vm4314_vm4, %v4315_v58 }
 0xea0   :  { %4017 = vmatprep.subr.bf16.mxu1 %v4313_v54 }
 0xea1   :  { %v1997_v32 = vpop.permute.xlu0 %1996 }
 0xea2   :  { %3814 = vmatmul.mubr.msk.f32.vlgmr.msra.gmra.mrb[14].mxu0 %vm123_vm3, %v1997_v32 }
 0xea3   :  { %4019 = vmatpush3.bf16.msra.mxu1 %v4706_v1  ;;  %4022 = vmatpush3.bf16.msra.mxu0 %v4646_v61 }
 0xea4   :  { %4023 = vmatprep.subr.bf16.mxu0 %v4313_v54  ;;  %3835 = vmatprep.mubr.msk.f32.mxu0 %vm4314_vm4, %v4315_v58 }
 0xea5   :  { %4026 = vmatprep.subr.bf16.mxu1 %v4313_v54 }
 0xea7   :  { %4025 = vmatpush3.bf16.msra.mxu0 %v4670_v10 }
 0xea8   :  { %4032 = vmatprep.subr.bf16.mxu0 %v4313_v54 }
 0xf71   :  { %v1932_v45 = vpop.f32.mrb[12].mxu1 }
 0xf72   :  { %v1937_v50 = vrot.slane %v1932_v45, 5  ;;  %v1938_v26 = vrot.slane %v1932_v45, 6  ;;  %v3804_v53 = vpop.f32.mrb[13].mxu1 }
 0xf74   :  { %v1941_v56 = vadd.f32 %v1937_v50, %v4729_v34  ;;  %v1942_v57 = vadd.f32 %v1938_v26, %v4731_v36 }
 0xf75   :  { %v2066_v59 = vpop.f32.mrb[14].mxu0 }
 0xf76   :  { %4192 = vtanh.f32 %v1941_v56  ;;  %v2071_v60 = vrot.slane %v2066_v59, 4  ;;  %v3815_v62 = vpop.f32.mrb[15].mxu0  ;;  %v2072_v63 = vrot.slane %v2066_v59, 5  ;;  %v1943_v8 = vmul.f32 0.5, %v1941_v56 }
 0xf77   :  { %4194 = vtanh.f32 %v1942_v57  ;;  %v1944_v9 = vmul.f32 0.5, %v1942_v57  ;;  %v1831_v56 = vmul.f32 %v4777_v49, %v4900_v3  ;;  %v1832_v57 = vmul.f32 %v4771_v46, %v4902_v5 }
 0xf78   :  { %v2075_v0 = vadd.f32 %v2071_v60, %v4725_v29  ;;  %v2076_v4 = vadd.f32 %v2072_v63, %v4734_v42  ;;  %v1835_v60 = vmul.f32 %v4777_v49, %v4906_v28  ;;  %v1836_v63 = vmul.f32 %v4771_v46, %v4908_v21 }
 0xf79   :  { %v1955_v59 = vrot.slane %v1831_v56, 7  ;;  %v1956_v62 = vrot.slane %v1832_v57, 7 }
 0xf7a   :  { %4196 = vtanh.f32 %v2075_v0  ;;  %v2077_v11 = vmul.f32 0.5, %v2075_v0  ;;  %v2078_v30 = vmul.f32 0.5, %v2076_v4 }
 0xf7b   :  { %4198 = vtanh.f32 %v2076_v4 }
 0xf7c   :  { %4200 = vtanh.f32 %v1943_v8  ;;  %v2090_v8 = vrot.slane %v1836_v63, 1 }
 0xf7d   :  { %4202 = vtanh.f32 %v1944_v9 }
 0xf7e   :  { %4204 = vtanh.f32 %v2077_v11 }
 0xf7f   :  { %4206 = vtanh.f32 %v2078_v30 }
 0xf80   :  { %v4193_v12 = vpop.eup %4192 }
 0xf81   :  { %v4195_v18 = vpop.eup %4194  ;;  %1963 = vrot.lane.b32.xlu1 %v4193_v12, %s4319_s14 }
 0xf82   :  { %1965 = vrot.lane.b32.xlu0 %v4195_v18, %s4319_s14  ;;  %v2089_v18 = vrot.slane %v1835_v60, 1 }
 0xf84   :  { %v4197_v6 = vpop.eup %4196 }
 0xf85   :  { %v4199_v7 = vpop.eup %4198  ;;  %2097 = vrot.lane.b32.xlu1 %v4197_v6, %s4319_s14 }
 0xf86   :  { %2099 = vrot.lane.b32.xlu0 %v4199_v7, %s4319_s14  ;;  %v4201_v2 = vpop.eup %4200 }
 0xf87   :  { %v4203_v13 = vpop.eup %4202  ;;  %v1947_v14 = vadd.f32 1.0, %v4201_v2 }
 0xf88   :  { %v4205_v15 = vpop.eup %4204  ;;  %v1948_v19 = vadd.f32 1.0, %v4203_v13 }
 0xf89   :  { %v4207_v20 = vpop.eup %4206  ;;  %v1949_v23 = vmul.f32 0.5, %v1947_v14  ;;  %v2081_v31 = vadd.f32 1.0, %v4205_v15 }
 0xf8a   :  { %v1950_v33 = vmul.f32 0.5, %v1948_v19  ;;  %v2082_v22 = vadd.f32 1.0, %v4207_v20 }
 0xf8b   :  { %v2083_v37 = vmul.f32 0.5, %v2081_v31  ;;  %v1959_v0 = vmul.f32 %v1955_v59, %v1949_v23 }
 0xf8c   :  { %v2084_v32 = vmul.f32 0.5, %v2082_v22  ;;  %v1960_v4 = vmul.f32 %v1956_v62, %v1950_v33 }
 0xf8d   :  { %v2093_v5 = vmul.f32 %v2089_v18, %v2083_v37 }
 0xf8e   :  { %v2094_v28 = vmul.f32 %v2090_v8, %v2084_v32 }
 0xff3   :  { %v1964_v35 = vpop.permute.xlu1 %1963 }
 0xff4   :  { %v1966_v41 = vpop.permute.xlu0 %1965  ;;  %v1969_v43 = vmul.f32 %v1964_v35, %v1949_v23 }
 0xff5   :  { %v1970_v40 = vmul.f32 %v1966_v41, %v1950_v33 }
 0xff6   :  { %1973 = vrot.lane.b32.xlu1 %v1969_v43, %s4319_s14 }
 0xff7   :  { %1975 = vrot.lane.b32.xlu0 %v1970_v40, %s4319_s14  ;;  %v2098_v45 = vpop.permute.xlu1 %2097 }
 0xff8   :  { %v2100_v50 = vpop.permute.xlu0 %2099  ;;  %v2103_v26 = vmul.f32 %v2098_v45, %v2083_v37 }
 0xff9   :  { %v2104_v53 = vmul.f32 %v2100_v50, %v2084_v32 }
 0xffa   :  { %2107 = vrot.lane.b32.xlu1 %v2103_v26, %s4319_s14 }
 0xffb   :  { %2109 = vrot.lane.b32.xlu0 %v2104_v53, %s4319_s14 }
0x1068   :  { %v1974_v12 = vpop.permute.xlu1 %1973 }
0x1069   :  { %v1976_v6 = vpop.permute.xlu0 %1975  ;;  %v4970_v7 = vadd.f32 %v1974_v12, %v1959_v0 }
0x106a   :  { %v4972_v3 = vadd.f32 %v1976_v6, %v1960_v4 }
0x106b   :  { %4208 = vtanh.f32 %v4970_v7 }
0x106c   :  { %4210 = vtanh.f32 %v4972_v3  ;;  %v2108_v9 = vpop.permute.xlu1 %2107 }
0x106d   :  { %v2110_v11 = vpop.permute.xlu0 %2109  ;;  %v4976_v30 = vadd.f32 %v2108_v9, %v2093_v5 }
0x106e   :  { %v4978_v21 = vadd.f32 %v2110_v11, %v2094_v28 }
0x106f   :  { %4212 = vtanh.f32 %v4976_v30 }
0x1070   :  { %4214 = vtanh.f32 %v4978_v21 }
0x1075   :  { %v4209_v2 = vpop.eup %4208 }
0x1076   :  { %v4211_v13 = vpop.eup %4210  ;;  %1985 = vrot.lane.b32.xlu1 %v4209_v2, %s4319_s14 }
0x1077   :  { %1987 = vrot.lane.b32.xlu0 %v4211_v13, %s4319_s14 }
0x1079   :  { %v4213_v14 = vpop.eup %4212 }
0x107a   :  { %v4215_v15 = vpop.eup %4214  ;;  %2119 = vrot.lane.b32.xlu1 %v4213_v14, %s4319_s14 }
0x107b   :  { %2121 = vrot.lane.b32.xlu0 %v4215_v15, %s4319_s14 }
0x10e8   :  { %v1986_v19 = vpop.permute.xlu1 %1985 }
0x10e9   :  { %v1988_v20 = vpop.permute.xlu0 %1987  ;;  %v1991_v31 = vmul.f32 %v1986_v19, %v1949_v23 }
0x10ea   :  { %v1992_v35 = vmul.f32 %v1988_v20, %v1950_v33 }
0x10eb   :  { %v4987_v22 = vmul.f32 %v4777_v49, %v1991_v31 }
0x10ec   :  { %v4990_v41 = vmul.f32 %v4771_v46, %v1992_v35  ;;  %v2120_v43 = vpop.permute.xlu1 %2119 }
0x10ed   :  { %v2157_v40 = vrot.slane %v4987_v22, 3  ;;  %v2122_v45 = vpop.permute.xlu0 %2121  ;;  %v2125_v50 = vmul.f32 %v2120_v43, %v2083_v37 }
0x10ee   :  { %v2158_v26 = vrot.slane %v4990_v41, 2  ;;  %v2126_v53 = vmul.f32 %v2122_v45, %v2084_v32 }
0x10ef   :  { %v4995_v56 = vmul.f32 %v4777_v49, %v2125_v50 }
0x10f0   :  { %v4998_v23 = vmul.f32 %v4771_v46, %v2126_v53  ;;  %v2159_v33 = vsel %vm243_vm5, %v2158_v26, %v2157_v40 }
0x10f1   :  { %v2291_v57 = vrot.slane %v4995_v56, 4  ;;  %2160 = vrot.lane.b32.xlu1 %v2159_v33, %s4317_s12 }
0x10f2   :  { %v2292_v59 = vrot.slane %v4998_v23, 3 }
0x10f4   :  { %v2293_v60 = vsel %vm243_vm5, %v2292_v59, %v2291_v57 }
0x10f5   :  { %2294 = vrot.lane.b32.xlu0 %v2293_v60, %s4317_s12 }
0x1163   :  { %v2161_v37 = vpop.permute.xlu1 %2160 }
0x1164   :  { %3825 = vmatmul.mubr.msk.f32.vlgmr.msra.gmra.mrb[14].mxu1 %vm123_vm3, %v2161_v37 }
0x1165   :  { %4028 = vmatpush3.bf16.msra.mxu1 %v4695_v17  ;;  %3846 = vmatprep.mubr.msk.f32.mxu1 %vm4314_vm4, %v4315_v58 }
0x1166   :  { %4029 = vmatprep.subr.bf16.mxu1 %v4313_v54 }
0x1167   :  { %v2295_v32 = vpop.permute.xlu0 %2294 }
0x1168   :  { %3836 = vmatmul.mubr.msk.f32.vlgmr.msra.gmra.mrb[16].mxu0 %vm123_vm3, %v2295_v32 }
0x1169   :  { %4031 = vmatpush3.bf16.msra.mxu1 %v4706_v1  ;;  %4034 = vmatpush3.bf16.msra.mxu0 %v4646_v61 }
0x116a   :  { %4035 = vmatprep.subr.bf16.mxu0 %v4313_v54  ;;  %3857 = vmatprep.mubr.msk.f32.mxu0 %vm4314_vm4, %v4315_v58 }
0x116b   :  { %4038 = vmatprep.subr.bf16.mxu1 %v4313_v54 }
0x116d   :  { %4037 = vmatpush3.bf16.msra.mxu0 %v4670_v10 }
0x116e   :  { %4044 = vmatprep.subr.bf16.mxu0 %v4313_v54 }
0x1237   :  { %v2230_v62 = vpop.f32.mrb[14].mxu1 }
0x1238   :  { %v2235_v63 = vrot.slane %v2230_v62, 4  ;;  %v2236_v0 = vrot.slane %v2230_v62, 5  ;;  %v3826_v4 = vpop.f32.mrb[15].mxu1 }
0x123a   :  { %v2239_v12 = vadd.f32 %v2235_v63, %v4729_v34  ;;  %v2240_v18 = vadd.f32 %v2236_v0, %v4731_v36 }
0x123b   :  { %v2364_v6 = vpop.f32.mrb[16].mxu0 }
0x123c   :  { %4216 = vtanh.f32 %v2239_v12  ;;  %v2369_v8 = vrot.slane %v2364_v6, 5  ;;  %v3837_v5 = vpop.f32.mrb[17].mxu0  ;;  %v2370_v28 = vrot.slane %v2364_v6, 6  ;;  %v2241_v19 = vmul.f32 0.5, %v2239_v12 }
0x123d   :  { %4218 = vtanh.f32 %v2240_v18  ;;  %v2242_v20 = vmul.f32 0.5, %v2240_v18  ;;  %v2129_v5 = vmul.f32 %v4777_v49, %v4970_v7 }
0x123e   :  { %v2373_v9 = vadd.f32 %v2369_v8, %v4725_v29  ;;  %v2374_v11 = vadd.f32 %v2370_v28, %v4734_v42  ;;  %v2130_v28 = vmul.f32 %v4771_v46, %v4972_v3 }
0x1240   :  { %4220 = vtanh.f32 %v2373_v9  ;;  %v2375_v31 = vmul.f32 0.5, %v2373_v9  ;;  %v2376_v35 = vmul.f32 0.5, %v2374_v11  ;;  %v2253_v9 = vrot.slane %v2129_v5, 7 }
0x1241   :  { %4222 = vtanh.f32 %v2374_v11  ;;  %v2133_v11 = vmul.f32 %v4777_v49, %v4976_v30 }
0x1242   :  { %4224 = vtanh.f32 %v2241_v19 }
0x1243   :  { %4226 = vtanh.f32 %v2242_v20  ;;  %v2387_v20 = vrot.slane %v2133_v11, 1 }
0x1244   :  { %4228 = vtanh.f32 %v2375_v31 }
0x1245   :  { %4230 = vtanh.f32 %v2376_v35 }
0x1246   :  { %v4217_v2 = vpop.eup %4216 }
0x1247   :  { %v4219_v13 = vpop.eup %4218  ;;  %2261 = vrot.lane.b32.xlu1 %v4217_v2, %s4319_s14  ;;  %v2254_v2 = vrot.slane %v2130_v28, 7 }
0x1248   :  { %2263 = vrot.lane.b32.xlu0 %v4219_v13, %s4319_s14  ;;  %v2134_v13 = vmul.f32 %v4771_v46, %v4978_v21 }
0x124a   :  { %v4221_v14 = vpop.eup %4220 }
0x124b   :  { %v4223_v15 = vpop.eup %4222  ;;  %2395 = vrot.lane.b32.xlu1 %v4221_v14, %s4319_s14 }
0x124c   :  { %2397 = vrot.lane.b32.xlu0 %v4223_v15, %s4319_s14  ;;  %v4225_v43 = vpop.eup %4224 }
0x124d   :  { %v4227_v40 = vpop.eup %4226  ;;  %v2245_v45 = vadd.f32 1.0, %v4225_v43  ;;  %v2388_v43 = vrot.slane %v2134_v13, 1 }
0x124e   :  { %v4229_v50 = vpop.eup %4228  ;;  %v2246_v26 = vadd.f32 1.0, %v4227_v40 }
0x124f   :  { %v4231_v53 = vpop.eup %4230  ;;  %v2247_v33 = vmul.f32 0.5, %v2245_v45  ;;  %v2379_v57 = vadd.f32 1.0, %v4229_v50 }
0x1250   :  { %v2248_v59 = vmul.f32 0.5, %v2246_v26  ;;  %v2380_v37 = vadd.f32 1.0, %v4231_v53 }
0x1251   :  { %v2381_v0 = vmul.f32 0.5, %v2379_v57  ;;  %v2257_v14 = vmul.f32 %v2253_v9, %v2247_v33 }
0x1252   :  { %v2382_v4 = vmul.f32 0.5, %v2380_v37  ;;  %v2258_v15 = vmul.f32 %v2254_v2, %v2248_v59 }
0x1253   :  { %v2391_v3 = vmul.f32 %v2387_v20, %v2381_v0 }
0x1254   :  { %v2392_v30 = vmul.f32 %v2388_v43, %v2382_v4 }
0x12b9   :  { %v2262_v60 = vpop.permute.xlu1 %2261 }
0x12ba   :  { %v2264_v32 = vpop.permute.xlu0 %2263  ;;  %v2267_v62 = vmul.f32 %v2262_v60, %v2247_v33 }
0x12bb   :  { %v2268_v63 = vmul.f32 %v2264_v32, %v2248_v59 }
0x12bc   :  { %2271 = vrot.lane.b32.xlu1 %v2267_v62, %s4319_s14 }
0x12bd   :  { %2273 = vrot.lane.b32.xlu0 %v2268_v63, %s4319_s14  ;;  %v2396_v12 = vpop.permute.xlu1 %2395 }
0x12be   :  { %v2398_v18 = vpop.permute.xlu0 %2397  ;;  %v2401_v6 = vmul.f32 %v2396_v12, %v2381_v0 }
0x12bf   :  { %v2402_v8 = vmul.f32 %v2398_v18, %v2382_v4 }
0x12c0   :  { %2405 = vrot.lane.b32.xlu1 %v2401_v6, %s4319_s14 }
0x12c1   :  { %2407 = vrot.lane.b32.xlu0 %v2402_v8, %s4319_s14 }
0x132e   :  { %v2272_v19 = vpop.permute.xlu1 %2271 }
0x132f   :  { %v2274_v31 = vpop.permute.xlu0 %2273  ;;  %v5040_v35 = vadd.f32 %v2272_v19, %v2257_v14 }
0x1330   :  { %v5042_v7 = vadd.f32 %v2274_v31, %v2258_v15 }
0x1331   :  { %4232 = vtanh.f32 %v5040_v35 }
0x1332   :  { %4234 = vtanh.f32 %v5042_v7  ;;  %v2406_v40 = vpop.permute.xlu1 %2405 }
0x1333   :  { %v2408_v45 = vpop.permute.xlu0 %2407  ;;  %v5046_v50 = vadd.f32 %v2406_v40, %v2391_v3 }
0x1334   :  { %v5048_v21 = vadd.f32 %v2408_v45, %v2392_v30 }
0x1335   :  { %4236 = vtanh.f32 %v5046_v50 }
0x1336   :  { %4238 = vtanh.f32 %v5048_v21 }
0x133b   :  { %v4233_v26 = vpop.eup %4232 }
0x133c   :  { %v4235_v53 = vpop.eup %4234  ;;  %2283 = vrot.lane.b32.xlu1 %v4233_v26, %s4319_s14 }
0x133d   :  { %2285 = vrot.lane.b32.xlu0 %v4235_v53, %s4319_s14 }
0x133f   :  { %v4237_v57 = vpop.eup %4236 }
0x1340   :  { %v4239_v60 = vpop.eup %4238  ;;  %2417 = vrot.lane.b32.xlu1 %v4237_v57, %s4319_s14 }
0x1341   :  { %2419 = vrot.lane.b32.xlu0 %v4239_v60, %s4319_s14 }
0x13ae   :  { %v2284_v37 = vpop.permute.xlu1 %2283 }
0x13af   :  { %v2286_v32 = vpop.permute.xlu0 %2285  ;;  %v2289_v62 = vmul.f32 %v2284_v37, %v2247_v33 }
0x13b0   :  { %v2290_v63 = vmul.f32 %v2286_v32, %v2248_v59 }
0x13b1   :  { %v5057_v12 = vmul.f32 %v4777_v49, %v2289_v62 }
0x13b2   :  { %v5060_v18 = vmul.f32 %v4771_v46, %v2290_v63  ;;  %v2418_v6 = vpop.permute.xlu1 %2417 }
0x13b3   :  { %v2455_v8 = vrot.slane %v5057_v12, 4  ;;  %v2420_v5 = vpop.permute.xlu0 %2419  ;;  %v2423_v28 = vmul.f32 %v2418_v6, %v2381_v0 }
0x13b4   :  { %v2456_v9 = vrot.slane %v5060_v18, 3  ;;  %v2424_v11 = vmul.f32 %v2420_v5, %v2382_v4 }
0x13b5   :  { %v5065_v2 = vmul.f32 %v4777_v49, %v2423_v28 }
0x13b6   :  { %v5068_v33 = vmul.f32 %v4771_v46, %v2424_v11  ;;  %v2457_v59 = vsel %vm243_vm5, %v2456_v9, %v2455_v8 }
0x13b7   :  { %v2589_v13 = vrot.slane %v5065_v2, 3  ;;  %2458 = vrot.lane.b32.xlu1 %v2457_v59, %s4317_s12 }
0x13b8   :  { %v2590_v14 = vrot.slane %v5068_v33, 2 }
0x13ba   :  { %v2591_v15 = vsel %vm243_vm5, %v2590_v14, %v2589_v13 }
0x13bb   :  { %2592 = vrot.lane.b32.xlu0 %v2591_v15, %s4317_s12 }
0x1429   :  { %v2459_v0 = vpop.permute.xlu1 %2458 }
0x142a   :  { %3847 = vmatmul.mubr.msk.f32.vlgmr.msra.gmra.mrb[16].mxu1 %vm123_vm3, %v2459_v0 }
0x142b   :  { %4040 = vmatpush3.bf16.msra.mxu1 %v4695_v17  ;;  %3868 = vmatprep.mubr.msk.f32.mxu1 %vm4314_vm4, %v4315_v58 }
0x142c   :  { %4041 = vmatprep.subr.bf16.mxu1 %v4313_v54 }
0x142d   :  { %v2593_v4 = vpop.permute.xlu0 %2592 }
0x142e   :  { %3858 = vmatmul.mubr.msk.f32.vlgmr.msra.gmra.mrb[18].mxu0 %vm123_vm3, %v2593_v4 }
0x142f   :  { %4043 = vmatpush3.bf16.msra.mxu1 %v4706_v1  ;;  %4046 = vmatpush3.bf16.msra.mxu0 %v4646_v61 }
0x1430   :  { %4047 = vmatprep.subr.bf16.mxu0 %v4313_v54  ;;  %3879 = vmatprep.mubr.msk.f32.mxu0 %vm4314_vm4, %v4315_v58 }
0x1431   :  { %4050 = vmatprep.subr.bf16.mxu1 %v4313_v54 }
0x1433   :  { %4049 = vmatpush3.bf16.msra.mxu0 %v4670_v10 }
0x1434   :  { %4056 = vmatprep.subr.bf16.mxu0 %v4313_v54 }
0x14fd   :  { %v2528_v19 = vpop.f32.mrb[16].mxu1 }
0x14fe   :  { %v2533_v20 = vrot.slane %v2528_v19, 3  ;;  %v2534_v31 = vrot.slane %v2528_v19, 4  ;;  %v3848_v43 = vpop.f32.mrb[17].mxu1 }
0x1500   :  { %v2537_v3 = vadd.f32 %v2533_v20, %v4729_v34  ;;  %v2538_v30 = vadd.f32 %v2534_v31, %v4731_v36 }
0x1501   :  { %v2662_v40 = vpop.f32.mrb[18].mxu0 }
0x1502   :  { %4240 = vtanh.f32 %v2537_v3  ;;  %v2667_v45 = vrot.slane %v2662_v40, 6  ;;  %v3859_v26 = vpop.f32.mrb[19].mxu0  ;;  %v2668_v53 = vrot.slane %v2662_v40, 7  ;;  %v2539_v6 = vmul.f32 0.5, %v2537_v3 }
0x1503   :  { %4242 = vtanh.f32 %v2538_v30  ;;  %v2540_v8 = vmul.f32 0.5, %v2538_v30 }
0x1504   :  { %v2671_v57 = vadd.f32 %v2667_v45, %v4725_v29  ;;  %v2672_v60 = vadd.f32 %v2668_v53, %v4734_v42 }
0x1506   :  { %4244 = vtanh.f32 %v2671_v57  ;;  %v2673_v5 = vmul.f32 0.5, %v2671_v57  ;;  %v2674_v28 = vmul.f32 0.5, %v2672_v60 }
0x1507   :  { %4246 = vtanh.f32 %v2672_v60 }
0x1508   :  { %4248 = vtanh.f32 %v2539_v6 }
0x1509   :  { %4250 = vtanh.f32 %v2540_v8  ;;  %v2432_v8 = vmul.f32 %v4771_v46, %v5048_v21 }
0x150a   :  { %4252 = vtanh.f32 %v2673_v5 }
0x150b   :  { %4254 = vtanh.f32 %v2674_v28 }
0x150c   :  { %v4241_v37 = vpop.eup %4240 }
0x150d   :  { %v4243_v32 = vpop.eup %4242  ;;  %2559 = vrot.lane.b32.xlu1 %v4241_v37, %s4319_s14  ;;  %v2427_v37 = vmul.f32 %v4777_v49, %v5040_v35 }
0x150e   :  { %2561 = vrot.lane.b32.xlu0 %v4243_v32, %s4319_s14  ;;  %v2428_v32 = vmul.f32 %v4771_v46, %v5042_v7 }
0x1510   :  { %v4245_v62 = vpop.eup %4244  ;;  %v2552_v6 = vrot.slane %v2428_v32, 7 }
0x1511   :  { %v4247_v63 = vpop.eup %4246  ;;  %2693 = vrot.lane.b32.xlu1 %v4245_v62, %s4319_s14  ;;  %v2551_v62 = vrot.slane %v2427_v37, 7 }
0x1512   :  { %2695 = vrot.lane.b32.xlu0 %v4247_v63, %s4319_s14  ;;  %v4249_v9 = vpop.eup %4248  ;;  %v2431_v63 = vmul.f32 %v4777_v49, %v5046_v50 }
0x1513   :  { %v4251_v11 = vpop.eup %4250  ;;  %v2543_v59 = vadd.f32 1.0, %v4249_v9 }
0x1514   :  { %v4253_v13 = vpop.eup %4252  ;;  %v2544_v14 = vadd.f32 1.0, %v4251_v11  ;;  %v2685_v11 = vrot.slane %v2431_v63, 1 }
0x1515   :  { %v4255_v15 = vpop.eup %4254  ;;  %v2545_v0 = vmul.f32 0.5, %v2543_v59  ;;  %v2677_v4 = vadd.f32 1.0, %v4253_v13 }
0x1516   :  { %v2546_v19 = vmul.f32 0.5, %v2544_v14  ;;  %v2678_v31 = vadd.f32 1.0, %v4255_v15  ;;  %v2686_v14 = vrot.slane %v2432_v8, 1 }
0x1517   :  { %v2679_v40 = vmul.f32 0.5, %v2677_v4  ;;  %v2555_v5 = vmul.f32 %v2551_v62, %v2545_v0 }
0x1518   :  { %v2680_v45 = vmul.f32 0.5, %v2678_v31  ;;  %v2556_v28 = vmul.f32 %v2552_v6, %v2546_v19 }
0x1519   :  { %v2689_v7 = vmul.f32 %v2685_v11, %v2679_v40 }
0x151a   :  { %v2690_v50 = vmul.f32 %v2686_v14, %v2680_v45 }
0x157f   :  { %v2560_v20 = vpop.permute.xlu1 %2559 }
0x1580   :  { %v2562_v43 = vpop.permute.xlu0 %2561  ;;  %v2565_v3 = vmul.f32 %v2560_v20, %v2545_v0 }
0x1581   :  { %v2566_v30 = vmul.f32 %v2562_v43, %v2546_v19 }
0x1582   :  { %2569 = vrot.lane.b32.xlu1 %v2565_v3, %s4319_s14 }
0x1583   :  { %2571 = vrot.lane.b32.xlu0 %v2566_v30, %s4319_s14  ;;  %v2694_v26 = vpop.permute.xlu1 %2693 }
0x1584   :  { %v2696_v53 = vpop.permute.xlu0 %2695  ;;  %v2699_v57 = vmul.f32 %v2694_v26, %v2679_v40 }
0x1585   :  { %v2700_v60 = vmul.f32 %v2696_v53, %v2680_v45 }
0x1586   :  { %2703 = vrot.lane.b32.xlu1 %v2699_v57, %s4319_s14 }
0x1587   :  { %2705 = vrot.lane.b32.xlu0 %v2700_v60, %s4319_s14 }
0x15f4   :  { %v2570_v9 = vpop.permute.xlu1 %2569 }
0x15f5   :  { %v2572_v59 = vpop.permute.xlu0 %2571  ;;  %v5110_v13 = vadd.f32 %v2570_v9, %v2555_v5 }
0x15f6   :  { %v5112_v35 = vadd.f32 %v2572_v59, %v2556_v28 }
0x15f7   :  { %4256 = vtanh.f32 %v5110_v13 }
0x15f8   :  { %4258 = vtanh.f32 %v5112_v35  ;;  %v2704_v15 = vpop.permute.xlu1 %2703 }
0x15f9   :  { %v2706_v4 = vpop.permute.xlu0 %2705  ;;  %v5116_v20 = vadd.f32 %v2704_v15, %v2689_v7 }
0x15fa   :  { %v5118_v21 = vadd.f32 %v2706_v4, %v2690_v50 }
0x15fb   :  { %4260 = vtanh.f32 %v5116_v20 }
0x15fc   :  { %4262 = vtanh.f32 %v5118_v21 }
0x1601   :  { %v4257_v31 = vpop.eup %4256 }
0x1602   :  { %v4259_v43 = vpop.eup %4258  ;;  %2581 = vrot.lane.b32.xlu1 %v4257_v31, %s4319_s14 }
0x1603   :  { %2583 = vrot.lane.b32.xlu0 %v4259_v43, %s4319_s14 }
0x1605   :  { %v4261_v3 = vpop.eup %4260 }
0x1606   :  { %v4263_v30 = vpop.eup %4262  ;;  %2715 = vrot.lane.b32.xlu1 %v4261_v3, %s4319_s14 }
0x1607   :  { %2717 = vrot.lane.b32.xlu0 %v4263_v30, %s4319_s14 }
0x1674   :  { %v2582_v26 = vpop.permute.xlu1 %2581 }
0x1675   :  { %v2584_v53 = vpop.permute.xlu0 %2583  ;;  %v2587_v57 = vmul.f32 %v2582_v26, %v2545_v0 }
0x1676   :  { %v2588_v60 = vmul.f32 %v2584_v53, %v2546_v19 }
0x1677   :  { %v5127_v37 = vmul.f32 %v4777_v49, %v2587_v57 }
0x1678   :  { %v5130_v32 = vmul.f32 %v4771_v46, %v2588_v60  ;;  %v2716_v62 = vpop.permute.xlu1 %2715 }
0x1679   :  { %v2753_v63 = vrot.slane %v5127_v37, 5  ;;  %v2718_v6 = vpop.permute.xlu0 %2717  ;;  %v2721_v8 = vmul.f32 %v2716_v62, %v2679_v40 }
0x167a   :  { %v2754_v5 = vrot.slane %v5130_v32, 4  ;;  %v2722_v28 = vmul.f32 %v2718_v6, %v2680_v45 }
0x167b   :  { %v5135_v9 = vmul.f32 %v4777_v49, %v2721_v8 }
0x167c   :  { %v5138_v0 = vmul.f32 %v4771_v46, %v2722_v28  ;;  %v2755_v19 = vsel %vm243_vm5, %v2754_v5, %v2753_v63 }
0x167d   :  { %v2887_v11 = vrot.slane %v5135_v9, 2  ;;  %2756 = vrot.lane.b32.xlu1 %v2755_v19, %s4317_s12 }
0x167e   :  { %v2888_v59 = vrot.slane %v5138_v0, 1 }
0x1680   :  { %v2889_v14 = vsel %vm243_vm5, %v2888_v59, %v2887_v11 }
0x1681   :  { %2890 = vrot.lane.b32.xlu0 %v2889_v14, %s4317_s12 }
0x16ef   :  { %v2757_v40 = vpop.permute.xlu1 %2756 }
0x16f0   :  { %3869 = vmatmul.mubr.msk.f32.vlgmr.msra.gmra.mrb[18].mxu1 %vm123_vm3, %v2757_v40 }
0x16f1   :  { %4052 = vmatpush3.bf16.msra.mxu1 %v4695_v17  ;;  %3890 = vmatprep.mubr.msk.f32.mxu1 %vm4314_vm4, %v4315_v58 }
0x16f2   :  { %4053 = vmatprep.subr.bf16.mxu1 %v4313_v54 }
0x16f3   :  { %v2891_v45 = vpop.permute.xlu0 %2890 }
0x16f4   :  { %3880 = vmatmul.mubr.msk.f32.vlgmr.msra.gmra.mrb[20].mxu0 %vm123_vm3, %v2891_v45 }
0x16f5   :  { %4055 = vmatpush3.bf16.msra.mxu1 %v4706_v1  ;;  %4058 = vmatpush3.bf16.msra.mxu0 %v4646_v61 }
0x16f6   :  { %4059 = vmatprep.subr.bf16.mxu0 %v4313_v54  ;;  %3901 = vmatprep.mubr.msk.f32.mxu0 %vm4314_vm4, %v4315_v58  ;;  %vm2750_vm4 = vcmask 518402  }
0x16f9   :  { %4061 = vmatpush3.bf16.msra.mxu0 %v4670_v10 }
0x17c3   :  { %v2826_v17 = vpop.f32.mrb[18].mxu1 }
0x17c4   :  { %v2831_v7 = vrot.slane %v2826_v17, 2  ;;  %v2832_v50 = vrot.slane %v2826_v17, 3  ;;  %v3870_v15 = vpop.f32.mrb[19].mxu1 }
0x17c6   :  { %v2835_v4 = vadd.f32 %v2831_v7, %v4729_v34  ;;  %v2836_v31 = vadd.f32 %v2832_v50, %v4731_v36 }
0x17c7   :  { %v2960_v43 = vpop.f32.mrb[20].mxu0 }
0x17c8   :  { %4264 = vtanh.f32 %v2835_v4  ;;  %v2965_v1 = vrot.slane %v2960_v43, 7  ;;  %v3881_v3 = vpop.f32.mrb[21].mxu0  ;;  %v2969_v61 = vadd.f32 %v2960_v43, %v4734_v42  ;;  %v2837_v53 = vmul.f32 0.5, %v2835_v4 }
0x17c9   :  { %4266 = vtanh.f32 %v2836_v31  ;;  %v2838_v57 = vmul.f32 0.5, %v2836_v31 }
0x17ca   :  { %v2968_v54 = vadd.f32 %v2965_v1, %v4725_v29  ;;  %v2971_v62 = vmul.f32 0.5, %v2969_v61 }
0x17cc   :  { %4268 = vtanh.f32 %v2968_v54  ;;  %v2970_v60 = vmul.f32 0.5, %v2968_v54  ;;  %v2725_v54 = vmul.f32 %v4777_v49, %v5110_v13 }
0x17cd   :  { %4270 = vtanh.f32 %v2969_v61  ;;  %v2726_v61 = vmul.f32 %v4771_v46, %v5112_v35 }
0x17ce   :  { %4272 = vtanh.f32 %v2837_v53  ;;  %v2730_v53 = vmul.f32 %v4771_v46, %v5118_v21 }
0x17cf   :  { %4274 = vtanh.f32 %v2838_v57 }
0x17d0   :  { %4276 = vtanh.f32 %v2970_v60  ;;  %v2983_v35 = vrot.slane %v2730_v53, 1 }
0x17d1   :  { %4278 = vtanh.f32 %v2971_v62 }
0x17d2   :  { %v4265_v58 = vpop.eup %4264 }
0x17d3   :  { %v4267_v10 = vpop.eup %4266  ;;  %2857 = vrot.lane.b32.xlu1 %v4265_v58, %s4319_s14  ;;  %v2849_v58 = vrot.slane %v2725_v54, 7 }
0x17d4   :  { %2859 = vrot.lane.b32.xlu0 %v4267_v10, %s4319_s14  ;;  %v2729_v10 = vmul.f32 %v4777_v49, %v5116_v20 }
0x17d6   :  { %v4269_v30 = vpop.eup %4268  ;;  %v2982_v62 = vrot.slane %v2729_v10, 1 }
0x17d7   :  { %2990 = vrot.lane.b32.xlu1 %v4269_v30, %s4319_s14  ;;  %v4271_v26 = vpop.eup %4270  ;;  %v2850_v30 = vrot.slane %v2726_v61, 7 }
0x17d8   :  { %2992 = vrot.lane.b32.xlu0 %v4271_v26, %s4319_s14  ;;  %v4273_v63 = vpop.eup %4272 }
0x17d9   :  { %v4275_v6 = vpop.eup %4274  ;;  %v2841_v8 = vadd.f32 1.0, %v4273_v63 }
0x17da   :  { %v4277_v5 = vpop.eup %4276  ;;  %v2842_v28 = vadd.f32 1.0, %v4275_v6 }
0x17db   :  { %v4279_v19 = vpop.eup %4278  ;;  %v2843_v11 = vmul.f32 0.5, %v2841_v8  ;;  %v2974_v59 = vadd.f32 1.0, %v4277_v5 }
0x17dc   :  { %v2844_v14 = vmul.f32 0.5, %v2842_v28  ;;  %v2975_v50 = vadd.f32 1.0, %v4279_v19 }
0x17dd   :  { %v2976_v15 = vmul.f32 0.5, %v2974_v59  ;;  %v2853_v26 = vmul.f32 %v2849_v58, %v2843_v11 }
0x17de   :  { %v2977_v43 = vmul.f32 0.5, %v2975_v50  ;;  %v2854_v57 = vmul.f32 %v2850_v30, %v2844_v14 }
0x17df   :  { %v2986_v13 = vmul.f32 %v2982_v62, %v2976_v15 }
0x17e0   :  { %v2987_v28 = vmul.f32 %v2983_v35, %v2977_v43 }
0x1845   :  { %v2858_v40 = vpop.permute.xlu1 %2857 }
0x1846   :  { %v2860_v45 = vpop.permute.xlu0 %2859  ;;  %v2863_v17 = vmul.f32 %v2858_v40, %v2843_v11 }
0x1847   :  { %v2864_v7 = vmul.f32 %v2860_v45, %v2844_v14 }
0x1848   :  { %2867 = vrot.lane.b32.xlu1 %v2863_v17, %s4319_s14 }
0x1849   :  { %2869 = vrot.lane.b32.xlu0 %v2864_v7, %s4319_s14  ;;  %v2991_v4 = vpop.permute.xlu1 %2990 }
0x184a   :  { %v2996_v31 = vmul.f32 %v2991_v4, %v2976_v15  ;;  %v2993_v1 = vpop.permute.xlu0 %2992 }
0x184b   :  { %v2997_v3 = vmul.f32 %v2993_v1, %v2977_v43 }
0x184c   :  { %3000 = vrot.lane.b32.xlu1 %v2996_v31, %s4319_s14 }
0x184d   :  { %3002 = vrot.lane.b32.xlu0 %v2997_v3, %s4319_s14 }
0x18ba   :  { %v2868_v60 = vpop.permute.xlu1 %2867 }
0x18bb   :  { %v2870_v63 = vpop.permute.xlu0 %2869  ;;  %v5178_v6 = vadd.f32 %v2868_v60, %v2853_v26 }
0x18bc   :  { %v5180_v8 = vadd.f32 %v2870_v63, %v2854_v57 }
0x18bd   :  { %4280 = vtanh.f32 %v5178_v6 }
0x18be   :  { %4282 = vtanh.f32 %v5180_v8  ;;  %v3001_v20 = vpop.permute.xlu1 %3000 }
0x18bf   :  { %v5184_v5 = vadd.f32 %v3001_v20, %v2986_v13  ;;  %v3003_v19 = vpop.permute.xlu0 %3002 }
0x18c0   :  { %v5187_v21 = vadd.f32 %v3003_v19, %v2987_v28 }
0x18c1   :  { %4284 = vtanh.f32 %v5184_v5 }
0x18c2   :  { %4286 = vtanh.f32 %v5187_v21 }
0x18c7   :  { %v4281_v59 = vpop.eup %4280 }
0x18c8   :  { %v4283_v40 = vpop.eup %4282  ;;  %2879 = vrot.lane.b32.xlu1 %v4281_v59, %s4319_s14 }
0x18c9   :  { %2881 = vrot.lane.b32.xlu0 %v4283_v40, %s4319_s14 }
0x18cb   :  { %v4285_v45 = vpop.eup %4284 }
0x18cc   :  { %3012 = vrot.lane.b32.xlu1 %v4285_v45, %s4319_s14  ;;  %v4287_v17 = vpop.eup %4286 }
0x18cd   :  { %3014 = vrot.lane.b32.xlu0 %v4287_v17, %s4319_s14 }
0x193a   :  { %v2880_v7 = vpop.permute.xlu1 %2879 }
0x193b   :  { %v2882_v50 = vpop.permute.xlu0 %2881  ;;  %v2885_v4 = vmul.f32 %v2880_v7, %v2843_v11 }
0x193c   :  { %v2886_v31 = vmul.f32 %v2882_v50, %v2844_v14 }
0x193d   :  { %v5195_v1 = vmul.f32 %v4777_v49, %v2885_v4 }
0x193e   :  { %v5198_v3 = vmul.f32 %v4771_v46, %v2886_v31  ;;  %v3013_v54 = vpop.permute.xlu1 %3012 }
0x193f   :  { %v3050_v61 = vrot.slane %v5195_v1, 6  ;;  %v3018_v58 = vmul.f32 %v3013_v54, %v2976_v15  ;;  %v3015_v30 = vpop.permute.xlu0 %3014 }
0x1940   :  { %v3051_v10 = vrot.slane %v5198_v3, 5  ;;  %v3019_v53 = vmul.f32 %v3015_v30, %v2977_v43 }
0x1941   :  { %v5203_v26 = vmul.f32 %v4777_v49, %v3018_v58 }
0x1942   :  { %v3052_v11 = vsel %vm243_vm5, %v3051_v10, %v3050_v61  ;;  %v5209_v57 = vmul.f32 %v4771_v46, %v3019_v53 }
0x1943   :  { %v3184_v14 = vrot.slane %v5203_v26, 1  ;;  %3053 = vrot.lane.b32.xlu1 %v3052_v11, %s4317_s12 }
0x1945   :  { %v3185_v60 = vsel %vm243_vm5, %v5209_v57, %v3184_v14 }
0x1946   :  { %3186 = vrot.lane.b32.xlu0 %v3185_v60, %s4317_s12 }
0x19b5   :  { %v3054_v15 = vpop.permute.xlu1 %3053 }
0x19b6   :  { %3891 = vmatmul.mubr.msk.f32.vlgmr.msra.gmra.mrb[20].mxu1 %vm123_vm3, %v3054_v15 }
0x19b8   :  { %v3187_v62 = vpop.permute.xlu0 %3186 }
0x19b9   :  { %3902 = vmatmul.mubr.msk.f32.vlgmr.msra.gmra.mrb[22].mxu0 %vm123_vm3, %v3187_v62  ;;  %vm2739_vm3 = vcmask 259077  }
0x1a89   :  { %v3123_v43 = vpop.f32.mrb[20].mxu1 }
0x1a8a   :  { %v3128_v63 = vrot.slane %v3123_v43, 1  ;;  %v3129_v13 = vrot.slane %v3123_v43, 2  ;;  %v3892_v35 = vpop.f32.mrb[21].mxu1 }
0x1a8c   :  { %v3132_v20 = vadd.f32 %v3128_v63, %v4729_v34  ;;  %v3133_v28 = vadd.f32 %v3129_v13, %v4731_v36  ;;  %v3256_v19 = vpop.f32.mrb[22].mxu0 }
0x1a8d   :  { %v3261_v59 = vrot.slane %v3256_v19, 1  ;;  %v3903_v40 = vpop.f32.mrb[23].mxu0  ;;  %v3264_v45 = vadd.f32 %v3256_v19, %v4725_v29 }
0x1a8e   :  { %4288 = vtanh.f32 %v3132_v20  ;;  %v3134_v36 = vmul.f32 0.5, %v3132_v20  ;;  %v3135_v31 = vmul.f32 0.5, %v3133_v28 }
0x1a8f   :  { %4290 = vtanh.f32 %v3133_v28  ;;  %v3265_v17 = vadd.f32 %v3261_v59, %v4734_v42  ;;  %v3266_v29 = vmul.f32 0.5, %v3264_v45 }
0x1a90   :  { %4292 = vtanh.f32 %v3264_v45  ;;  %v3022_v45 = vmul.f32 %v4777_v49, %v5178_v6 }
0x1a91   :  { %4294 = vtanh.f32 %v3265_v17  ;;  %v3267_v42 = vmul.f32 0.5, %v3265_v17  ;;  %v3023_v17 = vmul.f32 %v4771_v46, %v5180_v8 }
0x1a92   :  { %4296 = vtanh.f32 %v3134_v36 }
0x1a93   :  { %4298 = vtanh.f32 %v3135_v31  ;;  %v3147_v36 = vrot.slane %v3023_v17, 7  ;;  %v3027_v31 = vmul.f32 %v4771_v46, %v5187_v21 }
0x1a94   :  { %4300 = vtanh.f32 %v3266_v29 }
0x1a95   :  { %4302 = vtanh.f32 %v3267_v42 }
0x1a98   :  { %v4289_v7 = vpop.eup %4288 }
0x1a99   :  { %3154 = vrot.lane.b32.xlu1 %v4289_v7, %s4319_s14  ;;  %v4291_v50 = vpop.eup %4290  ;;  %v3146_v7 = vrot.slane %v3022_v45, 7 }
0x1a9a   :  { %v4293_v4 = vpop.eup %4292 }
0x1a9b   :  { %3286 = vrot.lane.b32.xlu0 %v4293_v4, %s4319_s14  ;;  %v4295_v34 = vpop.eup %4294 }
0x1a9c   :  { %v4297_v54 = vpop.eup %4296 }
0x1a9d   :  { %3156 = vrot.lane.b32.xlu1 %v4291_v50, %s4319_s14  ;;  %v4299_v61 = vpop.eup %4298  ;;  %v3138_v58 = vadd.f32 1.0, %v4297_v54  ;;  %v3026_v50 = vmul.f32 %v4777_v49, %v5184_v5 }
0x1a9e   :  { %v4301_v10 = vpop.eup %4300  ;;  %v3139_v11 = vadd.f32 1.0, %v4299_v61 }
0x1a9f   :  { %3288 = vrot.lane.b32.xlu0 %v4295_v34, %s4319_s14  ;;  %v5224_v30 = vmul.f32 0.5, %v3138_v58  ;;  %v3270_v53 = vadd.f32 1.0, %v4301_v10  ;;  %v4303_v14 = vpop.eup %4302  ;;  %v3278_v29 = vrot.slane %v3026_v50, 1  ;;  %v3279_v58 = vrot.slane %v3027_v31, 1 }
0x1aa0   :  { %v5230_v43 = vmul.f32 0.5, %v3139_v11  ;;  %v3271_v63 = vadd.f32 1.0, %v4303_v14 }
0x1aa1   :  { %v5227_v62 = vmul.f32 0.5, %v3270_v53  ;;  %v3150_v4 = vmul.f32 %v3146_v7, %v5224_v30 }
0x1aa2   :  { %v5235_v19 = vmul.f32 0.5, %v3271_v63  ;;  %v3151_v6 = vmul.f32 %v3147_v36, %v5230_v43 }
0x1aa3   :  { %v3282_v54 = vmul.f32 %v3278_v29, %v5227_v62 }
0x1aa4   :  { %v3283_v5 = vmul.f32 %v3279_v58, %v5235_v19 }
0x1b0b   :  { %v3155_v60 = vpop.permute.xlu1 %3154 }
0x1b0c   :  { %v3160_v15 = vmul.f32 %v3155_v60, %v5224_v30 }
0x1b0d   :  { %v3287_v13 = vpop.permute.xlu0 %3286 }
0x1b0e   :  { %3164 = vrot.lane.b32.xlu1 %v3160_v15, %s4319_s14  ;;  %v3292_v20 = vmul.f32 %v3287_v13, %v5227_v62 }
0x1b0f   :  { %v3157_v35 = vpop.permute.xlu1 %3156 }
0x1b10   :  { %v3161_v28 = vmul.f32 %v3157_v35, %v5230_v43  ;;  %3296 = vrot.lane.b32.xlu0 %v3292_v20, %s4319_s14 }
0x1b11   :  { %v3289_v59 = vpop.permute.xlu0 %3288 }
0x1b12   :  { %3166 = vrot.lane.b32.xlu1 %v3161_v28, %s4319_s14  ;;  %v3293_v40 = vmul.f32 %v3289_v59, %v5235_v19 }
0x1b14   :  { %3298 = vrot.lane.b32.xlu0 %v3293_v40, %s4319_s14 }
0x1b80   :  { %v3165_v34 = vpop.permute.xlu1 %3164 }
0x1b81   :  { %v3170_v42 = vadd.f32 %v3165_v34, %v3150_v4 }
0x1b82   :  { %v3297_v61 = vpop.permute.xlu0 %3296 }
0x1b83   :  { %4304 = vtanh.f32 %v3170_v42  ;;  %v3302_v10 = vadd.f32 %v3297_v61, %v3282_v54 }
0x1b84   :  { %v3167_v8 = vpop.permute.xlu1 %3166 }
0x1b85   :  { %v3171_v53 = vadd.f32 %v3167_v8, %v3151_v6  ;;  %4306 = vtanh.f32 %v3302_v10 }
0x1b86   :  { %v3299_v11 = vpop.permute.xlu0 %3298 }
0x1b87   :  { %4308 = vtanh.f32 %v3171_v53  ;;  %v3303_v14 = vadd.f32 %v3299_v11, %v3283_v5  ;;  %v3544_v11 = vld [vmem:[%s5427_s18] ss:$0 sm:$0xff] }
0x1b89   :  { %4310 = vtanh.f32 %v3303_v14 }
0x1b8d   :  { %v4305_v21 = vpop.eup %4304 }
0x1b8e   :  { %3176 = vrot.lane.b32.xlu1 %v4305_v21, %s4319_s14 }
0x1b8f   :  { %v4307_v60 = vpop.eup %4306 }
0x1b90   :  { %3308 = vrot.lane.b32.xlu0 %v4307_v60, %s4319_s14 }
0x1b91   :  { %v4309_v15 = vpop.eup %4308 }
0x1b92   :  { %3178 = vrot.lane.b32.xlu1 %v4309_v15, %s4319_s14 }
0x1b93   :  { %v4311_v63 = vpop.eup %4310 }
0x1b94   :  { %3310 = vrot.lane.b32.xlu0 %v4311_v63, %s4319_s14 }
0x1b96   :  { %1246 = vrot.lane.b32.xlu1 %v4783_v52, %s4317_s12 }
0x1b98   :  { %1257 = vrot.lane.b32.xlu0 %v4780_v51, %s4318_s26  ;;  %v3345_v51 = vld [vmem:[%s5426_s17 + $0x8] sm:$0xff] }
0x1b9a   :  { %1542 = vrot.lane.b32.xlu1 %v4847_v24, %s4317_s12  ;;  %v3347_v24 = vld [vmem:[%s5426_s17 + $0x18] sm:$0xff] }
0x1b9c   :  { %1553 = vrot.lane.b32.xlu0 %v4850_v25, %s4318_s26 }
0x1b9e   :  { %1839 = vrot.lane.b32.xlu1 %v4917_v16, %s4317_s12 }
0x1ba0   :  { %1850 = vrot.lane.b32.xlu0 %v4925_v39, %s4318_s26  ;;  %v3350_v39 = vld [vmem:[%s5426_s17 + $0x30] sm:$0xff] }
0x1ba2   :  { %2137 = vrot.lane.b32.xlu1 %v4987_v22, %s4317_s12 }
0x1ba4   :  { %2148 = vrot.lane.b32.xlu0 %v4995_v56, %s4318_s26 }
0x1ba6   :  { %1248 = vrot.lane.b32.xlu1 %v4774_v47, %s4317_s12  ;;  %v3344_v47 = vld [vmem:[%s5426_s17] sm:$0xff] }
0x1ba7   :  { %v4062_v52 = vpack.c.bf16 %v3345_v51, %v3344_v47 }
0x1ba8   :  { %1259 = vrot.lane.b32.xlu0 %v4787_v55, %s4318_s26  ;;  %v3346_v55 = vld [vmem:[%s5426_s17 + $0x10] sm:$0xff] }
0x1ba9   :  { %4063 = vmatprep.subr.bf16.mxu1 %v4062_v52  ;;  %v4066_v25 = vpack.c.bf16 %v3347_v24, %v3346_v55 }
0x1baa   :  { %1544 = vrot.lane.b32.xlu1 %v4859_v38, %s4317_s12  ;;  %4065 = vmatpush3.bf16.msra.mxu1 %v4062_v52  ;;  %v3349_v38 = vld [vmem:[%s5426_s17 + $0x28] sm:$0xff] }
0x1bab   :  { %4067 = vmatprep.subr.bf16.mxu1 %v4066_v25 }
0x1bac   :  { %1555 = vrot.lane.b32.xlu0 %v4853_v27, %s4318_s26  ;;  %v3348_v27 = vld [vmem:[%s5426_s17 + $0x20] sm:$0xff] }
0x1bae   :  { %1841 = vrot.lane.b32.xlu1 %v4920_v44, %s4317_s12  ;;  %4069 = vmatpush3.bf16.msra.mxu1 %v4066_v25  ;;  %v4070_v44 = vpack.c.bf16 %v3349_v38, %v3348_v27 }
0x1bb0   :  { %1852 = vrot.lane.b32.xlu0 %v4928_v48, %s4318_s26  ;;  %v3351_v48 = vld [vmem:[%s5426_s17 + $0x38] sm:$0xff]  ;;  %4071 = vmatprep.subr.bf16.mxu1 %v4070_v44 }
0x1bb2   :  { %2139 = vrot.lane.b32.xlu1 %v4990_v41, %s4317_s12  ;;  %v4074_v41 = vpack.c.bf16 %v3351_v48, %v3350_v39  ;;  %4073 = vmatpush3.bf16.msra.mxu1 %v4070_v44 }
0x1bb4   :  { %2150 = vrot.lane.b32.xlu0 %v4998_v23, %s4318_s26  ;;  %4075 = vmatprep.subr.bf16.mxu1 %v4074_v41 }
0x1bb6   :  { %2435 = vrot.lane.b32.xlu1 %v5057_v12, %s4317_s12  ;;  %4077 = vmatpush3.bf16.msra.mxu1 %v4074_v41 }
0x1bb8   :  { %2446 = vrot.lane.b32.xlu0 %v5065_v2, %s4318_s26 }
0x1bba   :  { %2733 = vrot.lane.b32.xlu1 %v5127_v37, %s4317_s12 }
0x1bbc   :  { %2744 = vrot.lane.b32.xlu0 %v5135_v9, %s4318_s26 }
0x1bbe   :  { %3030 = vrot.lane.b32.xlu1 %v5195_v1, %s4317_s12 }
0x1bc0   :  { %3041 = vrot.lane.b32.xlu0 %v5203_v26, %s4318_s26 }
0x1bc2   :  { %2437 = vrot.lane.b32.xlu1 %v5060_v18, %s4317_s12 }
0x1bc4   :  { %2448 = vrot.lane.b32.xlu0 %v5068_v33, %s4318_s26 }
0x1bc6   :  { %2735 = vrot.lane.b32.xlu1 %v5130_v32, %s4317_s12 }
0x1bc8   :  { %2746 = vrot.lane.b32.xlu0 %v5138_v0, %s4318_s26 }
0x1bca   :  { %3032 = vrot.lane.b32.xlu1 %v5198_v3, %s4317_s12 }
0x1bcc   :  { %3043 = vrot.lane.b32.xlu0 %v5209_v57, %s4318_s26 }
0x1c00   :  { %v3177_v16 = vpop.permute.xlu1 %3176 }
0x1c01   :  { %v3182_v22 = vmul.f32 %v3177_v16, %v5224_v30 }
0x1c02   :  { %v3309_v23 = vpop.permute.xlu0 %3308 }
0x1c03   :  { %v3316_v56 = vmul.f32 %v4777_v49, %v3182_v22  ;;  %v3314_v12 = vmul.f32 %v3309_v23, %v5227_v62 }
0x1c04   :  { %v3179_v18 = vpop.permute.xlu1 %3178 }
0x1c05   :  { %3322 = vrot.lane.b32.xlu1 %v3316_v56, %s4317_s12  ;;  %v3183_v2 = vmul.f32 %v3179_v18, %v5230_v43  ;;  %v3318_v33 = vmul.f32 %v4777_v49, %v3314_v12 }
0x1c06   :  { %v3311_v32 = vpop.permute.xlu0 %3310 }
0x1c07   :  { %v3317_v37 = vmul.f32 %v4771_v46, %v3183_v2  ;;  %v3315_v9 = vmul.f32 %v3311_v32, %v5235_v19  ;;  %3333 = vrot.lane.b32.xlu0 %v3318_v33, %s4318_s26 }
0x1c08   :  { %v1247_v0 = vpop.permute.xlu1 %1246 }
0x1c09   :  { %1253 = vst.msk [vmem:[#allocation2] sm:$0x1] %vm1252_vm9, %v1247_v0  ;;  %3324 = vrot.lane.b32.xlu1 %v3317_v37, %s4317_s12  ;;  %v3319_v1 = vmul.f32 %v4771_v46, %v3315_v9 }
0x1c0a   :  { %v1258_v3 = vpop.permute.xlu0 %1257 }
0x1c0b   :  { %1264 = vst.msk [vmem:[#allocation2] sm:$0x80] %vm1263_vm10, %v1258_v3  ;;  %3335 = vrot.lane.b32.xlu0 %v3319_v1, %s4318_s26 }
0x1c0c   :  { %v1543_v49 = vpop.permute.xlu1 %1542 }
0x1c0d   :  { %1549 = vst.msk [vmem:[#allocation2] sm:$0x2] %vm1548_vm11, %v1543_v49 }
0x1c0e   :  { %v1554_v26 = vpop.permute.xlu0 %1553 }
0x1c0f   :  { %1560 = vst.msk [vmem:[#allocation2] sm:$0x40] %vm1559_vm12, %v1554_v26 }
0x1c10   :  { %v1840_v57 = vpop.permute.xlu1 %1839 }
0x1c11   :  { %1846 = vst.msk [vmem:[#allocation2] sm:$0x4] %vm1845_vm13, %v1840_v57 }
0x1c12   :  { %v1851_v46 = vpop.permute.xlu0 %1850 }
0x1c13   :  { %1857 = vst.msk [vmem:[#allocation2] sm:$0x20] %vm1856_vm14, %v1851_v46 }
0x1c14   :  { %v2138_v30 = vpop.permute.xlu1 %2137 }
0x1c15   :  { %2144 = vst.msk [vmem:[#allocation2] sm:$0x8] %vm2143_vm15, %v2138_v30 }
0x1c16   :  { %v2149_v62 = vpop.permute.xlu0 %2148 }
0x1c17   :  { %2155 = vst.msk [vmem:[#allocation2] sm:$0x10] %vm2154_vm0, %v2149_v62 }
0x1c18   :  { %v1249_v43 = vpop.permute.xlu1 %1248 }
0x1c19   :  { %1254 = vst.msk [vmem:[#allocation2 + $0x8] sm:$0x1] %vm1252_vm9, %v1249_v43  ;;  %vm3339_vm9 = vcmask 516352  }
0x1c1a   :  { %v1260_v13 = vpop.permute.xlu0 %1259 }
0x1c1b   :  { %1265 = vst.msk [vmem:[#allocation2 + $0x8] sm:$0x80] %vm1263_vm10, %v1260_v13  ;;  %vm3359_vm10 = vcmask 523264  }
0x1c1c   :  { %v1545_v35 = vpop.permute.xlu1 %1544 }
0x1c1d   :  { %1550 = vst.msk [vmem:[#allocation2 + $0x8] sm:$0x2] %vm1548_vm11, %v1545_v35  ;;  %vm3455_vm11 = vcmask 1043459  }
0x1c1e   :  { %v1556_v20 = vpop.permute.xlu0 %1555 }
0x1c1f   :  { %1561 = vst.msk [vmem:[#allocation2 + $0x8] sm:$0x40] %vm1559_vm12, %v1556_v20  ;;  %vm3448_vm12 = vcmask 1042434  }
0x1c20   :  { %v1842_v28 = vpop.permute.xlu1 %1841 }
0x1c21   :  { %1847 = vst.msk [vmem:[#allocation2 + $0x8] sm:$0x4] %vm1845_vm13, %v1842_v28  ;;  %vm3469_vm13 = vcmask 1045509  }
0x1c22   :  { %v1853_v19 = vpop.permute.xlu0 %1852 }
0x1c23   :  { %1858 = vst.msk [vmem:[#allocation2 + $0x8] sm:$0x20] %vm1856_vm14, %v1853_v19  ;;  %vm3462_vm14 = vcmask 1044484  }
0x1c24   :  { %v2140_v59 = vpop.permute.xlu1 %2139 }
0x1c25   :  { %2145 = vst.msk [vmem:[#allocation2 + $0x8] sm:$0x8] %vm2143_vm15, %v2140_v59  ;;  %vm3483_vm15 = vcmask 1047559  }
0x1c26   :  { %v2151_v40 = vpop.permute.xlu0 %2150 }
0x1c27   :  { %2156 = vst.msk [vmem:[#allocation2 + $0x8] sm:$0x10] %vm2154_vm0, %v2151_v40  ;;  %vm3476_vm0 = vcmask 1046534  }
0x1c28   :  { %v2436_v45 = vpop.permute.xlu1 %2435 }
0x1c29   :  { %2442 = vst.msk [vmem:[#allocation2] sm:$0x10] %vm2441_vm1, %v2436_v45 }
0x1c2a   :  { %v2447_v17 = vpop.permute.xlu0 %2446 }
0x1c2b   :  { %2453 = vst.msk [vmem:[#allocation2] sm:$0x8] %vm2452_vm2, %v2447_v17 }
0x1c2c   :  { %v2734_v7 = vpop.permute.xlu1 %2733 }
0x1c2d   :  { %2740 = vst.msk [vmem:[#allocation2] sm:$0x20] %vm2739_vm3, %v2734_v7 }
0x1c2e   :  { %v2745_v50 = vpop.permute.xlu0 %2744 }
0x1c2f   :  { %2751 = vst.msk [vmem:[#allocation2] sm:$0x4] %vm2750_vm4, %v2745_v50 }
0x1c30   :  { %v3031_v4 = vpop.permute.xlu1 %3030 }
0x1c31   :  { %3037 = vst.msk [vmem:[#allocation2] sm:$0x40] %vm3036_vm6, %v3031_v4 }
0x1c32   :  { %v3042_v34 = vpop.permute.xlu0 %3041 }
0x1c33   :  { %3048 = vst.msk [vmem:[#allocation2] sm:$0x2] %vm3047_vm7, %v3042_v34 }
0x1c34   :  { %v2438_v36 = vpop.permute.xlu1 %2437 }
0x1c35   :  { %2443 = vst.msk [vmem:[#allocation2 + $0x8] sm:$0x10] %vm2441_vm1, %v2438_v36  ;;  %vm3446_vm1 = vcmask 123904  }
0x1c36   :  { %v2449_v31 = vpop.permute.xlu0 %2448 }
0x1c37   :  { %2454 = vst.msk [vmem:[#allocation2 + $0x8] sm:$0x8] %vm2452_vm2, %v2449_v31  ;;  %vm3453_vm2 = vcmask 256129  }
0x1c38   :  { %v2736_v29 = vpop.permute.xlu1 %2735 }
0x1c39   :  { %2741 = vst.msk [vmem:[#allocation2 + $0x8] sm:$0x20] %vm2739_vm3, %v2736_v29  ;;  %vm3460_vm3 = vcmask 388354  }
0x1c3a   :  { %v2747_v42 = vpop.permute.xlu0 %2746 }
0x1c3b   :  { %2752 = vst.msk [vmem:[#allocation2 + $0x8] sm:$0x4] %vm2750_vm4, %v2747_v42  ;;  %vm3474_vm4 = vcmask 652804  }
0x1c3c   :  { %v3033_v54 = vpop.permute.xlu1 %3032 }
0x1c3d   :  { %3038 = vst.msk [vmem:[#allocation2 + $0x8] sm:$0x40] %vm3036_vm6, %v3033_v54  ;;  %vm3481_vm6 = vcmask 785029  }
0x1c3e   :  { %v3044_v6 = vpop.permute.xlu0 %3043 }
0x1c3f   :  { %3049 = vst.msk [vmem:[#allocation2 + $0x8] sm:$0x2] %vm3047_vm7, %v3044_v6  ;;  %vm3488_vm7 = vcmask 917254  }
0x1c77   :  { %v3323_v61 = vpop.permute.xlu1 %3322 }
0x1c78   :  { %3329 = vst.msk [vmem:[#allocation2] sm:$0x80] %vm3328_vm8, %v3323_v61 }
0x1c79   :  { %v3334_v8 = vpop.permute.xlu0 %3333 }
0x1c7a   :  { %3340 = vst.msk [vmem:[#allocation2] sm:$0x1] %vm3339_vm9, %v3334_v8 }
0x1c7b   :  { %v3325_v58 = vpop.permute.xlu1 %3324 }
0x1c7c   :  { %3330 = vst.msk [vmem:[#allocation2 + $0x8] sm:$0x80] %vm3328_vm8, %v3325_v58  ;;  %vm3498_vm8 = vcmask 1041280  }
0x1c7d   :  { %v3336_v10 = vpop.permute.xlu0 %3335 }
0x1c7e   :  { %3341 = vst.msk [vmem:[#allocation2 + $0x8] sm:$0x1] %vm3339_vm9, %v3336_v10  ;;  %vm3496_vm9 = vcmask 1048455  }
0x1c81   :  { %v3342_v53 = vld [vmem:[#allocation2] sm:$0xff] }
0x1c82   :  { %3920 = vmatprep.mubr.msk.f32.mxu1 %vm3359_vm10, %v3342_v53 }
0x1c85   :  { %v3343_v5 = vld [vmem:[#allocation2 + $0x8] sm:$0xff] }
0x1c86   :  { %3921 = vmatmul.mubr.msk.f32.vlgmr.msra.gmra.mrb[22].mxu1 %vm3359_vm10, %v3343_v5 }
0x1d59   :  { %v3922_v14 = vpop.f32.mrb[22].mxu1 }
0x1d5a   :  { %v3438_v21 = vadd.f32 %v3922_v14, %v3544_v11  ;;  %v3432_v60 = vpop.f32.mrb[23].mxu1 }
0x1d5b   :  { %v3433_v15 = vadd.f32 %v3544_v11, %v3432_v60 }
0x1d5c   :  { %v3443_v63 = vrot.slane %v3438_v21, 7 }
0x1d5e   :  { %v3456_v47 = vsel %vm3455_vm11, %v3443_v63, %v3433_v15  ;;  %v3449_v51 = vsel %vm3448_vm12, %v3443_v63, %v3433_v15  ;;  %v3470_v52 = vsel %vm3469_vm13, %v3443_v63, %v3433_v15  ;;  %v3463_v55 = vsel %vm3462_vm14, %v3443_v63, %v3433_v15 }
0x1d5f   :  { %3457 = vrot.lane.b32.xlu0 %v3456_v47, %s4319_s14  ;;  %3450 = vrot.lane.b32.xlu1 %v3449_v51, %s4320_s1  ;;  %v3484_v24 = vsel %vm3483_vm15, %v3443_v63, %v3433_v15  ;;  %v3477_v25 = vsel %vm3476_vm0, %v3443_v63, %v3433_v15  ;;  %v3444_v27 = vsel %vm243_vm5, %v3443_v63, %v3433_v15  ;;  %vm3467_vm5 = vcmask 520579  }
0x1d60   :  { %3447 = vst.msk [vmem:[%s5428_s19] sm:$0x3] %vm3446_vm1, %v3444_v27 }
0x1d63   :  { %3471 = vrot.lane.b32.xlu0 %v3470_v52, %s4317_s12  ;;  %3464 = vrot.lane.b32.xlu1 %v3463_v55, %s4321_s16 }
0x1d67   :  { %3485 = vrot.lane.b32.xlu0 %v3484_v24, %s4318_s26  ;;  %3478 = vrot.lane.b32.xlu1 %v3477_v25, %s4322_s9 }
0x1d6b   :  { %3492 = vrot.lane.b32.xlu0 %v3443_v63, %s4323_s15  ;;  %3490 = vrot.lane.b32.xlu1 %v3433_v15, %s4323_s15 }
0x1dd1   :  { %v3458_v38 = vpop.permute.xlu0 %3457  ;;  %v3451_v16 = vpop.permute.xlu1 %3450 }
0x1dd2   :  { %3454 = vst.msk [vmem:[%s5428_s19 - $0x1] sm:$0x6] %vm3453_vm2, %v3451_v16 }
0x1dd3   :  { %3461 = vst.msk [vmem:[%s5428_s19 - $0x2] sm:$0xc] %vm3460_vm3, %v3458_v38 }
0x1dd5   :  { %v3472_v44 = vpop.permute.xlu0 %3471  ;;  %v3465_v39 = vpop.permute.xlu1 %3464 }
0x1dd6   :  { %3468 = vst.msk [vmem:[%s5428_s19 - $0x3] sm:$0x18] %vm3467_vm5, %v3465_v39 }
0x1dd7   :  { %3475 = vst.msk [vmem:[%s5428_s19 - $0x4] sm:$0x30] %vm3474_vm4, %v3472_v44 }
0x1dd9   :  { %v3486_v48 = vpop.permute.xlu0 %3485  ;;  %v3479_v22 = vpop.permute.xlu1 %3478 }
0x1dda   :  { %3482 = vst.msk [vmem:[%s5428_s19 - $0x5] sm:$0x60] %vm3481_vm6, %v3479_v22 }
0x1ddb   :  { %3489 = vst.msk [vmem:[%s5428_s19 - $0x6] sm:$0xc0] %vm3488_vm7, %v3486_v48 }
0x1ddd   :  { %v3493_v41 = vpop.permute.xlu0 %3492  ;;  %v3491_v56 = vpop.permute.xlu1 %3490 }
0x1dde   :  { %3499 = vst.msk [vmem:[%s5428_s19 + $0x1] sm:$0x1] %vm3498_vm8, %v3493_v41 }
0x1ddf   :  { %3497 = vst.msk [vmem:[%s5428_s19 - $0x7] sm:$0x80] %vm3496_vm9, %v3491_v56 }

</bundles_post_ra>
